<compile_context>
chip_gen: v5e
topology: v5e:2x2
jax: 0.10.0
libtpu: 0.0.40
codegen_flags: <defaults>
</compile_context>

<pallas_src>
import math
from functools import partial

import jax
import jax.numpy as jnp
from jax.experimental import pallas as pl
from jax.experimental.pallas import tpu as pltpu

# -------------------- model config (small, BERT-like) --------------------
VOCAB = 100
TYPE_VOCAB = 2
MAX_POS = 32
HIDDEN = 64
NUM_HEADS = 4
HEAD_DIM = HIDDEN // NUM_HEADS
INTERMEDIATE = 128
NUM_LAYERS = 2
NUM_TAGS = 5
TAG_PAD = 128              # lane-dense padded tag-head width
LN_EPS = 1e-12
IGNORE_INDEX = -100        # nn.CrossEntropyLoss default


# -------------------- helpers used inside kernels --------------------
def _gelu(x):
    # tanh-approximate GELU (PyTorch BERT uses erf-GELU; numerically very close)
    c = math.sqrt(2.0 / math.pi)
    return 0.5 * x * (1.0 + jnp.tanh(c * (x + 0.044715 * x * x * x)))


def _ln(x, g, b, eps):
    mean = jnp.mean(x, axis=-1, keepdims=True)
    var = jnp.mean((x - mean) * (x - mean), axis=-1, keepdims=True)
    return (x - mean) * jax.lax.rsqrt(var + eps) * g + b


def _full2(shape):
    return pl.BlockSpec(shape, lambda i: (0, 0))


# -------------------- fused encoder layer kernel --------------------
def _layer_kernel(h_ref, mask_ref, inln_g_ref, inln_b_ref,
                  wqkv_ref, bqkv_ref, wo_ref, bo_ref,
                  ln1g_ref, ln1b_ref, wi_ref, bi_ref, wo2_ref, bo2_ref,
                  ln2g_ref, ln2b_ref, o_ref, *, B, S, NH, Dh, eps, apply_in_ln):
    H = NH * Dh
    x = h_ref[...].astype(jnp.float32)                        # (M, H)
    if apply_in_ln:                                           # embedding LN fused into layer 0
        x = _ln(x, inln_g_ref[...], inln_b_ref[...], eps)
    x_bf = x.astype(jnp.bfloat16)

    # --- fused QKV projection: one lane-dense (M, 3H) matmul (scale folded into Q cols) ---
    qkv = jnp.dot(x_bf, wqkv_ref[...],
                  preferred_element_type=jnp.float32) + bqkv_ref[...]
    qkv_bf = qkv.astype(jnp.bfloat16)
    q_all = qkv_bf[:, 0 * H:1 * H]                            # (M, H) panels, sliced once
    k_all = qkv_bf[:, 1 * H:2 * H]
    v_all = qkv_bf[:, 2 * H:3 * H]
    wo = wo_ref[...]                                          # (H, H) bf16

    # --- attention: per-head context folded straight into the output projection ---
    # attn_out[b] = sum_h (softmax(q_h k_h^T + mask) v_h) @ wo[h*Dh:(h+1)*Dh, :]
    # (no ctx scratch, no 16-lane masked stores; all partials are lane-dense (S, H))
    attn_rows = []
    for b in range(B):
        r0 = b * S
        madd = (1.0 - mask_ref[b:b + 1, :]) * (-1e9)          # (1, S) additive key mask
        acc = None
        for hd in range(NH):
            c0 = hd * Dh
            q = q_all[r0:r0 + S, c0:c0 + Dh]                  # (S, Dh) bf16
            k = k_all[r0:r0 + S, c0:c0 + Dh]
            v = v_all[r0:r0 + S, c0:c0 + Dh]
            s = jax.lax.dot_general(q, k, (((1,), (1,)), ((), ())),
                                    preferred_element_type=jnp.float32)
            s = s + madd
            s = s - jnp.max(s, axis=-1, keepdims=True)
            p = jnp.exp(s)
            p = p * pl.reciprocal(jnp.sum(p, axis=-1, keepdims=True), approx=True)
            ctx_h = jnp.dot(p.astype(jnp.bfloat16), v,
                            preferred_element_type=jnp.float32)          # (S, Dh)
            part = jnp.dot(ctx_h.astype(jnp.bfloat16), wo[c0:c0 + Dh, :],
                           preferred_element_type=jnp.float32)           # (S, H)
            acc = part if acc is None else acc + part
        attn_rows.append(acc)
    attn_out = jnp.concatenate(attn_rows, axis=0) + bo_ref[...]          # (M, H)

    # --- residual + LN1 ---
    h1 = _ln(attn_out + x, ln1g_ref[...], ln1b_ref[...], eps)

    # --- FFN (GELU fused) + residual + LN2 ---
    inter = jnp.dot(h1.astype(jnp.bfloat16), wi_ref[...],
                    preferred_element_type=jnp.float32) + bi_ref[...]
    inter = _gelu(inter)
    ff = jnp.dot(inter.astype(jnp.bfloat16), wo2_ref[...],
                 preferred_element_type=jnp.float32) + bo2_ref[...]
    o_ref[...] = _ln(ff + h1, ln2g_ref[...], ln2b_ref[...], eps).astype(o_ref.dtype)


def bert_layer(h, mask_f, lp, in_ln_g, in_ln_b, *, apply_in_ln):
    M, H = h.shape
    B, S = mask_f.shape
    H3 = 3 * H
    I = lp["wi"].shape[1]
    kernel = partial(_layer_kernel, B=B, S=S, NH=NUM_HEADS, Dh=HEAD_DIM,
                     eps=LN_EPS, apply_in_ln=apply_in_ln)
    return pl.pallas_call(
        kernel,
        out_shape=jax.ShapeDtypeStruct((M, H), jnp.bfloat16),   # bf16 inter-layer activations
        grid=(1,),
        in_specs=[
            _full2((M, H)),    # h (bf16)
            _full2((B, S)),    # mask (0/1 floats)
            _full2((1, H)),    # input-LN gamma (embedding LN; used only when apply_in_ln)
            _full2((1, H)),    # input-LN beta
            _full2((H, H3)),   # wqkv (bf16, Q cols pre-scaled by 1/sqrt(Dh))
            _full2((1, H3)),   # bqkv
            _full2((H, H)),    # wo (bf16)
            _full2((1, H)),    # bo
            _full2((1, H)),    # ln1_g
            _full2((1, H)),    # ln1_b
            _full2((H, I)),    # wi (bf16)
            _full2((1, I)),    # bi
            _full2((I, H)),    # wo2 (bf16)
            _full2((1, H)),    # bo2
            _full2((1, H)),    # ln2_g
            _full2((1, H)),    # ln2_b
        ],
        out_specs=_full2((M, H)),
        input_output_aliases={0: 0},                  # reuse the (M,H) activation buffer
        compiler_params=pltpu.CompilerParams(
            dimension_semantics=("arbitrary",),
            vmem_limit_bytes=32 * 1024 * 1024),
    )(h, mask_f,
      in_ln_g.reshape(1, H), in_ln_b.reshape(1, H),
      lp["wqkv"], lp["bqkv"].reshape(1, H3),
      lp["wo"], lp["bo"].reshape(1, H),
      lp["ln1_g"].reshape(1, H), lp["ln1_b"].reshape(1, H),
      lp["wi"], lp["bi"].reshape(1, I),
      lp["wo2"], lp["bo2"].reshape(1, H),
      lp["ln2_g"].reshape(1, H), lp["ln2_b"].reshape(1, H))


# -------------------- fused (lane-dense) tag head + masked cross-entropy --------------------
def _head_loss_kernel(h_ref, w_ref, b_ref, lab_ref, em_ref, loss_ref, *, ignore_index):
    # Logits over the padded TAG_PAD lanes; pad columns have zero weight and bias -1e9,
    # so they vanish in the softmax / log-sum-exp and the real columns are exact.
    lg = jnp.dot(h_ref[...].astype(jnp.bfloat16), w_ref[...],
                 preferred_element_type=jnp.float32) + b_ref[...]     # (N, TAG_PAD)
    em_ref[...] = lg                                                  # lane-dense store
    N, T = lg.shape
    m = jnp.max(lg, axis=-1, keepdims=True)
    z = lg - m
    lse = jnp.log(jnp.sum(jnp.exp(z), axis=-1, keepdims=True))
    logp = z - lse                                                    # (N, TAG_PAD)
    lab = lab_ref[...]                                                # (N, 1) i32
    valid = lab != ignore_index
    safe = jnp.where(valid, lab, 0)
    col = jax.lax.broadcasted_iota(jnp.int32, (N, T), 1)
    onehot = (col == safe).astype(jnp.float32)
    picked = jnp.sum(logp * onehot, axis=-1, keepdims=True)           # (N, 1)
    per_row = jnp.where(valid, -picked, 0.0)
    loss_sum = jnp.sum(per_row, axis=0, keepdims=True)                # (1, 1)
    cnt = jnp.sum(valid.astype(jnp.float32), axis=0, keepdims=True)   # (1, 1)
    loss_ref[...] = loss_sum / jnp.maximum(cnt, 1.0)                  # 0/0 guard


def tag_head_loss(h, fc_w_pad, fc_b_pad, labels):
    M, H = h.shape
    T = fc_w_pad.shape[1]
    em, loss = pl.pallas_call(
        partial(_head_loss_kernel, ignore_index=IGNORE_INDEX),
        out_shape=(jax.ShapeDtypeStruct((M, T), jnp.float32),
                   jax.ShapeDtypeStruct((1, 1), jnp.float32)),
        grid=(1,),
        in_specs=[_full2((M, H)), _full2((H, T)), _full2((1, T)), _full2((M, 1))],
        out_specs=[_full2((M, T)), _full2((1, 1))],
        compiler_params=pltpu.CompilerParams(dimension_semantics=("arbitrary",)),
    )(h, fc_w_pad, fc_b_pad.reshape(1, T), labels.reshape(M, 1).astype(jnp.int32))
    return em, loss


# -------------------- parameter init (deterministic, synthetic) --------------------
def init_params(key):
    keys = iter(jax.random.split(key, 64))

    def nrm(shape):
        return 0.02 * jax.random.normal(next(keys), shape, jnp.float32)

    fc_w = nrm((HIDDEN, NUM_TAGS))
    fc_w_pad = jnp.zeros((HIDDEN, TAG_PAD), jnp.float32).at[:, :NUM_TAGS].set(fc_w)
    fc_b_pad = jnp.full((TAG_PAD,), -1e9, jnp.float32).at[:NUM_TAGS].set(0.0)

    params = {
        "word_emb": nrm((VOCAB, HIDDEN)),
        "pos_emb": nrm((MAX_POS, HIDDEN)),
        "type_emb": nrm((TYPE_VOCAB, HIDDEN)),
        "emb_ln_g": jnp.ones((HIDDEN,), jnp.float32),
        "emb_ln_b": jnp.zeros((HIDDEN,), jnp.float32),
        "layers": [],
        "fc_w_pad": fc_w_pad.astype(jnp.bfloat16),
        "fc_b_pad": fc_b_pad,
    }
    q_scale = 1.0 / math.sqrt(HEAD_DIM)
    for _ in range(NUM_LAYERS):
        wq, wk, wv = nrm((HIDDEN, HIDDEN)), nrm((HIDDEN, HIDDEN)), nrm((HIDDEN, HIDDEN))
        bqkv = jnp.concatenate([jnp.zeros((HIDDEN,)) * q_scale,
                                jnp.zeros((HIDDEN,)), jnp.zeros((HIDDEN,))]).astype(jnp.float32)
        params["layers"].append({
            # fused QKV weight (H, 3H), bf16; 1/sqrt(Dh) folded into the Q columns
            "wqkv": jnp.concatenate([wq * q_scale, wk, wv], axis=1).astype(jnp.bfloat16),
            "bqkv": bqkv,
            "wo": nrm((HIDDEN, HIDDEN)).astype(jnp.bfloat16),
            "bo": jnp.zeros((HIDDEN,), jnp.float32),
            "ln1_g": jnp.ones((HIDDEN,), jnp.float32),
            "ln1_b": jnp.zeros((HIDDEN,), jnp.float32),
            "wi": nrm((HIDDEN, INTERMEDIATE)).astype(jnp.bfloat16),
            "bi": jnp.zeros((INTERMEDIATE,), jnp.float32),
            "wo2": nrm((INTERMEDIATE, HIDDEN)).astype(jnp.bfloat16),
            "bo2": jnp.zeros((HIDDEN,), jnp.float32),
            "ln2_g": jnp.ones((HIDDEN,), jnp.float32),
            "ln2_b": jnp.zeros((HIDDEN,), jnp.float32),
        })
    return params


# -------------------- forward (mirrors Bert.forward) --------------------
def bert_forward(params, ids, mask, token_type_ids, target_tags):
    B, S = ids.shape
    M = B * S

    # --- embeddings (gathers are plain-JAX glue; LN is fused into the first layer kernel) ---
    we = jnp.take(params["word_emb"], ids, axis=0)                       # (B, S, H)
    pe = jnp.take(params["pos_emb"], jnp.arange(S), axis=0)[None, :, :]  # (1, S, H)
    te = jnp.take(params["type_emb"], token_type_ids, axis=0)            # (B, S, H)
    h = (we + pe + te).reshape(M, HIDDEN).astype(jnp.bfloat16)

    # --- transformer layers: one fused Pallas kernel each ---
    mask_f = mask.astype(jnp.float32)                                    # (B, S)
    for li, lyr in enumerate(params["layers"]):
        h = bert_layer(h, mask_f, lyr,
                       params["emb_ln_g"], params["emb_ln_b"],
                       apply_in_ln=(li == 0))

    # --- tag head + masked cross-entropy (ignore_index = -100 on padded tokens) ---
    active = mask.reshape(-1) == 1
    labels = jnp.where(active, target_tags.reshape(-1), IGNORE_INDEX).astype(jnp.int32)
    em_pad, loss = tag_head_loss(h, params["fc_w_pad"], params["fc_b_pad"], labels)

    emissions = em_pad[:, :NUM_TAGS].reshape(B, S, NUM_TAGS)
    return emissions, loss.reshape(())


# -------------------- main --------------------
if __name__ == "__main__":
    B, S = 2, 16
    key = jax.random.PRNGKey(0)
    k_param, k_ids, k_mask, k_tags = jax.random.split(key, 4)

    params = init_params(k_param)

    ids = jax.random.randint(k_ids, (B, S), 0, VOCAB, dtype=jnp.int32)
    # attention mask: first row fully valid, second row padded after 10 tokens
    lens = jnp.array([S, 10], dtype=jnp.int32)
    mask = (jnp.arange(S)[None, :] < lens[:, None]).astype(jnp.int32)
    token_type_ids = jnp.zeros((B, S), dtype=jnp.int32)
    target_tags = jax.random.randint(k_tags, (B, S), 0, NUM_TAGS, dtype=jnp.int32)

    fwd = jax.jit(bert_forward)
    emissions, loss = fwd(params, ids, mask, token_type_ids, target_tags)
    jax.block_until_ready((emissions, loss))

    assert emissions.shape == (B, S, NUM_TAGS)
    assert loss.shape == ()
    assert bool(jnp.isfinite(loss))
    print("KERNEL_OK")
</pallas_src>

<mosaic_0001>
module attributes {stable_mosaic.version = 11 : i64} {
  func.func @_layer_kernel(%arg0: i32, %arg1: memref<32x64xbf16, #tpu.memory_space<vmem>>, %arg2: memref<2x16xf32, #tpu.memory_space<vmem>>, %arg3: memref<1x64xf32, #tpu.memory_space<vmem>>, %arg4: memref<1x64xf32, #tpu.memory_space<vmem>>, %arg5: memref<64x192xbf16, #tpu.memory_space<vmem>>, %arg6: memref<1x192xf32, #tpu.memory_space<vmem>>, %arg7: memref<64x64xbf16, #tpu.memory_space<vmem>>, %arg8: memref<1x64xf32, #tpu.memory_space<vmem>>, %arg9: memref<1x64xf32, #tpu.memory_space<vmem>>, %arg10: memref<1x64xf32, #tpu.memory_space<vmem>>, %arg11: memref<64x128xbf16, #tpu.memory_space<vmem>>, %arg12: memref<1x128xf32, #tpu.memory_space<vmem>>, %arg13: memref<128x64xbf16, #tpu.memory_space<vmem>>, %arg14: memref<1x64xf32, #tpu.memory_space<vmem>>, %arg15: memref<1x64xf32, #tpu.memory_space<vmem>>, %arg16: memref<1x64xf32, #tpu.memory_space<vmem>>, %arg17: memref<32x64xbf16, #tpu.memory_space<vmem>>) attributes {dimension_semantics = [#tpu.dimension_semantics<arbitrary>], iteration_bounds = array<i64: 1>, scalar_prefetch = 0 : i64, scratch_operands = 0 : i64, tpu.core_type = #tpu.core_type<tc>, window_params = [{pipeline_mode = #tpu.pipeline_mode<synchronous>, transform_indices = @transform_0, window_bounds = array<i64: 32, 64>}, {pipeline_mode = #tpu.pipeline_mode<synchronous>, transform_indices = @transform_1, window_bounds = array<i64: 2, 16>}, {pipeline_mode = #tpu.pipeline_mode<synchronous>, transform_indices = @transform_2, window_bounds = array<i64: 1, 64>}, {pipeline_mode = #tpu.pipeline_mode<synchronous>, transform_indices = @transform_3, window_bounds = array<i64: 1, 64>}, {pipeline_mode = #tpu.pipeline_mode<synchronous>, transform_indices = @transform_4, window_bounds = array<i64: 64, 192>}, {pipeline_mode = #tpu.pipeline_mode<synchronous>, transform_indices = @transform_5, window_bounds = array<i64: 1, 192>}, {pipeline_mode = #tpu.pipeline_mode<synchronous>, transform_indices = @transform_6, window_bounds = array<i64: 64, 64>}, {pipeline_mode = #tpu.pipeline_mode<synchronous>, transform_indices = @transform_7, window_bounds = array<i64: 1, 64>}, {pipeline_mode = #tpu.pipeline_mode<synchronous>, transform_indices = @transform_8, window_bounds = array<i64: 1, 64>}, {pipeline_mode = #tpu.pipeline_mode<synchronous>, transform_indices = @transform_9, window_bounds = array<i64: 1, 64>}, {pipeline_mode = #tpu.pipeline_mode<synchronous>, transform_indices = @transform_10, window_bounds = array<i64: 64, 128>}, {pipeline_mode = #tpu.pipeline_mode<synchronous>, transform_indices = @transform_11, window_bounds = array<i64: 1, 128>}, {pipeline_mode = #tpu.pipeline_mode<synchronous>, transform_indices = @transform_12, window_bounds = array<i64: 128, 64>}, {pipeline_mode = #tpu.pipeline_mode<synchronous>, transform_indices = @transform_13, window_bounds = array<i64: 1, 64>}, {pipeline_mode = #tpu.pipeline_mode<synchronous>, transform_indices = @transform_14, window_bounds = array<i64: 1, 64>}, {pipeline_mode = #tpu.pipeline_mode<synchronous>, transform_indices = @transform_15, window_bounds = array<i64: 1, 64>}, {pipeline_mode = #tpu.pipeline_mode<synchronous>, transform_indices = @transform_16, window_bounds = array<i64: 32, 64>}]} {
    %c0 = arith.constant 0 : index
    %c0_0 = arith.constant 0 : index
    %0 = vector.load %arg1[%c0, %c0_0] : memref<32x64xbf16, #tpu.memory_space<vmem>>, vector<32x64xbf16>
    %1 = arith.extf %0 : vector<32x64xbf16> to vector<32x64xf32>
    %c0_1 = arith.constant 0 : index
    %c0_2 = arith.constant 0 : index
    %2 = vector.load %arg3[%c0_1, %c0_2] : memref<1x64xf32, #tpu.memory_space<vmem>>, vector<1x64xf32>
    %c0_3 = arith.constant 0 : index
    %c0_4 = arith.constant 0 : index
    %3 = vector.load %arg4[%c0_3, %c0_4] : memref<1x64xf32, #tpu.memory_space<vmem>>, vector<1x64xf32>
    %cst = arith.constant dense<0.000000e+00> : vector<32xf32>
    %4 = vector.multi_reduction <add>, %1, %cst [1] : vector<32x64xf32> to vector<32xf32>
    %5 = vector.shape_cast %4 : vector<32xf32> to vector<32x1xf32>
    %cst_5 = arith.constant 6.400000e+01 : f32
    %6 = vector.broadcast %cst_5 : f32 to vector<32x1xf32>
    %7 = arith.divf %5, %6 : vector<32x1xf32>
    %8 = vector.broadcast %7 : vector<32x1xf32> to vector<32x64xf32>
    %9 = arith.subf %1, %8 : vector<32x64xf32>
    %10 = vector.broadcast %7 : vector<32x1xf32> to vector<32x64xf32>
    %11 = arith.subf %1, %10 : vector<32x64xf32>
    %12 = arith.mulf %9, %11 : vector<32x64xf32>
    %cst_6 = arith.constant dense<0.000000e+00> : vector<32xf32>
    %13 = vector.multi_reduction <add>, %12, %cst_6 [1] : vector<32x64xf32> to vector<32xf32>
    %14 = vector.shape_cast %13 : vector<32xf32> to vector<32x1xf32>
    %cst_7 = arith.constant 6.400000e+01 : f32
    %15 = vector.broadcast %cst_7 : f32 to vector<32x1xf32>
    %16 = arith.divf %14, %15 : vector<32x1xf32>
    %17 = vector.broadcast %7 : vector<32x1xf32> to vector<32x64xf32>
    %18 = arith.subf %1, %17 : vector<32x64xf32>
    %cst_8 = arith.constant 9.99999996E-13 : f32
    %19 = vector.broadcast %cst_8 : f32 to vector<32x1xf32>
    %20 = arith.addf %16, %19 : vector<32x1xf32>
    %21 = math.rsqrt %20 : vector<32x1xf32>
    %22 = vector.broadcast %21 : vector<32x1xf32> to vector<32x64xf32>
    %23 = arith.mulf %18, %22 : vector<32x64xf32>
    %24 = vector.broadcast %2 : vector<1x64xf32> to vector<32x64xf32>
    %25 = arith.mulf %23, %24 : vector<32x64xf32>
    %26 = vector.broadcast %3 : vector<1x64xf32> to vector<32x64xf32>
    %27 = arith.addf %25, %26 : vector<32x64xf32>
    %28 = arith.truncf %27 : vector<32x64xf32> to vector<32x64xbf16>
    %c0_9 = arith.constant 0 : index
    %c0_10 = arith.constant 0 : index
    %29 = vector.load %arg5[%c0_9, %c0_10] : memref<64x192xbf16, #tpu.memory_space<vmem>>, vector<64x192xbf16>
    %cst_11 = arith.constant dense<0.000000e+00> : vector<32x192xf32>
    %30 = tpu.matmul %28, %29, %cst_11 {dimension_numbers = #tpu.dot_dimension_numbers<[1], [0], [0], [1], [0, 0, 1, 1], [], []>} : vector<32x64xbf16>, vector<64x192xbf16>, vector<32x192xf32> -> vector<32x192xf32>
    %c0_12 = arith.constant 0 : index
    %c0_13 = arith.constant 0 : index
    %31 = vector.load %arg6[%c0_12, %c0_13] : memref<1x192xf32, #tpu.memory_space<vmem>>, vector<1x192xf32>
    %32 = vector.broadcast %31 : vector<1x192xf32> to vector<32x192xf32>
    %33 = arith.addf %30, %32 : vector<32x192xf32>
    %34 = arith.truncf %33 : vector<32x192xf32> to vector<32x192xbf16>
    %35 = vector.extract_strided_slice %34 {offsets = [0, 0], sizes = [32, 64], strides = [1, 1]} : vector<32x192xbf16> to vector<32x64xbf16>
    %36 = vector.extract_strided_slice %34 {offsets = [0, 64], sizes = [32, 64], strides = [1, 1]} : vector<32x192xbf16> to vector<32x64xbf16>
    %37 = vector.extract_strided_slice %34 {offsets = [0, 128], sizes = [32, 64], strides = [1, 1]} : vector<32x192xbf16> to vector<32x64xbf16>
    %c0_14 = arith.constant 0 : index
    %c0_15 = arith.constant 0 : index
    %38 = vector.load %arg7[%c0_14, %c0_15] : memref<64x64xbf16, #tpu.memory_space<vmem>>, vector<64x64xbf16>
    %c0_16 = arith.constant 0 : index
    %c0_17 = arith.constant 0 : index
    %39 = vector.load %arg2[%c0_16, %c0_17] : memref<2x16xf32, #tpu.memory_space<vmem>>, vector<1x16xf32>
    %cst_18 = arith.constant 1.000000e+00 : f32
    %40 = vector.broadcast %cst_18 : f32 to vector<1x16xf32>
    %41 = arith.subf %40, %39 : vector<1x16xf32>
    %cst_19 = arith.constant -1.000000e+09 : f32
    %42 = vector.broadcast %cst_19 : f32 to vector<1x16xf32>
    %43 = arith.mulf %41, %42 : vector<1x16xf32>
    %44 = vector.extract_strided_slice %35 {offsets = [0, 0], sizes = [16, 16], strides = [1, 1]} : vector<32x64xbf16> to vector<16x16xbf16>
    %45 = vector.extract_strided_slice %36 {offsets = [0, 0], sizes = [16, 16], strides = [1, 1]} : vector<32x64xbf16> to vector<16x16xbf16>
    %46 = vector.extract_strided_slice %37 {offsets = [0, 0], sizes = [16, 16], strides = [1, 1]} : vector<32x64xbf16> to vector<16x16xbf16>
    %cst_20 = arith.constant dense<0.000000e+00> : vector<16x16xf32>
    %47 = tpu.matmul %44, %45, %cst_20 {dimension_numbers = #tpu.dot_dimension_numbers<[1], [1], [0], [0], [0, 0, 1, 0], [], []>} : vector<16x16xbf16>, vector<16x16xbf16>, vector<16x16xf32> -> vector<16x16xf32>
    %48 = vector.broadcast %43 : vector<1x16xf32> to vector<16x16xf32>
    %49 = arith.addf %47, %48 : vector<16x16xf32>
    %cst_21 = arith.constant dense<0xFF800000> : vector<16xf32>
    %50 = vector.multi_reduction <maximumf>, %49, %cst_21 [1] : vector<16x16xf32> to vector<16xf32>
    %51 = vector.shape_cast %50 : vector<16xf32> to vector<16x1xf32>
    %52 = vector.broadcast %51 : vector<16x1xf32> to vector<16x16xf32>
    %53 = arith.subf %49, %52 : vector<16x16xf32>
    %54 = math.exp %53 : vector<16x16xf32>
    %cst_22 = arith.constant dense<0.000000e+00> : vector<16xf32>
    %55 = vector.multi_reduction <add>, %54, %cst_22 [1] : vector<16x16xf32> to vector<16xf32>
    %56 = vector.shape_cast %55 : vector<16xf32> to vector<16x1xf32>
    %57 = tpu.reciprocal %56 {approx = true} : vector<16x1xf32> -> vector<16x1xf32>
    %58 = vector.broadcast %57 : vector<16x1xf32> to vector<16x16xf32>
    %59 = arith.mulf %54, %58 : vector<16x16xf32>
    %60 = arith.truncf %59 : vector<16x16xf32> to vector<16x16xbf16>
    %cst_23 = arith.constant dense<0.000000e+00> : vector<16x16xf32>
    %61 = tpu.matmul %60, %46, %cst_23 {dimension_numbers = #tpu.dot_dimension_numbers<[1], [0], [0], [1], [0, 0, 1, 1], [], []>} : vector<16x16xbf16>, vector<16x16xbf16>, vector<16x16xf32> -> vector<16x16xf32>
    %62 = arith.truncf %61 : vector<16x16xf32> to vector<16x16xbf16>
    %63 = vector.extract_strided_slice %38 {offsets = [0, 0], sizes = [16, 64], strides = [1, 1]} : vector<64x64xbf16> to vector<16x64xbf16>
    %cst_24 = arith.constant dense<0.000000e+00> : vector<16x64xf32>
    %64 = tpu.matmul %62, %63, %cst_24 {dimension_numbers = #tpu.dot_dimension_numbers<[1], [0], [0], [1], [0, 0, 1, 1], [], []>} : vector<16x16xbf16>, vector<16x64xbf16>, vector<16x64xf32> -> vector<16x64xf32>
    %65 = vector.extract_strided_slice %35 {offsets = [0, 16], sizes = [16, 16], strides = [1, 1]} : vector<32x64xbf16> to vector<16x16xbf16>
    %66 = vector.extract_strided_slice %36 {offsets = [0, 16], sizes = [16, 16], strides = [1, 1]} : vector<32x64xbf16> to vector<16x16xbf16>
    %67 = vector.extract_strided_slice %37 {offsets = [0, 16], sizes = [16, 16], strides = [1, 1]} : vector<32x64xbf16> to vector<16x16xbf16>
    %cst_25 = arith.constant dense<0.000000e+00> : vector<16x16xf32>
    %68 = tpu.matmul %65, %66, %cst_25 {dimension_numbers = #tpu.dot_dimension_numbers<[1], [1], [0], [0], [0, 0, 1, 0], [], []>} : vector<16x16xbf16>, vector<16x16xbf16>, vector<16x16xf32> -> vector<16x16xf32>
    %69 = vector.broadcast %43 : vector<1x16xf32> to vector<16x16xf32>
    %70 = arith.addf %68, %69 : vector<16x16xf32>
    %cst_26 = arith.constant dense<0xFF800000> : vector<16xf32>
    %71 = vector.multi_reduction <maximumf>, %70, %cst_26 [1] : vector<16x16xf32> to vector<16xf32>
    %72 = vector.shape_cast %71 : vector<16xf32> to vector<16x1xf32>
    %73 = vector.broadcast %72 : vector<16x1xf32> to vector<16x16xf32>
    %74 = arith.subf %70, %73 : vector<16x16xf32>
    %75 = math.exp %74 : vector<16x16xf32>
    %cst_27 = arith.constant dense<0.000000e+00> : vector<16xf32>
    %76 = vector.multi_reduction <add>, %75, %cst_27 [1] : vector<16x16xf32> to vector<16xf32>
    %77 = vector.shape_cast %76 : vector<16xf32> to vector<16x1xf32>
    %78 = tpu.reciprocal %77 {approx = true} : vector<16x1xf32> -> vector<16x1xf32>
    %79 = vector.broadcast %78 : vector<16x1xf32> to vector<16x16xf32>
    %80 = arith.mulf %75, %79 : vector<16x16xf32>
    %81 = arith.truncf %80 : vector<16x16xf32> to vector<16x16xbf16>
    %cst_28 = arith.constant dense<0.000000e+00> : vector<16x16xf32>
    %82 = tpu.matmul %81, %67, %cst_28 {dimension_numbers = #tpu.dot_dimension_numbers<[1], [0], [0], [1], [0, 0, 1, 1], [], []>} : vector<16x16xbf16>, vector<16x16xbf16>, vector<16x16xf32> -> vector<16x16xf32>
    %83 = arith.truncf %82 : vector<16x16xf32> to vector<16x16xbf16>
    %84 = vector.extract_strided_slice %38 {offsets = [16, 0], sizes = [16, 64], strides = [1, 1]} : vector<64x64xbf16> to vector<16x64xbf16>
    %cst_29 = arith.constant dense<0.000000e+00> : vector<16x64xf32>
    %85 = tpu.matmul %83, %84, %cst_29 {dimension_numbers = #tpu.dot_dimension_numbers<[1], [0], [0], [1], [0, 0, 1, 1], [], []>} : vector<16x16xbf16>, vector<16x64xbf16>, vector<16x64xf32> -> vector<16x64xf32>
    %86 = arith.addf %64, %85 : vector<16x64xf32>
    %87 = vector.extract_strided_slice %35 {offsets = [0, 32], sizes = [16, 16], strides = [1, 1]} : vector<32x64xbf16> to vector<16x16xbf16>
    %88 = vector.extract_strided_slice %36 {offsets = [0, 32], sizes = [16, 16], strides = [1, 1]} : vector<32x64xbf16> to vector<16x16xbf16>
    %89 = vector.extract_strided_slice %37 {offsets = [0, 32], sizes = [16, 16], strides = [1, 1]} : vector<32x64xbf16> to vector<16x16xbf16>
    %cst_30 = arith.constant dense<0.000000e+00> : vector<16x16xf32>
    %90 = tpu.matmul %87, %88, %cst_30 {dimension_numbers = #tpu.dot_dimension_numbers<[1], [1], [0], [0], [0, 0, 1, 0], [], []>} : vector<16x16xbf16>, vector<16x16xbf16>, vector<16x16xf32> -> vector<16x16xf32>
    %91 = vector.broadcast %43 : vector<1x16xf32> to vector<16x16xf32>
    %92 = arith.addf %90, %91 : vector<16x16xf32>
    %cst_31 = arith.constant dense<0xFF800000> : vector<16xf32>
    %93 = vector.multi_reduction <maximumf>, %92, %cst_31 [1] : vector<16x16xf32> to vector<16xf32>
    %94 = vector.shape_cast %93 : vector<16xf32> to vector<16x1xf32>
    %95 = vector.broadcast %94 : vector<16x1xf32> to vector<16x16xf32>
    %96 = arith.subf %92, %95 : vector<16x16xf32>
    %97 = math.exp %96 : vector<16x16xf32>
    %cst_32 = arith.constant dense<0.000000e+00> : vector<16xf32>
    %98 = vector.multi_reduction <add>, %97, %cst_32 [1] : vector<16x16xf32> to vector<16xf32>
    %99 = vector.shape_cast %98 : vector<16xf32> to vector<16x1xf32>
    %100 = tpu.reciprocal %99 {approx = true} : vector<16x1xf32> -> vector<16x1xf32>
    %101 = vector.broadcast %100 : vector<16x1xf32> to vector<16x16xf32>
    %102 = arith.mulf %97, %101 : vector<16x16xf32>
    %103 = arith.truncf %102 : vector<16x16xf32> to vector<16x16xbf16>
    %cst_33 = arith.constant dense<0.000000e+00> : vector<16x16xf32>
    %104 = tpu.matmul %103, %89, %cst_33 {dimension_numbers = #tpu.dot_dimension_numbers<[1], [0], [0], [1], [0, 0, 1, 1], [], []>} : vector<16x16xbf16>, vector<16x16xbf16>, vector<16x16xf32> -> vector<16x16xf32>
    %105 = arith.truncf %104 : vector<16x16xf32> to vector<16x16xbf16>
    %106 = vector.extract_strided_slice %38 {offsets = [32, 0], sizes = [16, 64], strides = [1, 1]} : vector<64x64xbf16> to vector<16x64xbf16>
    %cst_34 = arith.constant dense<0.000000e+00> : vector<16x64xf32>
    %107 = tpu.matmul %105, %106, %cst_34 {dimension_numbers = #tpu.dot_dimension_numbers<[1], [0], [0], [1], [0, 0, 1, 1], [], []>} : vector<16x16xbf16>, vector<16x64xbf16>, vector<16x64xf32> -> vector<16x64xf32>
    %108 = arith.addf %86, %107 : vector<16x64xf32>
    %109 = vector.extract_strided_slice %35 {offsets = [0, 48], sizes = [16, 16], strides = [1, 1]} : vector<32x64xbf16> to vector<16x16xbf16>
    %110 = vector.extract_strided_slice %36 {offsets = [0, 48], sizes = [16, 16], strides = [1, 1]} : vector<32x64xbf16> to vector<16x16xbf16>
    %111 = vector.extract_strided_slice %37 {offsets = [0, 48], sizes = [16, 16], strides = [1, 1]} : vector<32x64xbf16> to vector<16x16xbf16>
    %cst_35 = arith.constant dense<0.000000e+00> : vector<16x16xf32>
    %112 = tpu.matmul %109, %110, %cst_35 {dimension_numbers = #tpu.dot_dimension_numbers<[1], [1], [0], [0], [0, 0, 1, 0], [], []>} : vector<16x16xbf16>, vector<16x16xbf16>, vector<16x16xf32> -> vector<16x16xf32>
    %113 = vector.broadcast %43 : vector<1x16xf32> to vector<16x16xf32>
    %114 = arith.addf %112, %113 : vector<16x16xf32>
    %cst_36 = arith.constant dense<0xFF800000> : vector<16xf32>
    %115 = vector.multi_reduction <maximumf>, %114, %cst_36 [1] : vector<16x16xf32> to vector<16xf32>
    %116 = vector.shape_cast %115 : vector<16xf32> to vector<16x1xf32>
    %117 = vector.broadcast %116 : vector<16x1xf32> to vector<16x16xf32>
    %118 = arith.subf %114, %117 : vector<16x16xf32>
    %119 = math.exp %118 : vector<16x16xf32>
    %cst_37 = arith.constant dense<0.000000e+00> : vector<16xf32>
    %120 = vector.multi_reduction <add>, %119, %cst_37 [1] : vector<16x16xf32> to vector<16xf32>
    %121 = vector.shape_cast %120 : vector<16xf32> to vector<16x1xf32>
    %122 = tpu.reciprocal %121 {approx = true} : vector<16x1xf32> -> vector<16x1xf32>
    %123 = vector.broadcast %122 : vector<16x1xf32> to vector<16x16xf32>
    %124 = arith.mulf %119, %123 : vector<16x16xf32>
    %125 = arith.truncf %124 : vector<16x16xf32> to vector<16x16xbf16>
    %cst_38 = arith.constant dense<0.000000e+00> : vector<16x16xf32>
    %126 = tpu.matmul %125, %111, %cst_38 {dimension_numbers = #tpu.dot_dimension_numbers<[1], [0], [0], [1], [0, 0, 1, 1], [], []>} : vector<16x16xbf16>, vector<16x16xbf16>, vector<16x16xf32> -> vector<16x16xf32>
    %127 = arith.truncf %126 : vector<16x16xf32> to vector<16x16xbf16>
    %128 = vector.extract_strided_slice %38 {offsets = [48, 0], sizes = [16, 64], strides = [1, 1]} : vector<64x64xbf16> to vector<16x64xbf16>
    %cst_39 = arith.constant dense<0.000000e+00> : vector<16x64xf32>
    %129 = tpu.matmul %127, %128, %cst_39 {dimension_numbers = #tpu.dot_dimension_numbers<[1], [0], [0], [1], [0, 0, 1, 1], [], []>} : vector<16x16xbf16>, vector<16x64xbf16>, vector<16x64xf32> -> vector<16x64xf32>
    %130 = arith.addf %108, %129 : vector<16x64xf32>
    %c1 = arith.constant 1 : index
    %c0_40 = arith.constant 0 : index
    %131 = vector.load %arg2[%c1, %c0_40] : memref<2x16xf32, #tpu.memory_space<vmem>>, vector<1x16xf32>
    %cst_41 = arith.constant 1.000000e+00 : f32
    %132 = vector.broadcast %cst_41 : f32 to vector<1x16xf32>
    %133 = arith.subf %132, %131 : vector<1x16xf32>
    %cst_42 = arith.constant -1.000000e+09 : f32
    %134 = vector.broadcast %cst_42 : f32 to vector<1x16xf32>
    %135 = arith.mulf %133, %134 : vector<1x16xf32>
    %136 = vector.extract_strided_slice %35 {offsets = [16, 0], sizes = [16, 16], strides = [1, 1]} : vector<32x64xbf16> to vector<16x16xbf16>
    %137 = vector.extract_strided_slice %36 {offsets = [16, 0], sizes = [16, 16], strides = [1, 1]} : vector<32x64xbf16> to vector<16x16xbf16>
    %138 = vector.extract_strided_slice %37 {offsets = [16, 0], sizes = [16, 16], strides = [1, 1]} : vector<32x64xbf16> to vector<16x16xbf16>
    %cst_43 = arith.constant dense<0.000000e+00> : vector<16x16xf32>
    %139 = tpu.matmul %136, %137, %cst_43 {dimension_numbers = #tpu.dot_dimension_numbers<[1], [1], [0], [0], [0, 0, 1, 0], [], []>} : vector<16x16xbf16>, vector<16x16xbf16>, vector<16x16xf32> -> vector<16x16xf32>
    %140 = vector.broadcast %135 : vector<1x16xf32> to vector<16x16xf32>
    %141 = arith.addf %139, %140 : vector<16x16xf32>
    %cst_44 = arith.constant dense<0xFF800000> : vector<16xf32>
    %142 = vector.multi_reduction <maximumf>, %141, %cst_44 [1] : vector<16x16xf32> to vector<16xf32>
    %143 = vector.shape_cast %142 : vector<16xf32> to vector<16x1xf32>
    %144 = vector.broadcast %143 : vector<16x1xf32> to vector<16x16xf32>
    %145 = arith.subf %141, %144 : vector<16x16xf32>
    %146 = math.exp %145 : vector<16x16xf32>
    %cst_45 = arith.constant dense<0.000000e+00> : vector<16xf32>
    %147 = vector.multi_reduction <add>, %146, %cst_45 [1] : vector<16x16xf32> to vector<16xf32>
    %148 = vector.shape_cast %147 : vector<16xf32> to vector<16x1xf32>
    %149 = tpu.reciprocal %148 {approx = true} : vector<16x1xf32> -> vector<16x1xf32>
    %150 = vector.broadcast %149 : vector<16x1xf32> to vector<16x16xf32>
    %151 = arith.mulf %146, %150 : vector<16x16xf32>
    %152 = arith.truncf %151 : vector<16x16xf32> to vector<16x16xbf16>
    %cst_46 = arith.constant dense<0.000000e+00> : vector<16x16xf32>
    %153 = tpu.matmul %152, %138, %cst_46 {dimension_numbers = #tpu.dot_dimension_numbers<[1], [0], [0], [1], [0, 0, 1, 1], [], []>} : vector<16x16xbf16>, vector<16x16xbf16>, vector<16x16xf32> -> vector<16x16xf32>
    %154 = arith.truncf %153 : vector<16x16xf32> to vector<16x16xbf16>
    %155 = vector.extract_strided_slice %38 {offsets = [0, 0], sizes = [16, 64], strides = [1, 1]} : vector<64x64xbf16> to vector<16x64xbf16>
    %cst_47 = arith.constant dense<0.000000e+00> : vector<16x64xf32>
    %156 = tpu.matmul %154, %155, %cst_47 {dimension_numbers = #tpu.dot_dimension_numbers<[1], [0], [0], [1], [0, 0, 1, 1], [], []>} : vector<16x16xbf16>, vector<16x64xbf16>, vector<16x64xf32> -> vector<16x64xf32>
    %157 = vector.extract_strided_slice %35 {offsets = [16, 16], sizes = [16, 16], strides = [1, 1]} : vector<32x64xbf16> to vector<16x16xbf16>
    %158 = vector.extract_strided_slice %36 {offsets = [16, 16], sizes = [16, 16], strides = [1, 1]} : vector<32x64xbf16> to vector<16x16xbf16>
    %159 = vector.extract_strided_slice %37 {offsets = [16, 16], sizes = [16, 16], strides = [1, 1]} : vector<32x64xbf16> to vector<16x16xbf16>
    %cst_48 = arith.constant dense<0.000000e+00> : vector<16x16xf32>
    %160 = tpu.matmul %157, %158, %cst_48 {dimension_numbers = #tpu.dot_dimension_numbers<[1], [1], [0], [0], [0, 0, 1, 0], [], []>} : vector<16x16xbf16>, vector<16x16xbf16>, vector<16x16xf32> -> vector<16x16xf32>
    %161 = vector.broadcast %135 : vector<1x16xf32> to vector<16x16xf32>
    %162 = arith.addf %160, %161 : vector<16x16xf32>
    %cst_49 = arith.constant dense<0xFF800000> : vector<16xf32>
    %163 = vector.multi_reduction <maximumf>, %162, %cst_49 [1] : vector<16x16xf32> to vector<16xf32>
    %164 = vector.shape_cast %163 : vector<16xf32> to vector<16x1xf32>
    %165 = vector.broadcast %164 : vector<16x1xf32> to vector<16x16xf32>
    %166 = arith.subf %162, %165 : vector<16x16xf32>
    %167 = math.exp %166 : vector<16x16xf32>
    %cst_50 = arith.constant dense<0.000000e+00> : vector<16xf32>
    %168 = vector.multi_reduction <add>, %167, %cst_50 [1] : vector<16x16xf32> to vector<16xf32>
    %169 = vector.shape_cast %168 : vector<16xf32> to vector<16x1xf32>
    %170 = tpu.reciprocal %169 {approx = true} : vector<16x1xf32> -> vector<16x1xf32>
    %171 = vector.broadcast %170 : vector<16x1xf32> to vector<16x16xf32>
    %172 = arith.mulf %167, %171 : vector<16x16xf32>
    %173 = arith.truncf %172 : vector<16x16xf32> to vector<16x16xbf16>
    %cst_51 = arith.constant dense<0.000000e+00> : vector<16x16xf32>
    %174 = tpu.matmul %173, %159, %cst_51 {dimension_numbers = #tpu.dot_dimension_numbers<[1], [0], [0], [1], [0, 0, 1, 1], [], []>} : vector<16x16xbf16>, vector<16x16xbf16>, vector<16x16xf32> -> vector<16x16xf32>
    %175 = arith.truncf %174 : vector<16x16xf32> to vector<16x16xbf16>
    %176 = vector.extract_strided_slice %38 {offsets = [16, 0], sizes = [16, 64], strides = [1, 1]} : vector<64x64xbf16> to vector<16x64xbf16>
    %cst_52 = arith.constant dense<0.000000e+00> : vector<16x64xf32>
    %177 = tpu.matmul %175, %176, %cst_52 {dimension_numbers = #tpu.dot_dimension_numbers<[1], [0], [0], [1], [0, 0, 1, 1], [], []>} : vector<16x16xbf16>, vector<16x64xbf16>, vector<16x64xf32> -> vector<16x64xf32>
    %178 = arith.addf %156, %177 : vector<16x64xf32>
    %179 = vector.extract_strided_slice %35 {offsets = [16, 32], sizes = [16, 16], strides = [1, 1]} : vector<32x64xbf16> to vector<16x16xbf16>
    %180 = vector.extract_strided_slice %36 {offsets = [16, 32], sizes = [16, 16], strides = [1, 1]} : vector<32x64xbf16> to vector<16x16xbf16>
    %181 = vector.extract_strided_slice %37 {offsets = [16, 32], sizes = [16, 16], strides = [1, 1]} : vector<32x64xbf16> to vector<16x16xbf16>
    %cst_53 = arith.constant dense<0.000000e+00> : vector<16x16xf32>
    %182 = tpu.matmul %179, %180, %cst_53 {dimension_numbers = #tpu.dot_dimension_numbers<[1], [1], [0], [0], [0, 0, 1, 0], [], []>} : vector<16x16xbf16>, vector<16x16xbf16>, vector<16x16xf32> -> vector<16x16xf32>
    %183 = vector.broadcast %135 : vector<1x16xf32> to vector<16x16xf32>
    %184 = arith.addf %182, %183 : vector<16x16xf32>
    %cst_54 = arith.constant dense<0xFF800000> : vector<16xf32>
    %185 = vector.multi_reduction <maximumf>, %184, %cst_54 [1] : vector<16x16xf32> to vector<16xf32>
    %186 = vector.shape_cast %185 : vector<16xf32> to vector<16x1xf32>
    %187 = vector.broadcast %186 : vector<16x1xf32> to vector<16x16xf32>
    %188 = arith.subf %184, %187 : vector<16x16xf32>
    %189 = math.exp %188 : vector<16x16xf32>
    %cst_55 = arith.constant dense<0.000000e+00> : vector<16xf32>
    %190 = vector.multi_reduction <add>, %189, %cst_55 [1] : vector<16x16xf32> to vector<16xf32>
    %191 = vector.shape_cast %190 : vector<16xf32> to vector<16x1xf32>
    %192 = tpu.reciprocal %191 {approx = true} : vector<16x1xf32> -> vector<16x1xf32>
    %193 = vector.broadcast %192 : vector<16x1xf32> to vector<16x16xf32>
    %194 = arith.mulf %189, %193 : vector<16x16xf32>
    %195 = arith.truncf %194 : vector<16x16xf32> to vector<16x16xbf16>
    %cst_56 = arith.constant dense<0.000000e+00> : vector<16x16xf32>
    %196 = tpu.matmul %195, %181, %cst_56 {dimension_numbers = #tpu.dot_dimension_numbers<[1], [0], [0], [1], [0, 0, 1, 1], [], []>} : vector<16x16xbf16>, vector<16x16xbf16>, vector<16x16xf32> -> vector<16x16xf32>
    %197 = arith.truncf %196 : vector<16x16xf32> to vector<16x16xbf16>
    %198 = vector.extract_strided_slice %38 {offsets = [32, 0], sizes = [16, 64], strides = [1, 1]} : vector<64x64xbf16> to vector<16x64xbf16>
    %cst_57 = arith.constant dense<0.000000e+00> : vector<16x64xf32>
    %199 = tpu.matmul %197, %198, %cst_57 {dimension_numbers = #tpu.dot_dimension_numbers<[1], [0], [0], [1], [0, 0, 1, 1], [], []>} : vector<16x16xbf16>, vector<16x64xbf16>, vector<16x64xf32> -> vector<16x64xf32>
    %200 = arith.addf %178, %199 : vector<16x64xf32>
    %201 = vector.extract_strided_slice %35 {offsets = [16, 48], sizes = [16, 16], strides = [1, 1]} : vector<32x64xbf16> to vector<16x16xbf16>
    %202 = vector.extract_strided_slice %36 {offsets = [16, 48], sizes = [16, 16], strides = [1, 1]} : vector<32x64xbf16> to vector<16x16xbf16>
    %203 = vector.extract_strided_slice %37 {offsets = [16, 48], sizes = [16, 16], strides = [1, 1]} : vector<32x64xbf16> to vector<16x16xbf16>
    %cst_58 = arith.constant dense<0.000000e+00> : vector<16x16xf32>
    %204 = tpu.matmul %201, %202, %cst_58 {dimension_numbers = #tpu.dot_dimension_numbers<[1], [1], [0], [0], [0, 0, 1, 0], [], []>} : vector<16x16xbf16>, vector<16x16xbf16>, vector<16x16xf32> -> vector<16x16xf32>
    %205 = vector.broadcast %135 : vector<1x16xf32> to vector<16x16xf32>
    %206 = arith.addf %204, %205 : vector<16x16xf32>
    %cst_59 = arith.constant dense<0xFF800000> : vector<16xf32>
    %207 = vector.multi_reduction <maximumf>, %206, %cst_59 [1] : vector<16x16xf32> to vector<16xf32>
    %208 = vector.shape_cast %207 : vector<16xf32> to vector<16x1xf32>
    %209 = vector.broadcast %208 : vector<16x1xf32> to vector<16x16xf32>
    %210 = arith.subf %206, %209 : vector<16x16xf32>
    %211 = math.exp %210 : vector<16x16xf32>
    %cst_60 = arith.constant dense<0.000000e+00> : vector<16xf32>
    %212 = vector.multi_reduction <add>, %211, %cst_60 [1] : vector<16x16xf32> to vector<16xf32>
    %213 = vector.shape_cast %212 : vector<16xf32> to vector<16x1xf32>
    %214 = tpu.reciprocal %213 {approx = true} : vector<16x1xf32> -> vector<16x1xf32>
    %215 = vector.broadcast %214 : vector<16x1xf32> to vector<16x16xf32>
    %216 = arith.mulf %211, %215 : vector<16x16xf32>
    %217 = arith.truncf %216 : vector<16x16xf32> to vector<16x16xbf16>
    %cst_61 = arith.constant dense<0.000000e+00> : vector<16x16xf32>
    %218 = tpu.matmul %217, %203, %cst_61 {dimension_numbers = #tpu.dot_dimension_numbers<[1], [0], [0], [1], [0, 0, 1, 1], [], []>} : vector<16x16xbf16>, vector<16x16xbf16>, vector<16x16xf32> -> vector<16x16xf32>
    %219 = arith.truncf %218 : vector<16x16xf32> to vector<16x16xbf16>
    %220 = vector.extract_strided_slice %38 {offsets = [48, 0], sizes = [16, 64], strides = [1, 1]} : vector<64x64xbf16> to vector<16x64xbf16>
    %cst_62 = arith.constant dense<0.000000e+00> : vector<16x64xf32>
    %221 = tpu.matmul %219, %220, %cst_62 {dimension_numbers = #tpu.dot_dimension_numbers<[1], [0], [0], [1], [0, 0, 1, 1], [], []>} : vector<16x16xbf16>, vector<16x64xbf16>, vector<16x64xf32> -> vector<16x64xf32>
    %222 = arith.addf %200, %221 : vector<16x64xf32>
    %223 = tpu.concatenate %130, %222 in 0 : vector<16x64xf32>, vector<16x64xf32> -> vector<32x64xf32>
    %c0_63 = arith.constant 0 : index
    %c0_64 = arith.constant 0 : index
    %224 = vector.load %arg8[%c0_63, %c0_64] : memref<1x64xf32, #tpu.memory_space<vmem>>, vector<1x64xf32>
    %225 = vector.broadcast %224 : vector<1x64xf32> to vector<32x64xf32>
    %226 = arith.addf %223, %225 : vector<32x64xf32>
    %227 = arith.addf %226, %27 : vector<32x64xf32>
    %c0_65 = arith.constant 0 : index
    %c0_66 = arith.constant 0 : index
    %228 = vector.load %arg9[%c0_65, %c0_66] : memref<1x64xf32, #tpu.memory_space<vmem>>, vector<1x64xf32>
    %c0_67 = arith.constant 0 : index
    %c0_68 = arith.constant 0 : index
    %229 = vector.load %arg10[%c0_67, %c0_68] : memref<1x64xf32, #tpu.memory_space<vmem>>, vector<1x64xf32>
    %cst_69 = arith.constant dense<0.000000e+00> : vector<32xf32>
    %230 = vector.multi_reduction <add>, %227, %cst_69 [1] : vector<32x64xf32> to vector<32xf32>
    %231 = vector.shape_cast %230 : vector<32xf32> to vector<32x1xf32>
    %cst_70 = arith.constant 6.400000e+01 : f32
    %232 = vector.broadcast %cst_70 : f32 to vector<32x1xf32>
    %233 = arith.divf %231, %232 : vector<32x1xf32>
    %234 = vector.broadcast %233 : vector<32x1xf32> to vector<32x64xf32>
    %235 = arith.subf %227, %234 : vector<32x64xf32>
    %236 = vector.broadcast %233 : vector<32x1xf32> to vector<32x64xf32>
    %237 = arith.subf %227, %236 : vector<32x64xf32>
    %238 = arith.mulf %235, %237 : vector<32x64xf32>
    %cst_71 = arith.constant dense<0.000000e+00> : vector<32xf32>
    %239 = vector.multi_reduction <add>, %238, %cst_71 [1] : vector<32x64xf32> to vector<32xf32>
    %240 = vector.shape_cast %239 : vector<32xf32> to vector<32x1xf32>
    %cst_72 = arith.constant 6.400000e+01 : f32
    %241 = vector.broadcast %cst_72 : f32 to vector<32x1xf32>
    %242 = arith.divf %240, %241 : vector<32x1xf32>
    %243 = vector.broadcast %233 : vector<32x1xf32> to vector<32x64xf32>
    %244 = arith.subf %227, %243 : vector<32x64xf32>
    %cst_73 = arith.constant 9.99999996E-13 : f32
    %245 = vector.broadcast %cst_73 : f32 to vector<32x1xf32>
    %246 = arith.addf %242, %245 : vector<32x1xf32>
    %247 = math.rsqrt %246 : vector<32x1xf32>
    %248 = vector.broadcast %247 : vector<32x1xf32> to vector<32x64xf32>
    %249 = arith.mulf %244, %248 : vector<32x64xf32>
    %250 = vector.broadcast %228 : vector<1x64xf32> to vector<32x64xf32>
    %251 = arith.mulf %249, %250 : vector<32x64xf32>
    %252 = vector.broadcast %229 : vector<1x64xf32> to vector<32x64xf32>
    %253 = arith.addf %251, %252 : vector<32x64xf32>
    %254 = arith.truncf %253 : vector<32x64xf32> to vector<32x64xbf16>
    %c0_74 = arith.constant 0 : index
    %c0_75 = arith.constant 0 : index
    %255 = vector.load %arg11[%c0_74, %c0_75] : memref<64x128xbf16, #tpu.memory_space<vmem>>, vector<64x128xbf16>
    %cst_76 = arith.constant dense<0.000000e+00> : vector<32x128xf32>
    %256 = tpu.matmul %254, %255, %cst_76 {dimension_numbers = #tpu.dot_dimension_numbers<[1], [0], [0], [1], [0, 0, 1, 1], [], []>} : vector<32x64xbf16>, vector<64x128xbf16>, vector<32x128xf32> -> vector<32x128xf32>
    %c0_77 = arith.constant 0 : index
    %c0_78 = arith.constant 0 : index
    %257 = vector.load %arg12[%c0_77, %c0_78] : memref<1x128xf32, #tpu.memory_space<vmem>>, vector<1x128xf32>
    %258 = vector.broadcast %257 : vector<1x128xf32> to vector<32x128xf32>
    %259 = arith.addf %256, %258 : vector<32x128xf32>
    %cst_79 = arith.constant 5.000000e-01 : f32
    %260 = vector.broadcast %cst_79 : f32 to vector<32x128xf32>
    %261 = arith.mulf %260, %259 : vector<32x128xf32>
    %cst_80 = arith.constant 4.471500e-02 : f32
    %262 = vector.broadcast %cst_80 : f32 to vector<32x128xf32>
    %263 = arith.mulf %262, %259 : vector<32x128xf32>
    %264 = arith.mulf %263, %259 : vector<32x128xf32>
    %265 = arith.mulf %264, %259 : vector<32x128xf32>
    %266 = arith.addf %259, %265 : vector<32x128xf32>
    %cst_81 = arith.constant 0.797884583 : f32
    %267 = vector.broadcast %cst_81 : f32 to vector<32x128xf32>
    %268 = arith.mulf %267, %266 : vector<32x128xf32>
    %269 = math.tanh %268 : vector<32x128xf32>
    %cst_82 = arith.constant 1.000000e+00 : f32
    %270 = vector.broadcast %cst_82 : f32 to vector<32x128xf32>
    %271 = arith.addf %270, %269 : vector<32x128xf32>
    %272 = arith.mulf %261, %271 : vector<32x128xf32>
    %273 = arith.truncf %272 : vector<32x128xf32> to vector<32x128xbf16>
    %c0_83 = arith.constant 0 : index
    %c0_84 = arith.constant 0 : index
    %274 = vector.load %arg13[%c0_83, %c0_84] : memref<128x64xbf16, #tpu.memory_space<vmem>>, vector<128x64xbf16>
    %cst_85 = arith.constant dense<0.000000e+00> : vector<32x64xf32>
    %275 = tpu.matmul %273, %274, %cst_85 {dimension_numbers = #tpu.dot_dimension_numbers<[1], [0], [0], [1], [0, 0, 1, 1], [], []>} : vector<32x128xbf16>, vector<128x64xbf16>, vector<32x64xf32> -> vector<32x64xf32>
    %c0_86 = arith.constant 0 : index
    %c0_87 = arith.constant 0 : index
    %276 = vector.load %arg14[%c0_86, %c0_87] : memref<1x64xf32, #tpu.memory_space<vmem>>, vector<1x64xf32>
    %277 = vector.broadcast %276 : vector<1x64xf32> to vector<32x64xf32>
    %278 = arith.addf %275, %277 : vector<32x64xf32>
    %279 = arith.addf %278, %253 : vector<32x64xf32>
    %c0_88 = arith.constant 0 : index
    %c0_89 = arith.constant 0 : index
    %280 = vector.load %arg15[%c0_88, %c0_89] : memref<1x64xf32, #tpu.memory_space<vmem>>, vector<1x64xf32>
    %c0_90 = arith.constant 0 : index
    %c0_91 = arith.constant 0 : index
    %281 = vector.load %arg16[%c0_90, %c0_91] : memref<1x64xf32, #tpu.memory_space<vmem>>, vector<1x64xf32>
    %cst_92 = arith.constant dense<0.000000e+00> : vector<32xf32>
    %282 = vector.multi_reduction <add>, %279, %cst_92 [1] : vector<32x64xf32> to vector<32xf32>
    %283 = vector.shape_cast %282 : vector<32xf32> to vector<32x1xf32>
    %cst_93 = arith.constant 6.400000e+01 : f32
    %284 = vector.broadcast %cst_93 : f32 to vector<32x1xf32>
    %285 = arith.divf %283, %284 : vector<32x1xf32>
    %286 = vector.broadcast %285 : vector<32x1xf32> to vector<32x64xf32>
    %287 = arith.subf %279, %286 : vector<32x64xf32>
    %288 = vector.broadcast %285 : vector<32x1xf32> to vector<32x64xf32>
    %289 = arith.subf %279, %288 : vector<32x64xf32>
    %290 = arith.mulf %287, %289 : vector<32x64xf32>
    %cst_94 = arith.constant dense<0.000000e+00> : vector<32xf32>
    %291 = vector.multi_reduction <add>, %290, %cst_94 [1] : vector<32x64xf32> to vector<32xf32>
    %292 = vector.shape_cast %291 : vector<32xf32> to vector<32x1xf32>
    %cst_95 = arith.constant 6.400000e+01 : f32
    %293 = vector.broadcast %cst_95 : f32 to vector<32x1xf32>
    %294 = arith.divf %292, %293 : vector<32x1xf32>
    %295 = vector.broadcast %285 : vector<32x1xf32> to vector<32x64xf32>
    %296 = arith.subf %279, %295 : vector<32x64xf32>
    %cst_96 = arith.constant 9.99999996E-13 : f32
    %297 = vector.broadcast %cst_96 : f32 to vector<32x1xf32>
    %298 = arith.addf %294, %297 : vector<32x1xf32>
    %299 = math.rsqrt %298 : vector<32x1xf32>
    %300 = vector.broadcast %299 : vector<32x1xf32> to vector<32x64xf32>
    %301 = arith.mulf %296, %300 : vector<32x64xf32>
    %302 = vector.broadcast %280 : vector<1x64xf32> to vector<32x64xf32>
    %303 = arith.mulf %301, %302 : vector<32x64xf32>
    %304 = vector.broadcast %281 : vector<1x64xf32> to vector<32x64xf32>
    %305 = arith.addf %303, %304 : vector<32x64xf32>
    %306 = arith.truncf %305 : vector<32x64xf32> to vector<32x64xbf16>
    %c0_97 = arith.constant 0 : index
    %c0_98 = arith.constant 0 : index
    %307 = vector.load %arg17[%c0_97, %c0_98] : memref<32x64xbf16, #tpu.memory_space<vmem>>, vector<32x64xbf16>
    tpu.vector_store %arg17[%c0_97, %c0_98], %306 {strides = array<i32>} : memref<32x64xbf16, #tpu.memory_space<vmem>>, vector<32x64xbf16>,
    return
  }
  func.func @transform_0(%arg0: i32) -> (i32, i32) {
    %c0_i32 = arith.constant 0 : i32
    %c0_i32_0 = arith.constant 0 : i32
    %c0_i32_1 = arith.constant 0 : i32
    return %c0_i32, %c0_i32_0 : i32, i32
  }
  func.func @transform_1(%arg0: i32) -> (i32, i32) {
    %c0_i32 = arith.constant 0 : i32
    %c0_i32_0 = arith.constant 0 : i32
    %c0_i32_1 = arith.constant 0 : i32
    return %c0_i32, %c0_i32_0 : i32, i32
  }
  func.func @transform_2(%arg0: i32) -> (i32, i32) {
    %c0_i32 = arith.constant 0 : i32
    %c0_i32_0 = arith.constant 0 : i32
    %c0_i32_1 = arith.constant 0 : i32
    return %c0_i32, %c0_i32_0 : i32, i32
  }
  func.func @transform_3(%arg0: i32) -> (i32, i32) {
    %c0_i32 = arith.constant 0 : i32
    %c0_i32_0 = arith.constant 0 : i32
    %c0_i32_1 = arith.constant 0 : i32
    return %c0_i32, %c0_i32_0 : i32, i32
  }
  func.func @transform_4(%arg0: i32) -> (i32, i32) {
    %c0_i32 = arith.constant 0 : i32
    %c0_i32_0 = arith.constant 0 : i32
    %c0_i32_1 = arith.constant 0 : i32
    return %c0_i32, %c0_i32_0 : i32, i32
  }
  func.func @transform_5(%arg0: i32) -> (i32, i32) {
    %c0_i32 = arith.constant 0 : i32
    %c0_i32_0 = arith.constant 0 : i32
    %c0_i32_1 = arith.constant 0 : i32
    return %c0_i32, %c0_i32_0 : i32, i32
  }
  func.func @transform_6(%arg0: i32) -> (i32, i32) {
    %c0_i32 = arith.constant 0 : i32
    %c0_i32_0 = arith.constant 0 : i32
    %c0_i32_1 = arith.constant 0 : i32
    return %c0_i32, %c0_i32_0 : i32, i32
  }
  func.func @transform_7(%arg0: i32) -> (i32, i32) {
    %c0_i32 = arith.constant 0 : i32
    %c0_i32_0 = arith.constant 0 : i32
    %c0_i32_1 = arith.constant 0 : i32
    return %c0_i32, %c0_i32_0 : i32, i32
  }
  func.func @transform_8(%arg0: i32) -> (i32, i32) {
    %c0_i32 = arith.constant 0 : i32
    %c0_i32_0 = arith.constant 0 : i32
    %c0_i32_1 = arith.constant 0 : i32
    return %c0_i32, %c0_i32_0 : i32, i32
  }
  func.func @transform_9(%arg0: i32) -> (i32, i32) {
    %c0_i32 = arith.constant 0 : i32
    %c0_i32_0 = arith.constant 0 : i32
    %c0_i32_1 = arith.constant 0 : i32
    return %c0_i32, %c0_i32_0 : i32, i32
  }
  func.func @transform_10(%arg0: i32) -> (i32, i32) {
    %c0_i32 = arith.constant 0 : i32
    %c0_i32_0 = arith.constant 0 : i32
    %c0_i32_1 = arith.constant 0 : i32
    return %c0_i32, %c0_i32_0 : i32, i32
  }
  func.func @transform_11(%arg0: i32) -> (i32, i32) {
    %c0_i32 = arith.constant 0 : i32
    %c0_i32_0 = arith.constant 0 : i32
    %c0_i32_1 = arith.constant 0 : i32
    return %c0_i32, %c0_i32_0 : i32, i32
  }
  func.func @transform_12(%arg0: i32) -> (i32, i32) {
    %c0_i32 = arith.constant 0 : i32
    %c0_i32_0 = arith.constant 0 : i32
    %c0_i32_1 = arith.constant 0 : i32
    return %c0_i32, %c0_i32_0 : i32, i32
  }
  func.func @transform_13(%arg0: i32) -> (i32, i32) {
    %c0_i32 = arith.constant 0 : i32
    %c0_i32_0 = arith.constant 0 : i32
    %c0_i32_1 = arith.constant 0 : i32
    return %c0_i32, %c0_i32_0 : i32, i32
  }
  func.func @transform_14(%arg0: i32) -> (i32, i32) {
    %c0_i32 = arith.constant 0 : i32
    %c0_i32_0 = arith.constant 0 : i32
    %c0_i32_1 = arith.constant 0 : i32
    return %c0_i32, %c0_i32_0 : i32, i32
  }
  func.func @transform_15(%arg0: i32) -> (i32, i32) {
    %c0_i32 = arith.constant 0 : i32
    %c0_i32_0 = arith.constant 0 : i32
    %c0_i32_1 = arith.constant 0 : i32
    return %c0_i32, %c0_i32_0 : i32, i32
  }
  func.func @transform_16(%arg0: i32) -> (i32, i32) {
    %c0_i32 = arith.constant 0 : i32
    %c0_i32_0 = arith.constant 0 : i32
    %c0_i32_1 = arith.constant 0 : i32
    return %c0_i32, %c0_i32_0 : i32, i32
  }
}

module attributes {stable_mosaic.version = 11 : i64} {
  func.func @_layer_kernel(%arg0: i32, %arg1: memref<32x64xbf16, #tpu.memory_space<vmem>>, %arg2: memref<2x16xf32, #tpu.memory_space<vmem>>, %arg3: memref<1x64xf32, #tpu.memory_space<vmem>>, %arg4: memref<1x64xf32, #tpu.memory_space<vmem>>, %arg5: memref<64x192xbf16, #tpu.memory_space<vmem>>, %arg6: memref<1x192xf32, #tpu.memory_space<vmem>>, %arg7: memref<64x64xbf16, #tpu.memory_space<vmem>>, %arg8: memref<1x64xf32, #tpu.memory_space<vmem>>, %arg9: memref<1x64xf32, #tpu.memory_space<vmem>>, %arg10: memref<1x64xf32, #tpu.memory_space<vmem>>, %arg11: memref<64x128xbf16, #tpu.memory_space<vmem>>, %arg12: memref<1x128xf32, #tpu.memory_space<vmem>>, %arg13: memref<128x64xbf16, #tpu.memory_space<vmem>>, %arg14: memref<1x64xf32, #tpu.memory_space<vmem>>, %arg15: memref<1x64xf32, #tpu.memory_space<vmem>>, %arg16: memref<1x64xf32, #tpu.memory_space<vmem>>, %arg17: memref<32x64xbf16, #tpu.memory_space<vmem>>) attributes {dimension_semantics = [#tpu.dimension_semantics<arbitrary>], iteration_bounds = array<i64: 1>, scalar_prefetch = 0 : i64, scratch_operands = 0 : i64, tpu.core_type = #tpu.core_type<tc>, window_params = [{pipeline_mode = #tpu.pipeline_mode<synchronous>, transform_indices = @transform_0, window_bounds = array<i64: 32, 64>}, {pipeline_mode = #tpu.pipeline_mode<synchronous>, transform_indices = @transform_1, window_bounds = array<i64: 2, 16>}, {pipeline_mode = #tpu.pipeline_mode<synchronous>, transform_indices = @transform_2, window_bounds = array<i64: 1, 64>}, {pipeline_mode = #tpu.pipeline_mode<synchronous>, transform_indices = @transform_3, window_bounds = array<i64: 1, 64>}, {pipeline_mode = #tpu.pipeline_mode<synchronous>, transform_indices = @transform_4, window_bounds = array<i64: 64, 192>}, {pipeline_mode = #tpu.pipeline_mode<synchronous>, transform_indices = @transform_5, window_bounds = array<i64: 1, 192>}, {pipeline_mode = #tpu.pipeline_mode<synchronous>, transform_indices = @transform_6, window_bounds = array<i64: 64, 64>}, {pipeline_mode = #tpu.pipeline_mode<synchronous>, transform_indices = @transform_7, window_bounds = array<i64: 1, 64>}, {pipeline_mode = #tpu.pipeline_mode<synchronous>, transform_indices = @transform_8, window_bounds = array<i64: 1, 64>}, {pipeline_mode = #tpu.pipeline_mode<synchronous>, transform_indices = @transform_9, window_bounds = array<i64: 1, 64>}, {pipeline_mode = #tpu.pipeline_mode<synchronous>, transform_indices = @transform_10, window_bounds = array<i64: 64, 128>}, {pipeline_mode = #tpu.pipeline_mode<synchronous>, transform_indices = @transform_11, window_bounds = array<i64: 1, 128>}, {pipeline_mode = #tpu.pipeline_mode<synchronous>, transform_indices = @transform_12, window_bounds = array<i64: 128, 64>}, {pipeline_mode = #tpu.pipeline_mode<synchronous>, transform_indices = @transform_13, window_bounds = array<i64: 1, 64>}, {pipeline_mode = #tpu.pipeline_mode<synchronous>, transform_indices = @transform_14, window_bounds = array<i64: 1, 64>}, {pipeline_mode = #tpu.pipeline_mode<synchronous>, transform_indices = @transform_15, window_bounds = array<i64: 1, 64>}, {pipeline_mode = #tpu.pipeline_mode<synchronous>, transform_indices = @transform_16, window_bounds = array<i64: 32, 64>}]} {
    %c0 = arith.constant 0 : index
    %c0_0 = arith.constant 0 : index
    %0 = vector.load %arg1[%c0, %c0_0] : memref<32x64xbf16, #tpu.memory_space<vmem>>, vector<32x64xbf16>
    %1 = arith.extf %0 : vector<32x64xbf16> to vector<32x64xf32>
    %2 = arith.truncf %1 : vector<32x64xf32> to vector<32x64xbf16>
    %c0_1 = arith.constant 0 : index
    %c0_2 = arith.constant 0 : index
    %3 = vector.load %arg5[%c0_1, %c0_2] : memref<64x192xbf16, #tpu.memory_space<vmem>>, vector<64x192xbf16>
    %cst = arith.constant dense<0.000000e+00> : vector<32x192xf32>
    %4 = tpu.matmul %2, %3, %cst {dimension_numbers = #tpu.dot_dimension_numbers<[1], [0], [0], [1], [0, 0, 1, 1], [], []>} : vector<32x64xbf16>, vector<64x192xbf16>, vector<32x192xf32> -> vector<32x192xf32>
    %c0_3 = arith.constant 0 : index
    %c0_4 = arith.constant 0 : index
    %5 = vector.load %arg6[%c0_3, %c0_4] : memref<1x192xf32, #tpu.memory_space<vmem>>, vector<1x192xf32>
    %6 = vector.broadcast %5 : vector<1x192xf32> to vector<32x192xf32>
    %7 = arith.addf %4, %6 : vector<32x192xf32>
    %8 = arith.truncf %7 : vector<32x192xf32> to vector<32x192xbf16>
    %9 = vector.extract_strided_slice %8 {offsets = [0, 0], sizes = [32, 64], strides = [1, 1]} : vector<32x192xbf16> to vector<32x64xbf16>
    %10 = vector.extract_strided_slice %8 {offsets = [0, 64], sizes = [32, 64], strides = [1, 1]} : vector<32x192xbf16> to vector<32x64xbf16>
    %11 = vector.extract_strided_slice %8 {offsets = [0, 128], sizes = [32, 64], strides = [1, 1]} : vector<32x192xbf16> to vector<32x64xbf16>
    %c0_5 = arith.constant 0 : index
    %c0_6 = arith.constant 0 : index
    %12 = vector.load %arg7[%c0_5, %c0_6] : memref<64x64xbf16, #tpu.memory_space<vmem>>, vector<64x64xbf16>
    %c0_7 = arith.constant 0 : index
    %c0_8 = arith.constant 0 : index
    %13 = vector.load %arg2[%c0_7, %c0_8] : memref<2x16xf32, #tpu.memory_space<vmem>>, vector<1x16xf32>
    %cst_9 = arith.constant 1.000000e+00 : f32
    %14 = vector.broadcast %cst_9 : f32 to vector<1x16xf32>
    %15 = arith.subf %14, %13 : vector<1x16xf32>
    %cst_10 = arith.constant -1.000000e+09 : f32
    %16 = vector.broadcast %cst_10 : f32 to vector<1x16xf32>
    %17 = arith.mulf %15, %16 : vector<1x16xf32>
    %18 = vector.extract_strided_slice %9 {offsets = [0, 0], sizes = [16, 16], strides = [1, 1]} : vector<32x64xbf16> to vector<16x16xbf16>
    %19 = vector.extract_strided_slice %10 {offsets = [0, 0], sizes = [16, 16], strides = [1, 1]} : vector<32x64xbf16> to vector<16x16xbf16>
    %20 = vector.extract_strided_slice %11 {offsets = [0, 0], sizes = [16, 16], strides = [1, 1]} : vector<32x64xbf16> to vector<16x16xbf16>
    %cst_11 = arith.constant dense<0.000000e+00> : vector<16x16xf32>
    %21 = tpu.matmul %18, %19, %cst_11 {dimension_numbers = #tpu.dot_dimension_numbers<[1], [1], [0], [0], [0, 0, 1, 0], [], []>} : vector<16x16xbf16>, vector<16x16xbf16>, vector<16x16xf32> -> vector<16x16xf32>
    %22 = vector.broadcast %17 : vector<1x16xf32> to vector<16x16xf32>
    %23 = arith.addf %21, %22 : vector<16x16xf32>
    %cst_12 = arith.constant dense<0xFF800000> : vector<16xf32>
    %24 = vector.multi_reduction <maximumf>, %23, %cst_12 [1] : vector<16x16xf32> to vector<16xf32>
    %25 = vector.shape_cast %24 : vector<16xf32> to vector<16x1xf32>
    %26 = vector.broadcast %25 : vector<16x1xf32> to vector<16x16xf32>
    %27 = arith.subf %23, %26 : vector<16x16xf32>
    %28 = math.exp %27 : vector<16x16xf32>
    %cst_13 = arith.constant dense<0.000000e+00> : vector<16xf32>
    %29 = vector.multi_reduction <add>, %28, %cst_13 [1] : vector<16x16xf32> to vector<16xf32>
    %30 = vector.shape_cast %29 : vector<16xf32> to vector<16x1xf32>
    %31 = tpu.reciprocal %30 {approx = true} : vector<16x1xf32> -> vector<16x1xf32>
    %32 = vector.broadcast %31 : vector<16x1xf32> to vector<16x16xf32>
    %33 = arith.mulf %28, %32 : vector<16x16xf32>
    %34 = arith.truncf %33 : vector<16x16xf32> to vector<16x16xbf16>
    %cst_14 = arith.constant dense<0.000000e+00> : vector<16x16xf32>
    %35 = tpu.matmul %34, %20, %cst_14 {dimension_numbers = #tpu.dot_dimension_numbers<[1], [0], [0], [1], [0, 0, 1, 1], [], []>} : vector<16x16xbf16>, vector<16x16xbf16>, vector<16x16xf32> -> vector<16x16xf32>
    %36 = arith.truncf %35 : vector<16x16xf32> to vector<16x16xbf16>
    %37 = vector.extract_strided_slice %12 {offsets = [0, 0], sizes = [16, 64], strides = [1, 1]} : vector<64x64xbf16> to vector<16x64xbf16>
    %cst_15 = arith.constant dense<0.000000e+00> : vector<16x64xf32>
    %38 = tpu.matmul %36, %37, %cst_15 {dimension_numbers = #tpu.dot_dimension_numbers<[1], [0], [0], [1], [0, 0, 1, 1], [], []>} : vector<16x16xbf16>, vector<16x64xbf16>, vector<16x64xf32> -> vector<16x64xf32>
    %39 = vector.extract_strided_slice %9 {offsets = [0, 16], sizes = [16, 16], strides = [1, 1]} : vector<32x64xbf16> to vector<16x16xbf16>
    %40 = vector.extract_strided_slice %10 {offsets = [0, 16], sizes = [16, 16], strides = [1, 1]} : vector<32x64xbf16> to vector<16x16xbf16>
    %41 = vector.extract_strided_slice %11 {offsets = [0, 16], sizes = [16, 16], strides = [1, 1]} : vector<32x64xbf16> to vector<16x16xbf16>
    %cst_16 = arith.constant dense<0.000000e+00> : vector<16x16xf32>
    %42 = tpu.matmul %39, %40, %cst_16 {dimension_numbers = #tpu.dot_dimension_numbers<[1], [1], [0], [0], [0, 0, 1, 0], [], []>} : vector<16x16xbf16>, vector<16x16xbf16>, vector<16x16xf32> -> vector<16x16xf32>
    %43 = vector.broadcast %17 : vector<1x16xf32> to vector<16x16xf32>
    %44 = arith.addf %42, %43 : vector<16x16xf32>
    %cst_17 = arith.constant dense<0xFF800000> : vector<16xf32>
    %45 = vector.multi_reduction <maximumf>, %44, %cst_17 [1] : vector<16x16xf32> to vector<16xf32>
    %46 = vector.shape_cast %45 : vector<16xf32> to vector<16x1xf32>
    %47 = vector.broadcast %46 : vector<16x1xf32> to vector<16x16xf32>
    %48 = arith.subf %44, %47 : vector<16x16xf32>
    %49 = math.exp %48 : vector<16x16xf32>
    %cst_18 = arith.constant dense<0.000000e+00> : vector<16xf32>
    %50 = vector.multi_reduction <add>, %49, %cst_18 [1] : vector<16x16xf32> to vector<16xf32>
    %51 = vector.shape_cast %50 : vector<16xf32> to vector<16x1xf32>
    %52 = tpu.reciprocal %51 {approx = true} : vector<16x1xf32> -> vector<16x1xf32>
    %53 = vector.broadcast %52 : vector<16x1xf32> to vector<16x16xf32>
    %54 = arith.mulf %49, %53 : vector<16x16xf32>
    %55 = arith.truncf %54 : vector<16x16xf32> to vector<16x16xbf16>
    %cst_19 = arith.constant dense<0.000000e+00> : vector<16x16xf32>
    %56 = tpu.matmul %55, %41, %cst_19 {dimension_numbers = #tpu.dot_dimension_numbers<[1], [0], [0], [1], [0, 0, 1, 1], [], []>} : vector<16x16xbf16>, vector<16x16xbf16>, vector<16x16xf32> -> vector<16x16xf32>
    %57 = arith.truncf %56 : vector<16x16xf32> to vector<16x16xbf16>
    %58 = vector.extract_strided_slice %12 {offsets = [16, 0], sizes = [16, 64], strides = [1, 1]} : vector<64x64xbf16> to vector<16x64xbf16>
    %cst_20 = arith.constant dense<0.000000e+00> : vector<16x64xf32>
    %59 = tpu.matmul %57, %58, %cst_20 {dimension_numbers = #tpu.dot_dimension_numbers<[1], [0], [0], [1], [0, 0, 1, 1], [], []>} : vector<16x16xbf16>, vector<16x64xbf16>, vector<16x64xf32> -> vector<16x64xf32>
    %60 = arith.addf %38, %59 : vector<16x64xf32>
    %61 = vector.extract_strided_slice %9 {offsets = [0, 32], sizes = [16, 16], strides = [1, 1]} : vector<32x64xbf16> to vector<16x16xbf16>
    %62 = vector.extract_strided_slice %10 {offsets = [0, 32], sizes = [16, 16], strides = [1, 1]} : vector<32x64xbf16> to vector<16x16xbf16>
    %63 = vector.extract_strided_slice %11 {offsets = [0, 32], sizes = [16, 16], strides = [1, 1]} : vector<32x64xbf16> to vector<16x16xbf16>
    %cst_21 = arith.constant dense<0.000000e+00> : vector<16x16xf32>
    %64 = tpu.matmul %61, %62, %cst_21 {dimension_numbers = #tpu.dot_dimension_numbers<[1], [1], [0], [0], [0, 0, 1, 0], [], []>} : vector<16x16xbf16>, vector<16x16xbf16>, vector<16x16xf32> -> vector<16x16xf32>
    %65 = vector.broadcast %17 : vector<1x16xf32> to vector<16x16xf32>
    %66 = arith.addf %64, %65 : vector<16x16xf32>
    %cst_22 = arith.constant dense<0xFF800000> : vector<16xf32>
    %67 = vector.multi_reduction <maximumf>, %66, %cst_22 [1] : vector<16x16xf32> to vector<16xf32>
    %68 = vector.shape_cast %67 : vector<16xf32> to vector<16x1xf32>
    %69 = vector.broadcast %68 : vector<16x1xf32> to vector<16x16xf32>
    %70 = arith.subf %66, %69 : vector<16x16xf32>
    %71 = math.exp %70 : vector<16x16xf32>
    %cst_23 = arith.constant dense<0.000000e+00> : vector<16xf32>
    %72 = vector.multi_reduction <add>, %71, %cst_23 [1] : vector<16x16xf32> to vector<16xf32>
    %73 = vector.shape_cast %72 : vector<16xf32> to vector<16x1xf32>
    %74 = tpu.reciprocal %73 {approx = true} : vector<16x1xf32> -> vector<16x1xf32>
    %75 = vector.broadcast %74 : vector<16x1xf32> to vector<16x16xf32>
    %76 = arith.mulf %71, %75 : vector<16x16xf32>
    %77 = arith.truncf %76 : vector<16x16xf32> to vector<16x16xbf16>
    %cst_24 = arith.constant dense<0.000000e+00> : vector<16x16xf32>
    %78 = tpu.matmul %77, %63, %cst_24 {dimension_numbers = #tpu.dot_dimension_numbers<[1], [0], [0], [1], [0, 0, 1, 1], [], []>} : vector<16x16xbf16>, vector<16x16xbf16>, vector<16x16xf32> -> vector<16x16xf32>
    %79 = arith.truncf %78 : vector<16x16xf32> to vector<16x16xbf16>
    %80 = vector.extract_strided_slice %12 {offsets = [32, 0], sizes = [16, 64], strides = [1, 1]} : vector<64x64xbf16> to vector<16x64xbf16>
    %cst_25 = arith.constant dense<0.000000e+00> : vector<16x64xf32>
    %81 = tpu.matmul %79, %80, %cst_25 {dimension_numbers = #tpu.dot_dimension_numbers<[1], [0], [0], [1], [0, 0, 1, 1], [], []>} : vector<16x16xbf16>, vector<16x64xbf16>, vector<16x64xf32> -> vector<16x64xf32>
    %82 = arith.addf %60, %81 : vector<16x64xf32>
    %83 = vector.extract_strided_slice %9 {offsets = [0, 48], sizes = [16, 16], strides = [1, 1]} : vector<32x64xbf16> to vector<16x16xbf16>
    %84 = vector.extract_strided_slice %10 {offsets = [0, 48], sizes = [16, 16], strides = [1, 1]} : vector<32x64xbf16> to vector<16x16xbf16>
    %85 = vector.extract_strided_slice %11 {offsets = [0, 48], sizes = [16, 16], strides = [1, 1]} : vector<32x64xbf16> to vector<16x16xbf16>
    %cst_26 = arith.constant dense<0.000000e+00> : vector<16x16xf32>
    %86 = tpu.matmul %83, %84, %cst_26 {dimension_numbers = #tpu.dot_dimension_numbers<[1], [1], [0], [0], [0, 0, 1, 0], [], []>} : vector<16x16xbf16>, vector<16x16xbf16>, vector<16x16xf32> -> vector<16x16xf32>
    %87 = vector.broadcast %17 : vector<1x16xf32> to vector<16x16xf32>
    %88 = arith.addf %86, %87 : vector<16x16xf32>
    %cst_27 = arith.constant dense<0xFF800000> : vector<16xf32>
    %89 = vector.multi_reduction <maximumf>, %88, %cst_27 [1] : vector<16x16xf32> to vector<16xf32>
    %90 = vector.shape_cast %89 : vector<16xf32> to vector<16x1xf32>
    %91 = vector.broadcast %90 : vector<16x1xf32> to vector<16x16xf32>
    %92 = arith.subf %88, %91 : vector<16x16xf32>
    %93 = math.exp %92 : vector<16x16xf32>
    %cst_28 = arith.constant dense<0.000000e+00> : vector<16xf32>
    %94 = vector.multi_reduction <add>, %93, %cst_28 [1] : vector<16x16xf32> to vector<16xf32>
    %95 = vector.shape_cast %94 : vector<16xf32> to vector<16x1xf32>
    %96 = tpu.reciprocal %95 {approx = true} : vector<16x1xf32> -> vector<16x1xf32>
    %97 = vector.broadcast %96 : vector<16x1xf32> to vector<16x16xf32>
    %98 = arith.mulf %93, %97 : vector<16x16xf32>
    %99 = arith.truncf %98 : vector<16x16xf32> to vector<16x16xbf16>
    %cst_29 = arith.constant dense<0.000000e+00> : vector<16x16xf32>
    %100 = tpu.matmul %99, %85, %cst_29 {dimension_numbers = #tpu.dot_dimension_numbers<[1], [0], [0], [1], [0, 0, 1, 1], [], []>} : vector<16x16xbf16>, vector<16x16xbf16>, vector<16x16xf32> -> vector<16x16xf32>
    %101 = arith.truncf %100 : vector<16x16xf32> to vector<16x16xbf16>
    %102 = vector.extract_strided_slice %12 {offsets = [48, 0], sizes = [16, 64], strides = [1, 1]} : vector<64x64xbf16> to vector<16x64xbf16>
    %cst_30 = arith.constant dense<0.000000e+00> : vector<16x64xf32>
    %103 = tpu.matmul %101, %102, %cst_30 {dimension_numbers = #tpu.dot_dimension_numbers<[1], [0], [0], [1], [0, 0, 1, 1], [], []>} : vector<16x16xbf16>, vector<16x64xbf16>, vector<16x64xf32> -> vector<16x64xf32>
    %104 = arith.addf %82, %103 : vector<16x64xf32>
    %c1 = arith.constant 1 : index
    %c0_31 = arith.constant 0 : index
    %105 = vector.load %arg2[%c1, %c0_31] : memref<2x16xf32, #tpu.memory_space<vmem>>, vector<1x16xf32>
    %cst_32 = arith.constant 1.000000e+00 : f32
    %106 = vector.broadcast %cst_32 : f32 to vector<1x16xf32>
    %107 = arith.subf %106, %105 : vector<1x16xf32>
    %cst_33 = arith.constant -1.000000e+09 : f32
    %108 = vector.broadcast %cst_33 : f32 to vector<1x16xf32>
    %109 = arith.mulf %107, %108 : vector<1x16xf32>
    %110 = vector.extract_strided_slice %9 {offsets = [16, 0], sizes = [16, 16], strides = [1, 1]} : vector<32x64xbf16> to vector<16x16xbf16>
    %111 = vector.extract_strided_slice %10 {offsets = [16, 0], sizes = [16, 16], strides = [1, 1]} : vector<32x64xbf16> to vector<16x16xbf16>
    %112 = vector.extract_strided_slice %11 {offsets = [16, 0], sizes = [16, 16], strides = [1, 1]} : vector<32x64xbf16> to vector<16x16xbf16>
    %cst_34 = arith.constant dense<0.000000e+00> : vector<16x16xf32>
    %113 = tpu.matmul %110, %111, %cst_34 {dimension_numbers = #tpu.dot_dimension_numbers<[1], [1], [0], [0], [0, 0, 1, 0], [], []>} : vector<16x16xbf16>, vector<16x16xbf16>, vector<16x16xf32> -> vector<16x16xf32>
    %114 = vector.broadcast %109 : vector<1x16xf32> to vector<16x16xf32>
    %115 = arith.addf %113, %114 : vector<16x16xf32>
    %cst_35 = arith.constant dense<0xFF800000> : vector<16xf32>
    %116 = vector.multi_reduction <maximumf>, %115, %cst_35 [1] : vector<16x16xf32> to vector<16xf32>
    %117 = vector.shape_cast %116 : vector<16xf32> to vector<16x1xf32>
    %118 = vector.broadcast %117 : vector<16x1xf32> to vector<16x16xf32>
    %119 = arith.subf %115, %118 : vector<16x16xf32>
    %120 = math.exp %119 : vector<16x16xf32>
    %cst_36 = arith.constant dense<0.000000e+00> : vector<16xf32>
    %121 = vector.multi_reduction <add>, %120, %cst_36 [1] : vector<16x16xf32> to vector<16xf32>
    %122 = vector.shape_cast %121 : vector<16xf32> to vector<16x1xf32>
    %123 = tpu.reciprocal %122 {approx = true} : vector<16x1xf32> -> vector<16x1xf32>
    %124 = vector.broadcast %123 : vector<16x1xf32> to vector<16x16xf32>
    %125 = arith.mulf %120, %124 : vector<16x16xf32>
    %126 = arith.truncf %125 : vector<16x16xf32> to vector<16x16xbf16>
    %cst_37 = arith.constant dense<0.000000e+00> : vector<16x16xf32>
    %127 = tpu.matmul %126, %112, %cst_37 {dimension_numbers = #tpu.dot_dimension_numbers<[1], [0], [0], [1], [0, 0, 1, 1], [], []>} : vector<16x16xbf16>, vector<16x16xbf16>, vector<16x16xf32> -> vector<16x16xf32>
    %128 = arith.truncf %127 : vector<16x16xf32> to vector<16x16xbf16>
    %129 = vector.extract_strided_slice %12 {offsets = [0, 0], sizes = [16, 64], strides = [1, 1]} : vector<64x64xbf16> to vector<16x64xbf16>
    %cst_38 = arith.constant dense<0.000000e+00> : vector<16x64xf32>
    %130 = tpu.matmul %128, %129, %cst_38 {dimension_numbers = #tpu.dot_dimension_numbers<[1], [0], [0], [1], [0, 0, 1, 1], [], []>} : vector<16x16xbf16>, vector<16x64xbf16>, vector<16x64xf32> -> vector<16x64xf32>
    %131 = vector.extract_strided_slice %9 {offsets = [16, 16], sizes = [16, 16], strides = [1, 1]} : vector<32x64xbf16> to vector<16x16xbf16>
    %132 = vector.extract_strided_slice %10 {offsets = [16, 16], sizes = [16, 16], strides = [1, 1]} : vector<32x64xbf16> to vector<16x16xbf16>
    %133 = vector.extract_strided_slice %11 {offsets = [16, 16], sizes = [16, 16], strides = [1, 1]} : vector<32x64xbf16> to vector<16x16xbf16>
    %cst_39 = arith.constant dense<0.000000e+00> : vector<16x16xf32>
    %134 = tpu.matmul %131, %132, %cst_39 {dimension_numbers = #tpu.dot_dimension_numbers<[1], [1], [0], [0], [0, 0, 1, 0], [], []>} : vector<16x16xbf16>, vector<16x16xbf16>, vector<16x16xf32> -> vector<16x16xf32>
    %135 = vector.broadcast %109 : vector<1x16xf32> to vector<16x16xf32>
    %136 = arith.addf %134, %135 : vector<16x16xf32>
    %cst_40 = arith.constant dense<0xFF800000> : vector<16xf32>
    %137 = vector.multi_reduction <maximumf>, %136, %cst_40 [1] : vector<16x16xf32> to vector<16xf32>
    %138 = vector.shape_cast %137 : vector<16xf32> to vector<16x1xf32>
    %139 = vector.broadcast %138 : vector<16x1xf32> to vector<16x16xf32>
    %140 = arith.subf %136, %139 : vector<16x16xf32>
    %141 = math.exp %140 : vector<16x16xf32>
    %cst_41 = arith.constant dense<0.000000e+00> : vector<16xf32>
    %142 = vector.multi_reduction <add>, %141, %cst_41 [1] : vector<16x16xf32> to vector<16xf32>
    %143 = vector.shape_cast %142 : vector<16xf32> to vector<16x1xf32>
    %144 = tpu.reciprocal %143 {approx = true} : vector<16x1xf32> -> vector<16x1xf32>
    %145 = vector.broadcast %144 : vector<16x1xf32> to vector<16x16xf32>
    %146 = arith.mulf %141, %145 : vector<16x16xf32>
    %147 = arith.truncf %146 : vector<16x16xf32> to vector<16x16xbf16>
    %cst_42 = arith.constant dense<0.000000e+00> : vector<16x16xf32>
    %148 = tpu.matmul %147, %133, %cst_42 {dimension_numbers = #tpu.dot_dimension_numbers<[1], [0], [0], [1], [0, 0, 1, 1], [], []>} : vector<16x16xbf16>, vector<16x16xbf16>, vector<16x16xf32> -> vector<16x16xf32>
    %149 = arith.truncf %148 : vector<16x16xf32> to vector<16x16xbf16>
    %150 = vector.extract_strided_slice %12 {offsets = [16, 0], sizes = [16, 64], strides = [1, 1]} : vector<64x64xbf16> to vector<16x64xbf16>
    %cst_43 = arith.constant dense<0.000000e+00> : vector<16x64xf32>
    %151 = tpu.matmul %149, %150, %cst_43 {dimension_numbers = #tpu.dot_dimension_numbers<[1], [0], [0], [1], [0, 0, 1, 1], [], []>} : vector<16x16xbf16>, vector<16x64xbf16>, vector<16x64xf32> -> vector<16x64xf32>
    %152 = arith.addf %130, %151 : vector<16x64xf32>
    %153 = vector.extract_strided_slice %9 {offsets = [16, 32], sizes = [16, 16], strides = [1, 1]} : vector<32x64xbf16> to vector<16x16xbf16>
    %154 = vector.extract_strided_slice %10 {offsets = [16, 32], sizes = [16, 16], strides = [1, 1]} : vector<32x64xbf16> to vector<16x16xbf16>
    %155 = vector.extract_strided_slice %11 {offsets = [16, 32], sizes = [16, 16], strides = [1, 1]} : vector<32x64xbf16> to vector<16x16xbf16>
    %cst_44 = arith.constant dense<0.000000e+00> : vector<16x16xf32>
    %156 = tpu.matmul %153, %154, %cst_44 {dimension_numbers = #tpu.dot_dimension_numbers<[1], [1], [0], [0], [0, 0, 1, 0], [], []>} : vector<16x16xbf16>, vector<16x16xbf16>, vector<16x16xf32> -> vector<16x16xf32>
    %157 = vector.broadcast %109 : vector<1x16xf32> to vector<16x16xf32>
    %158 = arith.addf %156, %157 : vector<16x16xf32>
    %cst_45 = arith.constant dense<0xFF800000> : vector<16xf32>
    %159 = vector.multi_reduction <maximumf>, %158, %cst_45 [1] : vector<16x16xf32> to vector<16xf32>
    %160 = vector.shape_cast %159 : vector<16xf32> to vector<16x1xf32>
    %161 = vector.broadcast %160 : vector<16x1xf32> to vector<16x16xf32>
    %162 = arith.subf %158, %161 : vector<16x16xf32>
    %163 = math.exp %162 : vector<16x16xf32>
    %cst_46 = arith.constant dense<0.000000e+00> : vector<16xf32>
    %164 = vector.multi_reduction <add>, %163, %cst_46 [1] : vector<16x16xf32> to vector<16xf32>
    %165 = vector.shape_cast %164 : vector<16xf32> to vector<16x1xf32>
    %166 = tpu.reciprocal %165 {approx = true} : vector<16x1xf32> -> vector<16x1xf32>
    %167 = vector.broadcast %166 : vector<16x1xf32> to vector<16x16xf32>
    %168 = arith.mulf %163, %167 : vector<16x16xf32>
    %169 = arith.truncf %168 : vector<16x16xf32> to vector<16x16xbf16>
    %cst_47 = arith.constant dense<0.000000e+00> : vector<16x16xf32>
    %170 = tpu.matmul %169, %155, %cst_47 {dimension_numbers = #tpu.dot_dimension_numbers<[1], [0], [0], [1], [0, 0, 1, 1], [], []>} : vector<16x16xbf16>, vector<16x16xbf16>, vector<16x16xf32> -> vector<16x16xf32>
    %171 = arith.truncf %170 : vector<16x16xf32> to vector<16x16xbf16>
    %172 = vector.extract_strided_slice %12 {offsets = [32, 0], sizes = [16, 64], strides = [1, 1]} : vector<64x64xbf16> to vector<16x64xbf16>
    %cst_48 = arith.constant dense<0.000000e+00> : vector<16x64xf32>
    %173 = tpu.matmul %171, %172, %cst_48 {dimension_numbers = #tpu.dot_dimension_numbers<[1], [0], [0], [1], [0, 0, 1, 1], [], []>} : vector<16x16xbf16>, vector<16x64xbf16>, vector<16x64xf32> -> vector<16x64xf32>
    %174 = arith.addf %152, %173 : vector<16x64xf32>
    %175 = vector.extract_strided_slice %9 {offsets = [16, 48], sizes = [16, 16], strides = [1, 1]} : vector<32x64xbf16> to vector<16x16xbf16>
    %176 = vector.extract_strided_slice %10 {offsets = [16, 48], sizes = [16, 16], strides = [1, 1]} : vector<32x64xbf16> to vector<16x16xbf16>
    %177 = vector.extract_strided_slice %11 {offsets = [16, 48], sizes = [16, 16], strides = [1, 1]} : vector<32x64xbf16> to vector<16x16xbf16>
    %cst_49 = arith.constant dense<0.000000e+00> : vector<16x16xf32>
    %178 = tpu.matmul %175, %176, %cst_49 {dimension_numbers = #tpu.dot_dimension_numbers<[1], [1], [0], [0], [0, 0, 1, 0], [], []>} : vector<16x16xbf16>, vector<16x16xbf16>, vector<16x16xf32> -> vector<16x16xf32>
    %179 = vector.broadcast %109 : vector<1x16xf32> to vector<16x16xf32>
    %180 = arith.addf %178, %179 : vector<16x16xf32>
    %cst_50 = arith.constant dense<0xFF800000> : vector<16xf32>
    %181 = vector.multi_reduction <maximumf>, %180, %cst_50 [1] : vector<16x16xf32> to vector<16xf32>
    %182 = vector.shape_cast %181 : vector<16xf32> to vector<16x1xf32>
    %183 = vector.broadcast %182 : vector<16x1xf32> to vector<16x16xf32>
    %184 = arith.subf %180, %183 : vector<16x16xf32>
    %185 = math.exp %184 : vector<16x16xf32>
    %cst_51 = arith.constant dense<0.000000e+00> : vector<16xf32>
    %186 = vector.multi_reduction <add>, %185, %cst_51 [1] : vector<16x16xf32> to vector<16xf32>
    %187 = vector.shape_cast %186 : vector<16xf32> to vector<16x1xf32>
    %188 = tpu.reciprocal %187 {approx = true} : vector<16x1xf32> -> vector<16x1xf32>
    %189 = vector.broadcast %188 : vector<16x1xf32> to vector<16x16xf32>
    %190 = arith.mulf %185, %189 : vector<16x16xf32>
    %191 = arith.truncf %190 : vector<16x16xf32> to vector<16x16xbf16>
    %cst_52 = arith.constant dense<0.000000e+00> : vector<16x16xf32>
    %192 = tpu.matmul %191, %177, %cst_52 {dimension_numbers = #tpu.dot_dimension_numbers<[1], [0], [0], [1], [0, 0, 1, 1], [], []>} : vector<16x16xbf16>, vector<16x16xbf16>, vector<16x16xf32> -> vector<16x16xf32>
    %193 = arith.truncf %192 : vector<16x16xf32> to vector<16x16xbf16>
    %194 = vector.extract_strided_slice %12 {offsets = [48, 0], sizes = [16, 64], strides = [1, 1]} : vector<64x64xbf16> to vector<16x64xbf16>
    %cst_53 = arith.constant dense<0.000000e+00> : vector<16x64xf32>
    %195 = tpu.matmul %193, %194, %cst_53 {dimension_numbers = #tpu.dot_dimension_numbers<[1], [0], [0], [1], [0, 0, 1, 1], [], []>} : vector<16x16xbf16>, vector<16x64xbf16>, vector<16x64xf32> -> vector<16x64xf32>
    %196 = arith.addf %174, %195 : vector<16x64xf32>
    %197 = tpu.concatenate %104, %196 in 0 : vector<16x64xf32>, vector<16x64xf32> -> vector<32x64xf32>
    %c0_54 = arith.constant 0 : index
    %c0_55 = arith.constant 0 : index
    %198 = vector.load %arg8[%c0_54, %c0_55] : memref<1x64xf32, #tpu.memory_space<vmem>>, vector<1x64xf32>
    %199 = vector.broadcast %198 : vector<1x64xf32> to vector<32x64xf32>
    %200 = arith.addf %197, %199 : vector<32x64xf32>
    %201 = arith.addf %200, %1 : vector<32x64xf32>
    %c0_56 = arith.constant 0 : index
    %c0_57 = arith.constant 0 : index
    %202 = vector.load %arg9[%c0_56, %c0_57] : memref<1x64xf32, #tpu.memory_space<vmem>>, vector<1x64xf32>
    %c0_58 = arith.constant 0 : index
    %c0_59 = arith.constant 0 : index
    %203 = vector.load %arg10[%c0_58, %c0_59] : memref<1x64xf32, #tpu.memory_space<vmem>>, vector<1x64xf32>
    %cst_60 = arith.constant dense<0.000000e+00> : vector<32xf32>
    %204 = vector.multi_reduction <add>, %201, %cst_60 [1] : vector<32x64xf32> to vector<32xf32>
    %205 = vector.shape_cast %204 : vector<32xf32> to vector<32x1xf32>
    %cst_61 = arith.constant 6.400000e+01 : f32
    %206 = vector.broadcast %cst_61 : f32 to vector<32x1xf32>
    %207 = arith.divf %205, %206 : vector<32x1xf32>
    %208 = vector.broadcast %207 : vector<32x1xf32> to vector<32x64xf32>
    %209 = arith.subf %201, %208 : vector<32x64xf32>
    %210 = vector.broadcast %207 : vector<32x1xf32> to vector<32x64xf32>
    %211 = arith.subf %201, %210 : vector<32x64xf32>
    %212 = arith.mulf %209, %211 : vector<32x64xf32>
    %cst_62 = arith.constant dense<0.000000e+00> : vector<32xf32>
    %213 = vector.multi_reduction <add>, %212, %cst_62 [1] : vector<32x64xf32> to vector<32xf32>
    %214 = vector.shape_cast %213 : vector<32xf32> to vector<32x1xf32>
    %cst_63 = arith.constant 6.400000e+01 : f32
    %215 = vector.broadcast %cst_63 : f32 to vector<32x1xf32>
    %216 = arith.divf %214, %215 : vector<32x1xf32>
    %217 = vector.broadcast %207 : vector<32x1xf32> to vector<32x64xf32>
    %218 = arith.subf %201, %217 : vector<32x64xf32>
    %cst_64 = arith.constant 9.99999996E-13 : f32
    %219 = vector.broadcast %cst_64 : f32 to vector<32x1xf32>
    %220 = arith.addf %216, %219 : vector<32x1xf32>
    %221 = math.rsqrt %220 : vector<32x1xf32>
    %222 = vector.broadcast %221 : vector<32x1xf32> to vector<32x64xf32>
    %223 = arith.mulf %218, %222 : vector<32x64xf32>
    %224 = vector.broadcast %202 : vector<1x64xf32> to vector<32x64xf32>
    %225 = arith.mulf %223, %224 : vector<32x64xf32>
    %226 = vector.broadcast %203 : vector<1x64xf32> to vector<32x64xf32>
    %227 = arith.addf %225, %226 : vector<32x64xf32>
    %228 = arith.truncf %227 : vector<32x64xf32> to vector<32x64xbf16>
    %c0_65 = arith.constant 0 : index
    %c0_66 = arith.constant 0 : index
    %229 = vector.load %arg11[%c0_65, %c0_66] : memref<64x128xbf16, #tpu.memory_space<vmem>>, vector<64x128xbf16>
    %cst_67 = arith.constant dense<0.000000e+00> : vector<32x128xf32>
    %230 = tpu.matmul %228, %229, %cst_67 {dimension_numbers = #tpu.dot_dimension_numbers<[1], [0], [0], [1], [0, 0, 1, 1], [], []>} : vector<32x64xbf16>, vector<64x128xbf16>, vector<32x128xf32> -> vector<32x128xf32>
    %c0_68 = arith.constant 0 : index
    %c0_69 = arith.constant 0 : index
    %231 = vector.load %arg12[%c0_68, %c0_69] : memref<1x128xf32, #tpu.memory_space<vmem>>, vector<1x128xf32>
    %232 = vector.broadcast %231 : vector<1x128xf32> to vector<32x128xf32>
    %233 = arith.addf %230, %232 : vector<32x128xf32>
    %cst_70 = arith.constant 5.000000e-01 : f32
    %234 = vector.broadcast %cst_70 : f32 to vector<32x128xf32>
    %235 = arith.mulf %234, %233 : vector<32x128xf32>
    %cst_71 = arith.constant 4.471500e-02 : f32
    %236 = vector.broadcast %cst_71 : f32 to vector<32x128xf32>
    %237 = arith.mulf %236, %233 : vector<32x128xf32>
    %238 = arith.mulf %237, %233 : vector<32x128xf32>
    %239 = arith.mulf %238, %233 : vector<32x128xf32>
    %240 = arith.addf %233, %239 : vector<32x128xf32>
    %cst_72 = arith.constant 0.797884583 : f32
    %241 = vector.broadcast %cst_72 : f32 to vector<32x128xf32>
    %242 = arith.mulf %241, %240 : vector<32x128xf32>
    %243 = math.tanh %242 : vector<32x128xf32>
    %cst_73 = arith.constant 1.000000e+00 : f32
    %244 = vector.broadcast %cst_73 : f32 to vector<32x128xf32>
    %245 = arith.addf %244, %243 : vector<32x128xf32>
    %246 = arith.mulf %235, %245 : vector<32x128xf32>
    %247 = arith.truncf %246 : vector<32x128xf32> to vector<32x128xbf16>
    %c0_74 = arith.constant 0 : index
    %c0_75 = arith.constant 0 : index
    %248 = vector.load %arg13[%c0_74, %c0_75] : memref<128x64xbf16, #tpu.memory_space<vmem>>, vector<128x64xbf16>
    %cst_76 = arith.constant dense<0.000000e+00> : vector<32x64xf32>
    %249 = tpu.matmul %247, %248, %cst_76 {dimension_numbers = #tpu.dot_dimension_numbers<[1], [0], [0], [1], [0, 0, 1, 1], [], []>} : vector<32x128xbf16>, vector<128x64xbf16>, vector<32x64xf32> -> vector<32x64xf32>
    %c0_77 = arith.constant 0 : index
    %c0_78 = arith.constant 0 : index
    %250 = vector.load %arg14[%c0_77, %c0_78] : memref<1x64xf32, #tpu.memory_space<vmem>>, vector<1x64xf32>
    %251 = vector.broadcast %250 : vector<1x64xf32> to vector<32x64xf32>
    %252 = arith.addf %249, %251 : vector<32x64xf32>
    %253 = arith.addf %252, %227 : vector<32x64xf32>
    %c0_79 = arith.constant 0 : index
    %c0_80 = arith.constant 0 : index
    %254 = vector.load %arg15[%c0_79, %c0_80] : memref<1x64xf32, #tpu.memory_space<vmem>>, vector<1x64xf32>
    %c0_81 = arith.constant 0 : index
    %c0_82 = arith.constant 0 : index
    %255 = vector.load %arg16[%c0_81, %c0_82] : memref<1x64xf32, #tpu.memory_space<vmem>>, vector<1x64xf32>
    %cst_83 = arith.constant dense<0.000000e+00> : vector<32xf32>
    %256 = vector.multi_reduction <add>, %253, %cst_83 [1] : vector<32x64xf32> to vector<32xf32>
    %257 = vector.shape_cast %256 : vector<32xf32> to vector<32x1xf32>
    %cst_84 = arith.constant 6.400000e+01 : f32
    %258 = vector.broadcast %cst_84 : f32 to vector<32x1xf32>
    %259 = arith.divf %257, %258 : vector<32x1xf32>
    %260 = vector.broadcast %259 : vector<32x1xf32> to vector<32x64xf32>
    %261 = arith.subf %253, %260 : vector<32x64xf32>
    %262 = vector.broadcast %259 : vector<32x1xf32> to vector<32x64xf32>
    %263 = arith.subf %253, %262 : vector<32x64xf32>
    %264 = arith.mulf %261, %263 : vector<32x64xf32>
    %cst_85 = arith.constant dense<0.000000e+00> : vector<32xf32>
    %265 = vector.multi_reduction <add>, %264, %cst_85 [1] : vector<32x64xf32> to vector<32xf32>
    %266 = vector.shape_cast %265 : vector<32xf32> to vector<32x1xf32>
    %cst_86 = arith.constant 6.400000e+01 : f32
    %267 = vector.broadcast %cst_86 : f32 to vector<32x1xf32>
    %268 = arith.divf %266, %267 : vector<32x1xf32>
    %269 = vector.broadcast %259 : vector<32x1xf32> to vector<32x64xf32>
    %270 = arith.subf %253, %269 : vector<32x64xf32>
    %cst_87 = arith.constant 9.99999996E-13 : f32
    %271 = vector.broadcast %cst_87 : f32 to vector<32x1xf32>
    %272 = arith.addf %268, %271 : vector<32x1xf32>
    %273 = math.rsqrt %272 : vector<32x1xf32>
    %274 = vector.broadcast %273 : vector<32x1xf32> to vector<32x64xf32>
    %275 = arith.mulf %270, %274 : vector<32x64xf32>
    %276 = vector.broadcast %254 : vector<1x64xf32> to vector<32x64xf32>
    %277 = arith.mulf %275, %276 : vector<32x64xf32>
    %278 = vector.broadcast %255 : vector<1x64xf32> to vector<32x64xf32>
    %279 = arith.addf %277, %278 : vector<32x64xf32>
    %280 = arith.truncf %279 : vector<32x64xf32> to vector<32x64xbf16>
    %c0_88 = arith.constant 0 : index
    %c0_89 = arith.constant 0 : index
    %281 = vector.load %arg17[%c0_88, %c0_89] : memref<32x64xbf16, #tpu.memory_space<vmem>>, vector<32x64xbf16>
    tpu.vector_store %arg17[%c0_88, %c0_89], %280 {strides = array<i32>} : memref<32x64xbf16, #tpu.memory_space<vmem>>, vector<32x64xbf16>,
    return
  }
  func.func @transform_0(%arg0: i32) -> (i32, i32) {
    %c0_i32 = arith.constant 0 : i32
    %c0_i32_0 = arith.constant 0 : i32
    %c0_i32_1 = arith.constant 0 : i32
    return %c0_i32, %c0_i32_0 : i32, i32
  }
  func.func @transform_1(%arg0: i32) -> (i32, i32) {
    %c0_i32 = arith.constant 0 : i32
    %c0_i32_0 = arith.constant 0 : i32
    %c0_i32_1 = arith.constant 0 : i32
    return %c0_i32, %c0_i32_0 : i32, i32
  }
  func.func @transform_2(%arg0: i32) -> (i32, i32) {
    %c0_i32 = arith.constant 0 : i32
    %c0_i32_0 = arith.constant 0 : i32
    %c0_i32_1 = arith.constant 0 : i32
    return %c0_i32, %c0_i32_0 : i32, i32
  }
  func.func @transform_3(%arg0: i32) -> (i32, i32) {
    %c0_i32 = arith.constant 0 : i32
    %c0_i32_0 = arith.constant 0 : i32
    %c0_i32_1 = arith.constant 0 : i32
    return %c0_i32, %c0_i32_0 : i32, i32
  }
  func.func @transform_4(%arg0: i32) -> (i32, i32) {
    %c0_i32 = arith.constant 0 : i32
    %c0_i32_0 = arith.constant 0 : i32
    %c0_i32_1 = arith.constant 0 : i32
    return %c0_i32, %c0_i32_0 : i32, i32
  }
  func.func @transform_5(%arg0: i32) -> (i32, i32) {
    %c0_i32 = arith.constant 0 : i32
    %c0_i32_0 = arith.constant 0 : i32
    %c0_i32_1 = arith.constant 0 : i32
    return %c0_i32, %c0_i32_0 : i32, i32
  }
  func.func @transform_6(%arg0: i32) -> (i32, i32) {
    %c0_i32 = arith.constant 0 : i32
    %c0_i32_0 = arith.constant 0 : i32
    %c0_i32_1 = arith.constant 0 : i32
    return %c0_i32, %c0_i32_0 : i32, i32
  }
  func.func @transform_7(%arg0: i32) -> (i32, i32) {
    %c0_i32 = arith.constant 0 : i32
    %c0_i32_0 = arith.constant 0 : i32
    %c0_i32_1 = arith.constant 0 : i32
    return %c0_i32, %c0_i32_0 : i32, i32
  }
  func.func @transform_8(%arg0: i32) -> (i32, i32) {
    %c0_i32 = arith.constant 0 : i32
    %c0_i32_0 = arith.constant 0 : i32
    %c0_i32_1 = arith.constant 0 : i32
    return %c0_i32, %c0_i32_0 : i32, i32
  }
  func.func @transform_9(%arg0: i32) -> (i32, i32) {
    %c0_i32 = arith.constant 0 : i32
    %c0_i32_0 = arith.constant 0 : i32
    %c0_i32_1 = arith.constant 0 : i32
    return %c0_i32, %c0_i32_0 : i32, i32
  }
  func.func @transform_10(%arg0: i32) -> (i32, i32) {
    %c0_i32 = arith.constant 0 : i32
    %c0_i32_0 = arith.constant 0 : i32
    %c0_i32_1 = arith.constant 0 : i32
    return %c0_i32, %c0_i32_0 : i32, i32
  }
  func.func @transform_11(%arg0: i32) -> (i32, i32) {
    %c0_i32 = arith.constant 0 : i32
    %c0_i32_0 = arith.constant 0 : i32
    %c0_i32_1 = arith.constant 0 : i32
    return %c0_i32, %c0_i32_0 : i32, i32
  }
  func.func @transform_12(%arg0: i32) -> (i32, i32) {
    %c0_i32 = arith.constant 0 : i32
    %c0_i32_0 = arith.constant 0 : i32
    %c0_i32_1 = arith.constant 0 : i32
    return %c0_i32, %c0_i32_0 : i32, i32
  }
  func.func @transform_13(%arg0: i32) -> (i32, i32) {
    %c0_i32 = arith.constant 0 : i32
    %c0_i32_0 = arith.constant 0 : i32
    %c0_i32_1 = arith.constant 0 : i32
    return %c0_i32, %c0_i32_0 : i32, i32
  }
  func.func @transform_14(%arg0: i32) -> (i32, i32) {
    %c0_i32 = arith.constant 0 : i32
    %c0_i32_0 = arith.constant 0 : i32
    %c0_i32_1 = arith.constant 0 : i32
    return %c0_i32, %c0_i32_0 : i32, i32
  }
  func.func @transform_15(%arg0: i32) -> (i32, i32) {
    %c0_i32 = arith.constant 0 : i32
    %c0_i32_0 = arith.constant 0 : i32
    %c0_i32_1 = arith.constant 0 : i32
    return %c0_i32, %c0_i32_0 : i32, i32
  }
  func.func @transform_16(%arg0: i32) -> (i32, i32) {
    %c0_i32 = arith.constant 0 : i32
    %c0_i32_0 = arith.constant 0 : i32
    %c0_i32_1 = arith.constant 0 : i32
    return %c0_i32, %c0_i32_0 : i32, i32
  }
}

module attributes {stable_mosaic.version = 11 : i64} {
  func.func @_head_loss_kernel(%arg0: i32, %arg1: memref<32x64xbf16, #tpu.memory_space<vmem>>, %arg2: memref<64x128xbf16, #tpu.memory_space<vmem>>, %arg3: memref<1x128xf32, #tpu.memory_space<vmem>>, %arg4: memref<32x1xi32, #tpu.memory_space<vmem>>, %arg5: memref<32x128xf32, #tpu.memory_space<vmem>>, %arg6: memref<1x1xf32, #tpu.memory_space<vmem>>) attributes {dimension_semantics = [#tpu.dimension_semantics<arbitrary>], iteration_bounds = array<i64: 1>, scalar_prefetch = 0 : i64, scratch_operands = 0 : i64, tpu.core_type = #tpu.core_type<tc>, window_params = [{pipeline_mode = #tpu.pipeline_mode<synchronous>, transform_indices = @transform_0, window_bounds = array<i64: 32, 64>}, {pipeline_mode = #tpu.pipeline_mode<synchronous>, transform_indices = @transform_1, window_bounds = array<i64: 64, 128>}, {pipeline_mode = #tpu.pipeline_mode<synchronous>, transform_indices = @transform_2, window_bounds = array<i64: 1, 128>}, {pipeline_mode = #tpu.pipeline_mode<synchronous>, transform_indices = @transform_3, window_bounds = array<i64: 32, 1>}, {pipeline_mode = #tpu.pipeline_mode<synchronous>, transform_indices = @transform_4, window_bounds = array<i64: 32, 128>}, {pipeline_mode = #tpu.pipeline_mode<synchronous>, transform_indices = @transform_5, window_bounds = array<i64: 1, 1>}]} {
    %c0 = arith.constant 0 : index
    %c0_0 = arith.constant 0 : index
    %0 = vector.load %arg1[%c0, %c0_0] : memref<32x64xbf16, #tpu.memory_space<vmem>>, vector<32x64xbf16>
    %c0_1 = arith.constant 0 : index
    %c0_2 = arith.constant 0 : index
    %1 = vector.load %arg2[%c0_1, %c0_2] : memref<64x128xbf16, #tpu.memory_space<vmem>>, vector<64x128xbf16>
    %cst = arith.constant dense<0.000000e+00> : vector<32x128xf32>
    %2 = tpu.matmul %0, %1, %cst {dimension_numbers = #tpu.dot_dimension_numbers<[1], [0], [0], [1], [0, 0, 1, 1], [], []>} : vector<32x64xbf16>, vector<64x128xbf16>, vector<32x128xf32> -> vector<32x128xf32>
    %c0_3 = arith.constant 0 : index
    %c0_4 = arith.constant 0 : index
    %3 = vector.load %arg3[%c0_3, %c0_4] : memref<1x128xf32, #tpu.memory_space<vmem>>, vector<1x128xf32>
    %4 = vector.broadcast %3 : vector<1x128xf32> to vector<32x128xf32>
    %5 = arith.addf %2, %4 : vector<32x128xf32>
    %c0_5 = arith.constant 0 : index
    %c0_6 = arith.constant 0 : index
    %6 = vector.load %arg5[%c0_5, %c0_6] : memref<32x128xf32, #tpu.memory_space<vmem>>, vector<32x128xf32>
    tpu.vector_store %arg5[%c0_5, %c0_6], %5 {strides = array<i32>} : memref<32x128xf32, #tpu.memory_space<vmem>>, vector<32x128xf32>,
    %cst_7 = arith.constant dense<0xFF800000> : vector<32xf32>
    %7 = vector.multi_reduction <maximumf>, %5, %cst_7 [1] : vector<32x128xf32> to vector<32xf32>
    %8 = vector.shape_cast %7 : vector<32xf32> to vector<32x1xf32>
    %9 = vector.broadcast %8 : vector<32x1xf32> to vector<32x128xf32>
    %10 = arith.subf %5, %9 : vector<32x128xf32>
    %11 = math.exp %10 : vector<32x128xf32>
    %cst_8 = arith.constant dense<0.000000e+00> : vector<32xf32>
    %12 = vector.multi_reduction <add>, %11, %cst_8 [1] : vector<32x128xf32> to vector<32xf32>
    %13 = vector.shape_cast %12 : vector<32xf32> to vector<32x1xf32>
    %14 = math.log %13 : vector<32x1xf32>
    %15 = vector.broadcast %14 : vector<32x1xf32> to vector<32x128xf32>
    %16 = arith.subf %10, %15 : vector<32x128xf32>
    %c0_9 = arith.constant 0 : index
    %c0_10 = arith.constant 0 : index
    %17 = vector.load %arg4[%c0_9, %c0_10] : memref<32x1xi32, #tpu.memory_space<vmem>>, vector<32x1xi32>
    %c-100_i32 = arith.constant -100 : i32
    %18 = vector.broadcast %c-100_i32 : i32 to vector<32x1xi32>
    %19 = arith.cmpi ne, %17, %18 : vector<32x1xi32>
    %c0_i32 = arith.constant 0 : i32
    %20 = vector.broadcast %c0_i32 : i32 to vector<32x1xi32>
    %21 = arith.select %19, %17, %20 : vector<32x1xi1>, vector<32x1xi32>
    %22 = tpu.iota {dimensions = array<i32: 1>} : vector<32x128xi32>
    %23 = vector.broadcast %21 : vector<32x1xi32> to vector<32x128xi32>
    %24 = arith.cmpi eq, %22, %23 : vector<32x128xi32>
    %25 = arith.extui %24 : vector<32x128xi1> to vector<32x128xi32>
    %26 = arith.sitofp %25 : vector<32x128xi32> to vector<32x128xf32>
    %27 = arith.mulf %16, %26 : vector<32x128xf32>
    %cst_11 = arith.constant dense<0.000000e+00> : vector<32xf32>
    %28 = vector.multi_reduction <add>, %27, %cst_11 [1] : vector<32x128xf32> to vector<32xf32>
    %29 = vector.shape_cast %28 : vector<32xf32> to vector<32x1xf32>
    %cst_12 = arith.constant 0.000000e+00 : f32
    %30 = vector.broadcast %cst_12 : f32 to vector<32x1xf32>
    %31 = arith.subf %30, %29 : vector<32x1xf32>
    %cst_13 = arith.constant 0.000000e+00 : f32
    %32 = vector.broadcast %cst_13 : f32 to vector<32x1xf32>
    %33 = arith.select %19, %31, %32 : vector<32x1xi1>, vector<32x1xf32>
    %cst_14 = arith.constant dense<0.000000e+00> : vector<1xf32>
    %34 = vector.multi_reduction <add>, %33, %cst_14 [0] : vector<32x1xf32> to vector<1xf32>
    %35 = vector.shape_cast %34 : vector<1xf32> to vector<1x1xf32>
    %36 = arith.extui %19 : vector<32x1xi1> to vector<32x1xi32>
    %37 = arith.sitofp %36 : vector<32x1xi32> to vector<32x1xf32>
    %cst_15 = arith.constant dense<0.000000e+00> : vector<1xf32>
    %38 = vector.multi_reduction <add>, %37, %cst_15 [0] : vector<32x1xf32> to vector<1xf32>
    %39 = vector.shape_cast %38 : vector<1xf32> to vector<1x1xf32>
    %cst_16 = arith.constant 1.000000e+00 : f32
    %40 = vector.broadcast %cst_16 : f32 to vector<1x1xf32>
    %41 = arith.maximumf %39, %40 : vector<1x1xf32>
    %42 = arith.divf %35, %41 : vector<1x1xf32>
    %c0_17 = arith.constant 0 : index
    %c0_18 = arith.constant 0 : index
    %43 = vector.load %arg6[%c0_17, %c0_18] : memref<1x1xf32, #tpu.memory_space<vmem>>, vector<1x1xf32>
    tpu.vector_store %arg6[%c0_17, %c0_18], %42 {strides = array<i32>} : memref<1x1xf32, #tpu.memory_space<vmem>>, vector<1x1xf32>,
    return
  }
  func.func @transform_0(%arg0: i32) -> (i32, i32) {
    %c0_i32 = arith.constant 0 : i32
    %c0_i32_0 = arith.constant 0 : i32
    %c0_i32_1 = arith.constant 0 : i32
    return %c0_i32, %c0_i32_0 : i32, i32
  }
  func.func @transform_1(%arg0: i32) -> (i32, i32) {
    %c0_i32 = arith.constant 0 : i32
    %c0_i32_0 = arith.constant 0 : i32
    %c0_i32_1 = arith.constant 0 : i32
    return %c0_i32, %c0_i32_0 : i32, i32
  }
  func.func @transform_2(%arg0: i32) -> (i32, i32) {
    %c0_i32 = arith.constant 0 : i32
    %c0_i32_0 = arith.constant 0 : i32
    %c0_i32_1 = arith.constant 0 : i32
    return %c0_i32, %c0_i32_0 : i32, i32
  }
  func.func @transform_3(%arg0: i32) -> (i32, i32) {
    %c0_i32 = arith.constant 0 : i32
    %c0_i32_0 = arith.constant 0 : i32
    %c0_i32_1 = arith.constant 0 : i32
    return %c0_i32, %c0_i32_0 : i32, i32
  }
  func.func @transform_4(%arg0: i32) -> (i32, i32) {
    %c0_i32 = arith.constant 0 : i32
    %c0_i32_0 = arith.constant 0 : i32
    %c0_i32_1 = arith.constant 0 : i32
    return %c0_i32, %c0_i32_0 : i32, i32
  }
  func.func @transform_5(%arg0: i32) -> (i32, i32) {
    %c0_i32 = arith.constant 0 : i32
    %c0_i32_0 = arith.constant 0 : i32
    %c0_i32_1 = arith.constant 0 : i32
    return %c0_i32, %c0_i32_0 : i32, i32
  }
}

</mosaic_0001>

<bundles_post_ra>
// kernel: bert_forward.5
= control target key start
LH: loop header
LB: loop body
LE: loop exit
PB: predicated region body
PF: predicated region fallthrough
CT: control target
= control target key end

     0   :  { %s500_s0 = inlined_call_operand.vmem [shape: bf16[32,64], index: 0, kind: input, shape index: {}]   ;;  %s501_s1 = inlined_call_operand.vmem [shape: bf16[64,128], index: 1, kind: input, shape index: {}]   ;;  %s502_s2 = inlined_call_operand.vmem [shape: f32[1,128], index: 2, kind: input, shape index: {}]   ;;  %s503_s3 = inlined_call_operand.vmem [shape: s32[32,1], index: 3, kind: input, shape index: {}]   ;;  %s504_s4 = inlined_call_operand.vmem [shape: f32[32,128], index: 4, kind: output, shape index: {0}]   ;;  %s505_s5 = inlined_call_operand.hbm [shape: f32[1,1], index: 5, kind: output, shape index: {1}]  }
   0x1   :  { %v311_v0 = vld [vmem:[%s501_s1 + $0x18] sm:$0xff]  ;;  %v310_v1 = vld [vmem:[%s501_s1 + $0x10] sm:$0xff] }
   0x2   :  { %82 = vmatpush.bf16.msra.mxu0 %v311_v0  ;;  %312 = vmatpush.bf16.msra.mxu1 %v311_v0 }
   0x3   :  { %11 = vsyncpa [#allocation3], 0  ;;  %v309_v2 = vld [vmem:[%s501_s1 + $0x8] sm:$0xff]  ;;  %v308_v3 = vld [vmem:[%s501_s1] sm:$0xff]  ;;  %vm71_vm0 = vcmask 523264   ;;  %v367_v7 = vmov 0   ;;  %v153_v41 = vlaneseq }
   0x4   :  { %v306_v4 = vld [vmem:[%s500_s0] sm:$0xff]  ;;  %v307_v5 = vld [vmem:[%s500_s0 + $0x8] sm:$0xff]  ;;  %319 = vset.pattern.permute.xlu2 %v367_v7  ;;  %320 = vset.pattern.permute.xlu0 %v367_v7  ;;  %v457_v36 = vld [vmem:[%s503_s3 + $0x18] sm:$0xff]  ;;  %v368_v50 = vmov 0.0   ;;  %vm199_vm9 = vcmask 7168   ;;  %s261_s22 = sshll.u32 %s505_s5, 4  ;;  %s262_s22 = int_to_ptr.hbm [resolvable:$true] %s261_s22 }
   0x5   :  { %v421_v6 = vld [vmem:[%s503_s3] sm:$0xff]  ;;  %321 = vset.pattern.permute.xlu1 %v367_v7  ;;  %v448_v34 = vld [vmem:[%s503_s3 + $0x8] sm:$0xff]  ;;  %v462_v37 = vld [vmem:[%s503_s3 + $0x10] sm:$0xff]  ;;  %vm148_vm3 = vcmp.ne.s32.totalorder %v457_v36, 4294967196  ;;  %v154_v43 = vand.u32 127, %v153_v41  ;;  %s369_s3 = smov [#allocation2]  }
   0x6   :  { %83 = vmatpush.bf16.msra.mxu0 %v310_v1  ;;  %313 = vmatpush.bf16.msra.mxu1 %v310_v1  ;;  %vm145_vm1 = vcmp.ne.s32.totalorder %v421_v6, 4294967196  ;;  %v322_v9 = vld [vmem:[%s502_s2] ss:$0 sm:$0xff]  ;;  %vm146_vm2 = vcmp.ne.s32.totalorder %v448_v34, 4294967196  ;;  %vm147_vm4 = vcmp.ne.s32.totalorder %v462_v37, 4294967196  ;;  %v152_v38 = vsel %vm148_vm3, %v457_v36, 0 }
   0x7   :  { %v149_v8 = vsel %vm145_vm1, %v421_v6, 0  ;;  %v150_v35 = vsel %vm146_vm2, %v448_v34, 0  ;;  %v151_v39 = vsel %vm147_vm4, %v462_v37, 0  ;;  %s259_s19 = sshll.u32 %s369_s3, 4  ;;  %vm250_vm14 = vcmask 0   ;;  %s260_s19 = int_to_ptr.vmem [resolvable:$true] %s259_s19 }
   0x8   :  { %156 = vperm.xlu2 %319, %v149_v8   ;;  %v302_v8 = vsel %vm145_vm1, 1.0, %v368_v50 }
   0xa   :  { %84 = vmatpush.bf16.msra.mxu0 %v309_v2  ;;  %314 = vmatpush.bf16.msra.mxu1 %v309_v2 }
   0xe   :  { %85 = vmatpush.bf16.msra.mxu0 %v308_v3  ;;  %315 = vmatpush.bf16.msra.mxu1 %v308_v3 }
  0x11   :  { %296 = vmatmul.msk.bf16.vlgmr.msra.gmra.mxu0 %vm71_vm0, %v306_v4  ;;  %297 = vmatmul.msk.bf16.vlgmr.msra.gmra.mxu1 %vm71_vm0, %v307_v5 }
  0x62   :  { %v157_v40 = vpop.permute.xlu2 %156 }
  0x63   :  { %vm167_vm5 = vcmp.eq.s32.totalorder %v154_v43, %v157_v40 }
  0x64   :  { %v298_v51 = vsel %vm167_vm5, 1.0, %v368_v50 }
  0x8e   :  { %v87_v10 = vpop.f32.mrf.mxu0  ;;  %v92_v11 = vpop.f32.mrf.mxu1 }
  0x8f   :  { %v88_v12 = vadd.f32 %v322_v9, %v87_v10  ;;  %v93_v13 = vadd.f32 %v322_v9, %v92_v11  ;;  %v221_v10 = vsel %vm199_vm9, %v302_v8, 0.0 }
  0x91   :  { %97 = vst [vmem:[%s504_s4] sm:$0xff] %v88_v12  ;;  %105 = vmax.xlane.f32.xlu1 %v93_v13  ;;  %101 = vmax.xlane.f32.xlu0 %v88_v12 }
  0x92   :  { %99 = vst [vmem:[%s504_s4 + $0x10] sm:$0xff] %v93_v13 }
  0x96   :  { %v89_v14 = vpop.f32.mrf.mxu0  ;;  %v94_v15 = vpop.f32.mrf.mxu1 }
  0x97   :  { %v90_v16 = vadd.f32 %v322_v9, %v89_v14  ;;  %v95_v17 = vadd.f32 %v322_v9, %v94_v15  ;;  %v303_v9 = vsel %vm146_vm2, 1.0, %v368_v50  ;;  %v305_v15 = vsel %vm148_vm3, 1.0, %v368_v50 }
  0x98   :  { %v222_v11 = vsel %vm199_vm9, %v303_v9, 0.0 }
  0x99   :  { %98 = vst [vmem:[%s504_s4 + $0x8] sm:$0xff] %v90_v16  ;;  %107 = vmax.xlane.f32.xlu1 %v95_v17  ;;  %103 = vmax.xlane.f32.xlu0 %v90_v16 }
  0x9a   :  { %100 = vst [vmem:[%s504_s4 + $0x18] sm:$0xff] %v95_v17 }
 0x104   :  { %v106_v18 = vpop.xlane.xlu1 %105  ;;  %v102_v19 = vpop.xlane.xlu0 %101 }
 0x105   :  { %v442_v20 = vsub.f32 %v93_v13, %v106_v18  ;;  %v109_v21 = vsub.f32 %v88_v12, %v102_v19  ;;  %v304_v12 = vsel %vm147_vm4, 1.0, %v368_v50  ;;  %v223_v13 = vadd.f32 %v222_v11, %v221_v10 }
 0x106   :  { %v224_v14 = vsel %vm199_vm9, %v304_v12, 0.0 }
 0x107   :  { %v117_v22 = vmul.f32 1.442695, %v442_v20  ;;  %v113_v23 = vmul.f32 1.442695, %v109_v21 }
 0x109   :  { %323 = vpow2.f32 %v117_v22 }
 0x10a   :  { %325 = vpow2.f32 %v113_v23 }
 0x10c   :  { %v108_v24 = vpop.xlane.xlu1 %107  ;;  %v104_v25 = vpop.xlane.xlu0 %103 }
 0x10d   :  { %v112_v26 = vsub.f32 %v95_v17, %v108_v24  ;;  %v110_v27 = vsub.f32 %v90_v16, %v104_v25  ;;  %v225_v16 = vadd.f32 %v224_v14, %v223_v13  ;;  %v226_v17 = vsel %vm199_vm9, %v305_v15, 0.0 }
 0x10f   :  { %v324_v28 = vpop.eup %323  ;;  %v119_v29 = vmul.f32 1.442695, %v112_v26  ;;  %v115_v30 = vmul.f32 1.442695, %v110_v27  ;;  %v227_v18 = vadd.f32 %v226_v17, %v225_v16 }
 0x110   :  { %v326_v31 = vpop.eup %325  ;;  %125 = vadd.xlane.f32.xlu0 %v324_v28 }
 0x111   :  { %327 = vpow2.f32 %v119_v29  ;;  %121 = vadd.xlane.f32.xlu2 %v326_v31  ;;  %v228_v19 = vrot.slane %v227_v18, 4 }
 0x112   :  { %329 = vpow2.f32 %v115_v30 }
 0x117   :  { %v328_v32 = vpop.eup %327 }
 0x118   :  { %v330_v33 = vpop.eup %329  ;;  %127 = vadd.xlane.f32.xlu1 %v328_v32 }
 0x119   :  { %123 = vadd.xlane.f32.xlu2 %v330_v33 }
 0x124   :  { %159 = vperm.xlu0 %320, %v150_v35  }
 0x131   :  { %165 = vperm.xlu2 %319, %v152_v38   ;;  %162 = vperm.xlu1 %321, %v151_v39  }
 0x183   :  { %v126_v48 = vpop.xlane.xlu0 %125 }
 0x184   :  { %v122_v42 = vpop.xlane.xlu2 %121 }
 0x185   :  { %331 = vlog2.f32 %v122_v42 }
 0x18b   :  { %v332_v44 = vpop.eup %331  ;;  %v128_v45 = vpop.xlane.xlu1 %127 }
 0x18c   :  { %v130_v46 = vmul.f32 0.6931472, %v332_v44  ;;  %333 = vlog2.f32 %v128_v45  ;;  %v124_v47 = vpop.xlane.xlu2 %123 }
 0x18d   :  { %335 = vlog2.f32 %v124_v47 }
 0x18e   :  { %v137_v49 = vsub.f32 %v109_v21, %v130_v46  ;;  %337 = vlog2.f32 %v126_v48 }
 0x190   :  { %v179_v52 = vmul.f32 %v298_v51, %v137_v49 }
 0x192   :  { %v334_v53 = vpop.eup %333  ;;  %183 = vadd.xlane.f32.xlu2 %v179_v52 }
 0x193   :  { %v336_v54 = vpop.eup %335  ;;  %v136_v55 = vmul.f32 0.6931472, %v334_v53 }
 0x194   :  { %v132_v56 = vmul.f32 0.6931472, %v336_v54  ;;  %v166_v57 = vpop.permute.xlu2 %165  ;;  %v338_v1 = vpop.eup %337 }
 0x195   :  { %vm170_vm6 = vcmp.eq.s32.totalorder %v154_v43, %v166_v57  ;;  %v140_v58 = vsub.f32 %v112_v26, %v136_v55  ;;  %v134_v2 = vmul.f32 0.6931472, %v338_v1 }
 0x196   :  { %v301_v59 = vsel %vm170_vm6, 1.0, %v368_v50  ;;  %v160_v60 = vpop.permute.xlu0 %159  ;;  %v138_v62 = vsub.f32 %v110_v27, %v132_v56 }
 0x197   :  { %vm168_vm7 = vcmp.eq.s32.totalorder %v154_v43, %v160_v60  ;;  %v182_v61 = vmul.f32 %v301_v59, %v140_v58  ;;  %v139_v4 = vsub.f32 %v442_v20, %v134_v2  ;;  %v229_v20 = vadd.f32 %v228_v19, %v227_v18 }
 0x198   :  { %v299_v63 = vsel %vm168_vm7, 1.0, %v368_v50 }
 0x199   :  { %v180_v0 = vmul.f32 %v299_v63, %v138_v62  ;;  %v230_v21 = vrot.slane %v229_v20, 2 }
 0x19a   :  { %189 = vadd.xlane.f32.xlu2 %v182_v61 }
 0x19b   :  { %185 = vadd.xlane.f32.xlu1 %v180_v0  ;;  %v231_v22 = vadd.f32 %v230_v21, %v229_v20 }
 0x19d   :  { %v232_v23 = vrot.slane %v231_v22, 1 }
 0x19f   :  { %v233_v24 = vadd.f32 %v232_v23, %v231_v22 }
 0x1a1   :  { %v234_v25 = vmax.f32 %v233_v24, 1.0 }
 0x1a3   :  { %v163_v3 = vpop.permute.xlu1 %162  ;;  %339 = vrcp.f32 %v234_v25  ;;  %vm240_vm10 = vweird.f32 %v234_v25  ;;  %v246_v51 = vand.u32 2147483648, %v234_v25  ;;  %v244_v36 = vand.u32 2147483647, %v234_v25 }
 0x1a4   :  { %vm169_vm8 = vcmp.eq.s32.totalorder %v154_v43, %v163_v3 }
 0x1a5   :  { %v300_v5 = vsel %vm169_vm8, 1.0, %v368_v50  ;;  %v247_v55 = vor.u32 1.1754944e-38, %v246_v51  ;;  %vm245_vm13 = vcmp.eq.f32.partialorder %v244_v36, 8.507059e+37 }
 0x1a6   :  { %v181_v7 = vmul.f32 %v300_v5, %v139_v4 }
 0x1a8   :  { %187 = vadd.xlane.f32.xlu0 %v181_v7 }
 0x1a9   :  { %v340_v30 = vpop.eup %339 }
 0x1aa   :  { %v236_v38 = vmul.f32 %v340_v30, %v234_v25  ;;  %vm241_vm11 = vweird.f32 %v340_v30 }
 0x1ab   :  { %vm242_vm12 = vmor %vm240_vm10, %vm241_vm11 }
 0x1ac   :  { %v237_v34 = vsub.f32 1.0, %v236_v38 }
 0x1ae   :  { %v238_v49 = vmul.f32 %v340_v30, %v237_v34 }
 0x1b0   :  { %v239_v53 = vadd.f32 %v340_v30, %v238_v49 }
 0x1b2   :  { %v243_v56 = vsel %vm242_vm12, %v340_v30, %v239_v53 }
 0x1b3   :  { %v248_v58 = vsel %vm245_vm13, %v247_v55, %v243_v56 }
 0x205   :  { %v184_v26 = vpop.xlane.xlu2 %183 }
 0x206   :  { %v191_v29 = vsub.f32 0.0, %v184_v26 }
 0x208   :  { %v195_v33 = vsel %vm145_vm1, %v191_v29, 0.0 }
 0x209   :  { %v200_v42 = vsel %vm199_vm9, %v195_v33, 0.0 }
 0x20d   :  { %v190_v31 = vpop.xlane.xlu2 %189 }
 0x20e   :  { %v186_v27 = vpop.xlane.xlu1 %185  ;;  %v194_v35 = vsub.f32 0.0, %v190_v31 }
 0x20f   :  { %v192_v28 = vsub.f32 0.0, %v186_v27 }
 0x210   :  { %v198_v43 = vsel %vm148_vm3, %v194_v35, 0.0 }
 0x211   :  { %v196_v32 = vsel %vm146_vm2, %v192_v28, 0.0  ;;  %v205_v47 = vsel %vm199_vm9, %v198_v43, 0.0 }
 0x212   :  { %v201_v39 = vsel %vm199_vm9, %v196_v32, 0.0 }
 0x213   :  { %v202_v44 = vadd.f32 %v201_v39, %v200_v42 }
 0x21b   :  { %v188_v40 = vpop.xlane.xlu0 %187 }
 0x21c   :  { %v193_v41 = vsub.f32 0.0, %v188_v40 }
 0x21e   :  { %v197_v45 = vsel %vm147_vm4, %v193_v41, 0.0 }
 0x21f   :  { %v203_v46 = vsel %vm199_vm9, %v197_v45, 0.0 }
 0x220   :  { %v204_v6 = vadd.f32 %v203_v46, %v202_v44 }
 0x222   :  { %v206_v48 = vadd.f32 %v205_v47, %v204_v6 }
 0x224   :  { %v207_v50 = vrot.slane %v206_v48, 4 }
 0x226   :  { %v208_v52 = vadd.f32 %v207_v50, %v206_v48 }
 0x228   :  { %v209_v54 = vrot.slane %v208_v52, 2 }
 0x22a   :  { %v210_v37 = vadd.f32 %v209_v54, %v208_v52 }
 0x22c   :  { %v211_v57 = vrot.slane %v210_v37, 1 }
 0x22e   :  { %v212_v59 = vadd.f32 %v211_v57, %v210_v37 }
 0x230   :  { %v249_v60 = vmul.f32 %v248_v58, %v212_v59 }
 0x232   :  { %251 = vst.msk [vmem:[#allocation2] sm:$0x1] %vm250_vm14, %v249_v60 }
 0x233   :  { %264 = dma.vmem_to_hbm [thread:$0]  %s260_s19, 16, %s262_s22, [#allocation3]  }
 0x234   :  { %365 = dma.done.wait [#allocation3], 16  }
 0x235   :  { %366 = vsyncadd [#allocation3], 4294967280 }
 0x236   :  { %271 = vsyncpa [#allocation3], 1 }

// kernel: bert_forward.3
= control target key start
LH: loop header
LB: loop body
LE: loop exit
PB: predicated region body
PF: predicated region fallthrough
CT: control target
= control target key end

     0   :  { %vm64_vm0 = vcmask 523264   ;;  %v1714_v10 = vmov 64.0   ;;  %s1717_s17 = smov 96   ;;  %vm297_vm14 = vcmask 130048   ;;  %s1718_s20 = smov 48   ;;  %s2259_s0 = inlined_call_operand.vmem [shape: bf16[32,64], index: 0, kind: input, shape index: {}, may-alias: {0,16}]   ;;  %s2260_s2 = inlined_call_operand.vmem [shape: f32[1,64], index: 2, kind: input, shape index: {}]   ;;  %s2261_s3 = inlined_call_operand.vmem [shape: f32[1,64], index: 3, kind: input, shape index: {}]   ;;  %s2262_s4 = inlined_call_operand.vmem [shape: bf16[64,192], index: 4, kind: input, shape index: {}]   ;;  %s2263_s5 = inlined_call_operand.vmem [shape: f32[1,192], index: 5, kind: input, shape index: {}]   ;;  %s2264_s1 = inlined_call_operand.vmem [shape: f32[2,16], index: 1, kind: input, shape index: {}]   ;;  %s2265_s6 = inlined_call_operand.vmem [shape: bf16[64,64], index: 6, kind: input, shape index: {}]   ;;  %s2266_s7 = inlined_call_operand.vmem [shape: f32[1,64], index: 7, kind: input, shape index: {}]   ;;  %s2267_s8 = inlined_call_operand.vmem [shape: f32[1,64], index: 8, kind: input, shape index: {}]   ;;  %s2268_s9 = inlined_call_operand.vmem [shape: f32[1,64], index: 9, kind: input, shape index: {}]   ;;  %s2269_s10 = inlined_call_operand.vmem [shape: bf16[64,128], index: 10, kind: input, shape index: {}]   ;;  %s2270_s11 = inlined_call_operand.vmem [shape: f32[1,128], index: 11, kind: input, shape index: {}]   ;;  %s2271_s12 = inlined_call_operand.vmem [shape: bf16[128,64], index: 12, kind: input, shape index: {}]   ;;  %s2272_s13 = inlined_call_operand.vmem [shape: f32[1,64], index: 13, kind: input, shape index: {}]   ;;  %s2273_s14 = inlined_call_operand.vmem [shape: f32[1,64], index: 14, kind: input, shape index: {}]   ;;  %s2274_s15 = inlined_call_operand.vmem [shape: f32[1,64], index: 15, kind: input, shape index: {}]   ;;  %s2275_s16 = inlined_call_operand.vmem [shape: bf16[32,64], index: 16, kind: output, shape index: {}, may-alias: {0,16}]  }
   0x1   :  { %2277 = sst [smem:[#allocation2_spill]] %s2259_s0  ;;  %1616 = vrcp.f32 %v1714_v10  ;;  %v1466_v37 = vld [vmem:[%s2262_s4 + $0x30] sm:$0xf]  ;;  %v1573_v38 = vld [vmem:[%s2262_s4 + $0x34] sm:$0xf0]  ;;  %s1716_s0 = smov 32  }
   0x2   :  { %s2278_s23 = sld [smem:[#allocation2_spill]]  ;;  %v1572_v39 = vld [vmem:[%s2262_s4 + $0x34] sm:$0xf]  ;;  %v1467_v40 = vor.u32 %v1573_v38, %v1466_v37  ;;  %v1468_v41 = vld [vmem:[%s2262_s4 + $0x38] sm:$0xf0]  ;;  %s1719_s21 = smov 112  }
   0x3   :  { %v1471_v42 = vor.u32 %v1572_v39, %v1468_v41  ;;  %v1458_v43 = vld [vmem:[%s2262_s4 + $0x20] sm:$0xf]  ;;  %v1571_v44 = vld [vmem:[%s2262_s4 + $0x24] sm:$0xf0]  ;;  %v1570_v45 = vld [vmem:[%s2262_s4 + $0x24] sm:$0xf] }
   0x4   :  { %240 = vmatpush.bf16.msra.mxu0 %v1467_v40  ;;  %v1459_v46 = vor.u32 %v1571_v44, %v1458_v43  ;;  %v1460_v47 = vld [vmem:[%s2262_s4 + $0x28] sm:$0xf0]  ;;  %v1450_v49 = vld [vmem:[%s2262_s4 + $0x10] sm:$0xf]  ;;  %v1569_v50 = vld [vmem:[%s2262_s4 + $0x14] sm:$0xf0] }
   0x5   :  { %259 = vmatpush.bf16.msra.mxu1 %v1471_v42  ;;  %v1463_v48 = vor.u32 %v1570_v45, %v1460_v47  ;;  %v1568_v51 = vld [vmem:[%s2262_s4 + $0x14] sm:$0xf]  ;;  %v1451_v52 = vor.u32 %v1569_v50, %v1450_v49  ;;  %v1452_v53 = vld [vmem:[%s2262_s4 + $0x18] sm:$0xf0]  ;;  %v1442_v55 = vld [vmem:[%s2262_s4] sm:$0xf] }
   0x6   :  { %v1455_v54 = vor.u32 %v1568_v51, %v1452_v53  ;;  %v1567_v56 = vld [vmem:[%s2262_s4 + $0x4] sm:$0xf0]  ;;  %v1566_v57 = vld [vmem:[%s2262_s4 + $0x4] sm:$0xf]  ;;  %v1444_v60 = vld [vmem:[%s2262_s4 + $0x8] sm:$0xf0] }
   0x7   :  { %v1617_v11 = vpop.eup %1616  ;;  %v1443_v59 = vor.u32 %v1567_v56, %v1442_v55  ;;  %v1447_v62 = vor.u32 %v1566_v57, %v1444_v60  ;;  %v184_v56 = vld [vmem:[%s2263_s5] sm:$0x3]  ;;  %s1715_s5 = smov 64   ;;  %s1720_s22 = smov 16  }
   0x8   :  { %v1591_v0 = vld [vmem:[%s2278_s23] sm:$0xff]   ;;  %v1598_v1 = vld [vmem:[%s2278_s23 + $0x8] sm:$0xff]   ;;  %v78_v12 = vmul.f32 64.0, %v1617_v11  ;;  %vm82_vm1 = vweird.f32 %v1617_v11  ;;  %241 = vmatpush.bf16.msra.mxu0 %v1459_v46  ;;  %s1721_s25 = smov 80  }
   0x9   :  { %v1592_v2 = vunpack.c.l.bf16 %v1591_v0  ;;  %v1596_v3 = vunpack.c.l.bf16 %v1598_v1  ;;  %v1593_v6 = vunpack.c.h.bf16 %v1591_v0  ;;  %v1597_v7 = vunpack.c.h.bf16 %v1598_v1  ;;  %260 = vmatpush.bf16.msra.mxu1 %v1463_v48 }
   0xa   :  { %v79_v13 = vsub.f32 1.0, %v78_v12 }
   0xb   :  { %v65_v4 = vsel %vm64_vm0, %v1592_v2, 0.0  ;;  %v71_v5 = vsel %vm64_vm0, %v1596_v3, 0.0  ;;  %v68_v8 = vsel %vm64_vm0, %v1593_v6, 0.0  ;;  %v74_v9 = vsel %vm64_vm0, %v1597_v7, 0.0 }
   0xc   :  { %66 = vadd.xlane.f32.xlu0 %v65_v4  ;;  %72 = vadd.xlane.f32.xlu2 %v71_v5  ;;  %v80_v14 = vmul.f32 %v1617_v11, %v79_v13 }
   0xd   :  { %242 = vmatpush.bf16.msra.mxu0 %v1451_v52  ;;  %261 = vmatpush.bf16.msra.mxu1 %v1455_v54 }
   0xe   :  { %v81_v15 = vadd.f32 %v1617_v11, %v80_v14 }
  0x10   :  { %v1817_v16 = vsel %vm82_vm1, %v1617_v11, %v81_v15 }
  0x11   :  { %243 = vmatpush.bf16.msra.mxu0 %v1443_v59  ;;  %262 = vmatpush.bf16.msra.mxu1 %v1447_v62 }
  0x14   :  { %69 = vadd.xlane.f32.xlu0 %v68_v8  ;;  %75 = vadd.xlane.f32.xlu2 %v74_v9 }
  0x7f   :  { %v67_v17 = vpop.xlane.xlu0 %66  ;;  %v73_v18 = vpop.xlane.xlu2 %72 }
  0x80   :  { %v84_v19 = vmul.f32 %v1817_v16, %v67_v17  ;;  %v86_v20 = vmul.f32 %v1817_v16, %v73_v18 }
  0x82   :  { %v1821_v21 = vsub.f32 %v1592_v2, %v84_v19  ;;  %v1823_v22 = vsub.f32 %v1596_v3, %v86_v20 }
  0x84   :  { %v92_v23 = vmul.f32 %v1821_v21, %v1821_v21  ;;  %v94_v24 = vmul.f32 %v1823_v22, %v1823_v22 }
  0x86   :  { %v96_v25 = vsel %vm64_vm0, %v92_v23, 0.0  ;;  %v102_v26 = vsel %vm64_vm0, %v94_v24, 0.0 }
  0x87   :  { %97 = vadd.xlane.f32.xlu1 %v96_v25  ;;  %v70_v27 = vpop.xlane.xlu0 %69  ;;  %v76_v28 = vpop.xlane.xlu2 %75  ;;  %103 = vadd.xlane.f32.xlu0 %v102_v26 }
  0x88   :  { %v85_v29 = vmul.f32 %v1817_v16, %v70_v27  ;;  %v87_v30 = vmul.f32 %v1817_v16, %v76_v28 }
  0x8a   :  { %v1833_v31 = vsub.f32 %v1593_v6, %v85_v29  ;;  %v1837_v33 = vsub.f32 %v1597_v7, %v87_v30  ;;  %v1607_v30 = vld [vmem:[%s2260_s2] ss:$0 sm:$0xff] }
  0x8c   :  { %v93_v32 = vmul.f32 %v1833_v31, %v1833_v31  ;;  %v95_v35 = vmul.f32 %v1837_v33, %v1837_v33 }
  0x8e   :  { %v99_v34 = vsel %vm64_vm0, %v93_v32, 0.0  ;;  %v105_v36 = vsel %vm64_vm0, %v95_v35, 0.0 }
  0x8f   :  { %100 = vadd.xlane.f32.xlu1 %v99_v34 }
  0x97   :  { %106 = vadd.xlane.f32.xlu1 %v105_v36 }
  0xfa   :  { %v98_v58 = vpop.xlane.xlu1 %97  ;;  %v104_v0 = vpop.xlane.xlu0 %103 }
  0xfb   :  { %v108_v61 = vmul.f32 %v98_v58, %v1817_v16  ;;  %v110_v2 = vmul.f32 %v104_v0, %v1817_v16  ;;  %v187_v58 = vperm.slane %v184_v56, 1 }
  0xfd   :  { %v112_v63 = vadd.f32 1e-12, %v108_v61  ;;  %v114_v4 = vadd.f32 1e-12, %v110_v2 }
  0xff   :  { %1618 = vrsqrt.f32 %v112_v63  ;;  %vm122_vm3 = vweird.f32 %v112_v63  ;;  %vm142_vm8 = vweird.f32 %v114_v4 }
 0x100   :  { %1620 = vrsqrt.f32 %v114_v4 }
 0x102   :  { %v101_v1 = vpop.xlane.xlu1 %100 }
 0x103   :  { %v109_v3 = vmul.f32 %v101_v1, %v1817_v16 }
 0x105   :  { %v1619_v5 = vpop.eup %1618  ;;  %v113_v6 = vadd.f32 1e-12, %v109_v3 }
 0x106   :  { %v117_v7 = vmul.f32 %v1619_v5, %v112_v63  ;;  %v1621_v12 = vpop.eup %1620  ;;  %vm123_vm2 = vweird.f32 %v1619_v5 }
 0x107   :  { %1622 = vrsqrt.f32 %v113_v6  ;;  %v137_v17 = vmul.f32 %v1621_v12, %v114_v4  ;;  %vm124_vm4 = vmor %vm122_vm3, %vm123_vm2  ;;  %vm132_vm6 = vweird.f32 %v113_v6  ;;  %vm143_vm9 = vweird.f32 %v1621_v12 }
 0x108   :  { %v118_v8 = vmul.f32 %v1619_v5, %v117_v7  ;;  %vm144_vm12 = vmor %vm142_vm8, %vm143_vm9 }
 0x109   :  { %v138_v20 = vmul.f32 %v1621_v12, %v137_v17 }
 0x10a   :  { %v119_v9 = vmul.f32 0.5, %v118_v8  ;;  %v107_v10 = vpop.xlane.xlu1 %106 }
 0x10b   :  { %v111_v11 = vmul.f32 %v107_v10, %v1817_v16  ;;  %v139_v26 = vmul.f32 0.5, %v138_v20 }
 0x10c   :  { %v120_v13 = vsub.f32 1.5, %v119_v9 }
 0x10d   :  { %v1623_v14 = vpop.eup %1622  ;;  %v115_v15 = vadd.f32 1e-12, %v111_v11  ;;  %v140_v35 = vsub.f32 1.5, %v139_v26 }
 0x10e   :  { %v121_v18 = vmul.f32 %v1619_v5, %v120_v13  ;;  %v127_v19 = vmul.f32 %v1623_v14, %v113_v6  ;;  %vm133_vm5 = vweird.f32 %v1623_v14 }
 0x10f   :  { %1624 = vrsqrt.f32 %v115_v15  ;;  %vm134_vm7 = vmor %vm132_vm6, %vm133_vm5  ;;  %vm152_vm10 = vweird.f32 %v115_v15  ;;  %v141_v41 = vmul.f32 %v1621_v12, %v140_v35  ;;  %v286_v35 = vld [vmem:[%s2264_s1] sm:$0x1] }
 0x110   :  { %v128_v23 = vmul.f32 %v1623_v14, %v127_v19  ;;  %v125_v24 = vsel %vm124_vm4, %v1619_v5, %v121_v18 }
 0x111   :  { %v156_v29 = vmul.f32 %v125_v24, %v1821_v21  ;;  %v1608_v21 = vld [vmem:[%s2261_s3] ss:$0 sm:$0xff]  ;;  %v145_v47 = vsel %vm144_vm12, %v1621_v12, %v141_v41 }
 0x112   :  { %v129_v25 = vmul.f32 0.5, %v128_v23  ;;  %v158_v50 = vmul.f32 %v145_v47, %v1823_v22  ;;  %v186_v22 = vperm.slane %v184_v56, 0 }
 0x113   :  { %v163_v39 = vmul.f32 %v1607_v30, %v156_v29 }
 0x114   :  { %v130_v27 = vsub.f32 1.5, %v129_v25  ;;  %v165_v51 = vmul.f32 %v1607_v30, %v158_v50 }
 0x115   :  { %v1625_v28 = vpop.eup %1624  ;;  %v1903_v44 = vadd.f32 %v1608_v21, %v163_v39 }
 0x116   :  { %v131_v32 = vmul.f32 %v1623_v14, %v130_v27  ;;  %v147_v34 = vmul.f32 %v1625_v28, %v115_v15  ;;  %vm153_vm11 = vweird.f32 %v1625_v28  ;;  %v1913_v53 = vadd.f32 %v1608_v21, %v165_v51 }
 0x117   :  { %vm154_vm13 = vmor %vm152_vm10, %vm153_vm11 }
 0x118   :  { %v135_v36 = vsel %vm134_vm7, %v1623_v14, %v131_v32  ;;  %v148_v37 = vmul.f32 %v1625_v28, %v147_v34 }
 0x119   :  { %v157_v38 = vmul.f32 %v135_v36, %v1833_v31  ;;  %v287_v36 = vsub.f32 1.0, %v286_v35 }
 0x11a   :  { %v149_v40 = vmul.f32 0.5, %v148_v37 }
 0x11b   :  { %v164_v42 = vmul.f32 %v1607_v30, %v157_v38  ;;  %v288_v37 = vmul.f32 -1e+09, %v287_v36 }
 0x11c   :  { %v150_v43 = vsub.f32 1.5, %v149_v40 }
 0x11d   :  { %v1905_v45 = vadd.f32 %v1608_v21, %v164_v42  ;;  %v1947_v38 = vperm.slane %v288_v37, 0 }
 0x11e   :  { %v151_v46 = vmul.f32 %v1625_v28, %v150_v43 }
 0x11f   :  { %v174_v31 = vpack.c.bf16 %v1905_v45, %v1903_v44 }
 0x120   :  { %v155_v48 = vsel %vm154_vm13, %v1625_v28, %v151_v46 }
 0x121   :  { %1472 = vmatmul.msk.bf16.vlgmr.msra.gmra.mxu0 %vm64_vm0, %v174_v31  ;;  %1474 = vmatmul.msk.bf16.vlgmr.msra.gmra.mxu1 %vm64_vm0, %v174_v31  ;;  %v159_v49 = vmul.f32 %v155_v48, %v1837_v33 }
 0x123   :  { %v166_v52 = vmul.f32 %v1607_v30, %v159_v49 }
 0x125   :  { %v1915_v54 = vadd.f32 %v1608_v21, %v166_v52 }
 0x127   :  { %v175_v55 = vpack.c.bf16 %v1915_v54, %v1913_v53 }
 0x131   :  { %1473 = vmatmul.msk.bf16.gmra.mxu0 %vm64_vm0, %v175_v55  ;;  %1475 = vmatmul.msk.bf16.gmra.mxu1 %vm64_vm0, %v175_v55 }
 0x19e   :  { %v245_v33 = vpop.f32.mrf.mxu0  ;;  %v264_v57 = vpop.f32.mrf.mxu1 }
 0x19f   :  { %v246_v59 = vadd.f32 %v245_v33, %v186_v22  ;;  %v265_v60 = vadd.f32 %v264_v57, %v187_v58 }
 0x1a1   :  { %v274_v63 = vpack.c.bf16 %v265_v60, %v246_v59 }
 0x1a3   :  { %v292_v3 = vunpack.c.l.b16 %v274_v63  ;;  %v341_v4 = vunpack.c.h.b16 %v274_v63 }
 0x1a6   :  { %v247_v61 = vpop.f32.mrf.mxu0  ;;  %v266_v62 = vpop.f32.mrf.mxu1 }
 0x1a7   :  { %v248_v0 = vadd.f32 %v247_v61, %v186_v22  ;;  %v267_v1 = vadd.f32 %v266_v62, %v187_v58 }
 0x1a9   :  { %v275_v2 = vpack.c.bf16 %v267_v1, %v248_v0 }
 0x1ab   :  { %v293_v5 = vunpack.c.l.b16 %v275_v2  ;;  %v342_v6 = vunpack.c.h.b16 %v275_v2 }
 0x1ad   :  { %v1924_v7 = vpack.c.b16 %v293_v5, %v292_v3  ;;  %v1926_v8 = vpack.c.b16 %v342_v6, %v341_v4  ;;  %v1971_v4 = vld [vmem:[%s2265_s6] sm:$0xff] }
 0x1ae   :  { %v250_v9 = vpop.f32.mrf.mxu0  ;;  %v269_v10 = vpop.f32.mrf.mxu1  ;;  %470 = vmatpush.bf16.msra.mxu2 %v1971_v4 }
 0x1af   :  { %355 = vmatpush.bf16.msra.mxu3 %v1926_v8  ;;  %295 = vrot.lane.b32.xlu2 %v1924_v7, %s1715_s5  ;;  %v251_v11 = vadd.f32 %v250_v9, %v186_v22  ;;  %v270_v12 = vadd.f32 %v269_v10, %v187_v58 }
 0x1b1   :  { %v276_v13 = vpack.c.bf16 %v270_v12, %v251_v11 }
 0x1b3   :  { %v669_v19 = vunpack.c.l.b16 %v276_v13  ;;  %v717_v20 = vunpack.c.h.b16 %v276_v13 }
 0x1b6   :  { %v252_v14 = vpop.f32.mrf.mxu0  ;;  %v271_v15 = vpop.f32.mrf.mxu1 }
 0x1b7   :  { %479 = vrot.lane.b32.xlu2 %v1924_v7, %s1716_s0  ;;  %v253_v17 = vadd.f32 %v252_v14, %v186_v22  ;;  %v272_v18 = vadd.f32 %v271_v15, %v187_v58 }
 0x1b9   :  { %v277_v23 = vpack.c.bf16 %v272_v18, %v253_v17 }
 0x1bb   :  { %v670_v24 = vunpack.c.l.b16 %v277_v23  ;;  %v718_v25 = vunpack.c.h.b16 %v277_v23 }
 0x1bd   :  { %v1933_v26 = vpack.c.b16 %v670_v24, %v669_v19  ;;  %v1935_v27 = vpack.c.b16 %v718_v25, %v717_v20 }
 0x1bf   :  { %477 = vrot.lane.b32.xlu2 %v1924_v7, %s1717_s17 }
 0x209   :  { %v296_v28 = vpop.permute.xlu2 %295 }
 0x20a   :  { %v302_v29 = vsel %vm297_vm14, %v296_v28, 0 }
 0x20b   :  { %311 = vmatpush.bf16.xpose.msrb.mxu0 %v302_v29 }
 0x211   :  { %v480_v30 = vpop.permute.xlu2 %479 }
 0x212   :  { %v485_v32 = vsel %vm297_vm14, %v480_v30, 0  ;;  %1476 = vmatmul.msk.bf16.vlgmr.msrb.gmra.mxu0 %vm297_vm14, %v1924_v7 }
 0x213   :  { %494 = vmatpush.bf16.xpose.msra.mxu0 %v485_v32 }
 0x219   :  { %v478_v34 = vpop.permute.xlu2 %477 }
 0x222   :  { %1490 = vmatmul.msk.bf16.vlgmr.msra.gmra.mxu0 %vm297_vm14, %v478_v34 }
 0x28f   :  { %v313_v39 = vpop.f32.mrf.mxu0 }
 0x290   :  { %v314_v21 = vadd.f32 %v313_v39, %v1947_v38 }
 0x292   :  { %v318_v40 = vsel %vm297_vm14, %v314_v21, -inf }
 0x293   :  { %319 = vmax.xlane.f32.xlu0 %v318_v40 }
 0x297   :  { %v315_v41 = vpop.f32.mrf.mxu0 }
 0x298   :  { %v316_v42 = vadd.f32 %v315_v41, %v1947_v38 }
 0x29a   :  { %v321_v43 = vsel %vm297_vm14, %v316_v42, -inf }
 0x29b   :  { %322 = vmax.xlane.f32.xlu1 %v321_v43 }
 0x29f   :  { %v496_v33 = vpop.f32.mrf.mxu0 }
 0x2a0   :  { %v497_v57 = vadd.f32 %v496_v33, %v1947_v38 }
 0x2a2   :  { %v501_v22 = vsel %vm297_vm14, %v497_v57, -inf }
 0x2a7   :  { %v498_v18 = vpop.f32.mrf.mxu0 }
 0x2a8   :  { %v499_v19 = vadd.f32 %v498_v18, %v1947_v38 }
 0x2aa   :  { %v504_v25 = vsel %vm297_vm14, %v499_v19, -inf }
 0x306   :  { %v320_v46 = vpop.xlane.xlu0 %319 }
 0x307   :  { %v324_v47 = vsub.f32 %v314_v21, %v320_v46 }
 0x309   :  { %v326_v31 = vmul.f32 1.442695, %v324_v47 }
 0x30b   :  { %1626 = vpow2.f32 %v326_v31 }
 0x30e   :  { %v323_v48 = vpop.xlane.xlu1 %322 }
 0x30f   :  { %v325_v49 = vsub.f32 %v316_v42, %v323_v48 }
 0x311   :  { %v1627_v50 = vpop.eup %1626  ;;  %v328_v51 = vmul.f32 1.442695, %v325_v49 }
 0x312   :  { %v330_v52 = vsel %vm297_vm14, %v1627_v50, 0.0 }
 0x313   :  { %1628 = vpow2.f32 %v328_v51  ;;  %331 = vadd.xlane.f32.xlu0 %v330_v52 }
 0x319   :  { %v1629_v55 = vpop.eup %1628 }
 0x31a   :  { %v333_v56 = vsel %vm297_vm14, %v1629_v55, 0.0 }
 0x31b   :  { %334 = vadd.xlane.f32.xlu1 %v333_v56 }
 0x327   :  { %365 = vrot.lane.b32.xlu0 %v1924_v7, %s1718_s20 }
 0x334   :  { %363 = vrot.lane.b32.xlu1 %v1924_v7, %s1719_s21 }
 0x35e   :  { %502 = vmax.xlane.f32.xlu1 %v501_v22 }
 0x377   :  { %410 = vrot.lane.b32.xlu1 %v1926_v8, %s1719_s21 }
 0x37f   :  { %572 = vrot.lane.b32.xlu1 %v1924_v7, %s1720_s22 }
 0x386   :  { %v332_v58 = vpop.xlane.xlu0 %331 }
 0x387   :  { %1630 = vrcp.f32 %v332_v58 }
 0x38d   :  { %v1631_v60 = vpop.eup %1630 }
 0x38e   :  { %v335_v59 = vpop.xlane.xlu1 %334  ;;  %v338_v62 = vmul.f32 %v1631_v60, %v1627_v50 }
 0x38f   :  { %1632 = vrcp.f32 %v335_v59 }
 0x395   :  { %v1633_v61 = vpop.eup %1632 }
 0x396   :  { %v339_v63 = vmul.f32 %v1633_v61, %v1629_v55 }
 0x398   :  { %v340_v0 = vpack.c.bf16 %v339_v63, %v338_v62 }
 0x399   :  { %v366_v1 = vpop.permute.xlu0 %365 }
 0x39a   :  { %1477 = vmatmul.msk.bf16.vlgmr.msra.gmra.mxu3 %vm297_vm14, %v340_v0  ;;  %v371_v2 = vsel %vm297_vm14, %v366_v1, 0  ;;  %v1575_v1 = vld [vmem:[%s2265_s6 + $0x8] sm:$0xff] }
 0x39b   :  { %380 = vmatpush.bf16.xpose.msrb.mxu3 %v371_v2  ;;  %v1576_v2 = vld [vmem:[%s2265_s6 + $0x10] sm:$0xff] }
 0x3a3   :  { %447 = vmatpush.bf16.msra.mxu3 %v1575_v1 }
 0x3a6   :  { %v364_v3 = vpop.permute.xlu1 %363 }
 0x3aa   :  { %1478 = vmatmul.msk.bf16.vlgmr.msrb.gmra.mxu3 %vm297_vm14, %v364_v3 }
 0x3ab   :  { %561 = vmatpush.bf16.msrb.mxu3 %v1576_v2 }
 0x3d1   :  { %v503_v5 = vpop.xlane.xlu1 %502 }
 0x3d2   :  { %v507_v30 = vsub.f32 %v497_v57, %v503_v5 }
 0x3d4   :  { %v509_v34 = vmul.f32 1.442695, %v507_v30 }
 0x3e9   :  { %v411_v6 = vpop.permute.xlu1 %410 }
 0x3ea   :  { %423 = vmatpush.bf16.msrb.mxu1 %v411_v6 }
 0x3f1   :  { %v573_v9 = vpop.permute.xlu1 %572 }
 0x3f2   :  { %v578_v10 = vsel %vm297_vm14, %v573_v9, 0 }
 0x3f3   :  { %587 = vmatpush.bf16.xpose.msrb.mxu2 %v578_v10 }
 0x41d   :  { %v357_v11 = vpop.f32.mrf.mxu3 }
 0x425   :  { %v359_v12 = vpop.f32.mrf.mxu3 }
 0x426   :  { %v362_v13 = vpack.c.bf16 %v359_v12, %v357_v11 }
 0x428   :  { %1489 = vmatmul.msk.bf16.vlgmr.msra.gmra.mxu2 %vm297_vm14, %v362_v13 }
 0x429   :  { %731 = vmatpush.bf16.msra.mxu2 %v1935_v27 }
 0x42d   :  { %v382_v14 = vpop.f32.mrf.mxu3 }
 0x42e   :  { %v383_v15 = vadd.f32 %v382_v14, %v1947_v38 }
 0x430   :  { %v387_v17 = vsel %vm297_vm14, %v383_v15, -inf }
 0x431   :  { %388 = vmax.xlane.f32.xlu2 %v387_v17 }
 0x435   :  { %v384_v20 = vpop.f32.mrf.mxu3 }
 0x436   :  { %v385_v23 = vadd.f32 %v384_v20, %v1947_v38  ;;  %v663_v20 = vld [vmem:[%s2264_s1 + $0x1] sm:$0x1] }
 0x438   :  { %v390_v24 = vsel %vm297_vm14, %v385_v23, -inf }
 0x439   :  { %391 = vmax.xlane.f32.xlu0 %v390_v24  ;;  %505 = vmax.xlane.f32.xlu2 %v504_v25 }
 0x4a4   :  { %v389_v28 = vpop.xlane.xlu2 %388 }
 0x4a5   :  { %v393_v29 = vsub.f32 %v383_v15, %v389_v28 }
 0x4a7   :  { %v395_v32 = vmul.f32 1.442695, %v393_v29 }
 0x4a9   :  { %1634 = vpow2.f32 %v395_v32 }
 0x4aa   :  { %1636 = vpow2.f32 %v509_v34 }
 0x4ab   :  { %v472_v15 = vpop.f32.mrf.mxu2 }
 0x4ac   :  { %v392_v35 = vpop.xlane.xlu0 %391  ;;  %v506_v36 = vpop.xlane.xlu2 %505 }
 0x4ad   :  { %v394_v37 = vsub.f32 %v385_v23, %v392_v35  ;;  %v508_v40 = vsub.f32 %v499_v19, %v506_v36  ;;  %v664_v23 = vsub.f32 1.0, %v663_v20 }
 0x4af   :  { %v1635_v39 = vpop.eup %1634  ;;  %v397_v21 = vmul.f32 1.442695, %v394_v37  ;;  %v511_v42 = vmul.f32 1.442695, %v508_v40  ;;  %v665_v30 = vmul.f32 -1e+09, %v664_v23 }
 0x4b0   :  { %v399_v41 = vsel %vm297_vm14, %v1635_v39, 0.0  ;;  %v1637_v43 = vpop.eup %1636 }
 0x4b1   :  { %1638 = vpow2.f32 %v397_v21  ;;  %400 = vadd.xlane.f32.xlu0 %v399_v41  ;;  %v513_v31 = vsel %vm297_vm14, %v1637_v43, 0.0  ;;  %v2015_v32 = vperm.slane %v665_v30, 0 }
 0x4b2   :  { %1640 = vpow2.f32 %v511_v42 }
 0x4b3   :  { %v474_v24 = vpop.f32.mrf.mxu2 }
 0x4b7   :  { %v1639_v46 = vpop.eup %1638 }
 0x4b8   :  { %v402_v47 = vsel %vm297_vm14, %v1639_v46, 0.0  ;;  %v1641_v48 = vpop.eup %1640 }
 0x4b9   :  { %403 = vadd.xlane.f32.xlu2 %v402_v47  ;;  %514 = vadd.xlane.f32.xlu0 %v513_v31  ;;  %v516_v49 = vsel %vm297_vm14, %v1641_v48, 0.0 }
 0x4c1   :  { %517 = vadd.xlane.f32.xlu2 %v516_v49 }
 0x4cd   :  { %524 = vrot.lane.b32.xlu0 %v1926_v8, %s1717_s17 }
 0x4d5   :  { %570 = vrot.lane.b32.xlu0 %v1924_v7, %s1721_s25 }
 0x4d9   :  { %672 = vrot.lane.b32.xlu2 %v1933_v26, %s1715_s5 }
 0x524   :  { %v401_v50 = vpop.xlane.xlu0 %400 }
 0x525   :  { %1642 = vrcp.f32 %v401_v50 }
 0x52b   :  { %v1643_v52 = vpop.eup %1642 }
 0x52c   :  { %v404_v51 = vpop.xlane.xlu2 %403  ;;  %v407_v56 = vmul.f32 %v1643_v52, %v1635_v39  ;;  %v515_v57 = vpop.xlane.xlu0 %514 }
 0x52d   :  { %1644 = vrcp.f32 %v404_v51 }
 0x533   :  { %v1645_v55 = vpop.eup %1644 }
 0x534   :  { %v408_v33 = vmul.f32 %v1645_v55, %v1639_v46  ;;  %v518_v22 = vpop.xlane.xlu2 %517 }
 0x535   :  { %1646 = vrcp.f32 %v518_v22 }
 0x536   :  { %v409_v58 = vpack.c.bf16 %v408_v33, %v407_v56  ;;  %1648 = vrcp.f32 %v515_v57 }
 0x538   :  { %1479 = vmatmul.msk.bf16.vlgmr.msrb.gmra.mxu1 %vm297_vm14, %v409_v58 }
 0x53b   :  { %v1647_v7 = vpop.eup %1646 }
 0x53c   :  { %v1649_v60 = vpop.eup %1648  ;;  %v522_v61 = vmul.f32 %v1647_v7, %v1641_v48  ;;  %v673_v5 = vpop.permute.xlu2 %672 }
 0x53d   :  { %v521_v62 = vmul.f32 %v1649_v60, %v1637_v43  ;;  %v678_v10 = vsel %vm297_vm14, %v673_v5, 0 }
 0x53f   :  { %v525_v59 = vpop.permute.xlu0 %524  ;;  %v523_v63 = vpack.c.bf16 %v522_v61, %v521_v62 }
 0x540   :  { %537 = vmatpush.bf16.msra.mxu1 %v525_v59 }
 0x547   :  { %v571_v0 = vpop.permute.xlu0 %570 }
 0x548   :  { %1497 = vmatmul.msk.bf16.vlgmr.msrb.gmra.mxu2 %vm297_vm14, %v571_v0  ;;  %1491 = vmatmul.msk.bf16.vlgmr.msra.gmra.mxu1 %vm297_vm14, %v523_v63 }
 0x549   :  { %834 = vmatpush.bf16.msrb.mxu2 %v1971_v4 }
 0x5b5   :  { %v425_v3 = vpop.f32.mrf.mxu1 }
 0x5bd   :  { %v427_v6 = vpop.f32.mrf.mxu1 }
 0x5be   :  { %v430_v9 = vpack.c.bf16 %v427_v6, %v425_v3 }
 0x5c0   :  { %1484 = vmatmul.msk.bf16.vlgmr.msra.gmra.mxu3 %vm297_vm14, %v430_v9 }
 0x5c1   :  { %687 = vmatpush.bf16.xpose.msra.mxu3 %v678_v10 }
 0x5c5   :  { %v539_v4 = vpop.f32.mrf.mxu1 }
 0x5cb   :  { %v589_v40 = vpop.f32.mrf.mxu2 }
 0x5cc   :  { %v590_v41 = vadd.f32 %v589_v40, %v1947_v38 }
 0x5cd   :  { %v541_v11 = vpop.f32.mrf.mxu1 }
 0x5ce   :  { %v544_v12 = vpack.c.bf16 %v541_v11, %v539_v4  ;;  %v594_v42 = vsel %vm297_vm14, %v590_v41, -inf }
 0x5d0   :  { %1496 = vmatmul.msk.bf16.vlgmr.msrb.gmra.mxu3 %vm297_vm14, %v544_v12 }
 0x5d1   :  { %817 = vmatpush.bf16.msrb.mxu3 %v1575_v1 }
 0x5d3   :  { %v591_v52 = vpop.f32.mrf.mxu2 }
 0x5d4   :  { %v592_v55 = vadd.f32 %v591_v52, %v1947_v38 }
 0x5d6   :  { %v597_v59 = vsel %vm297_vm14, %v592_v55, -inf }
 0x5e0   :  { %1504 = vmatmul.msk.bf16.vlgmr.msra.gmra.mxu3 %vm297_vm14, %v1933_v26 }
 0x5e1   :  { %919 = vmatpush.bf16.msra.mxu3 %v1576_v2 }
 0x643   :  { %v449_v13 = vpop.f32.mrf.mxu3 }
 0x644   :  { %v473_v17 = vadd.f32 %v472_v15, %v449_v13 }
 0x64b   :  { %v451_v14 = vpop.f32.mrf.mxu3 }
 0x64c   :  { %v475_v25 = vadd.f32 %v474_v24, %v451_v14 }
 0x653   :  { %v563_v18 = vpop.f32.mrf.mxu3 }
 0x654   :  { %v2008_v19 = vadd.f32 %v563_v18, %v473_v17 }
 0x65b   :  { %v565_v28 = vpop.f32.mrf.mxu3 }
 0x65c   :  { %v2013_v29 = vadd.f32 %v565_v28, %v475_v25 }
 0x663   :  { %v689_v34 = vpop.f32.mrf.mxu3 }
 0x664   :  { %v690_v35 = vadd.f32 %v689_v34, %v2015_v32 }
 0x666   :  { %v694_v36 = vsel %vm297_vm14, %v690_v35, -inf }
 0x667   :  { %695 = vmax.xlane.f32.xlu1 %v694_v36 }
 0x66b   :  { %v691_v37 = vpop.f32.mrf.mxu3 }
 0x66c   :  { %v692_v39 = vadd.f32 %v691_v37, %v2015_v32 }
 0x66e   :  { %v697_v21 = vsel %vm297_vm14, %v692_v39, -inf }
 0x66f   :  { %698 = vmax.xlane.f32.xlu2 %v697_v21 }
 0x677   :  { %595 = vmax.xlane.f32.xlu2 %v594_v42 }
 0x6da   :  { %v696_v43 = vpop.xlane.xlu1 %695 }
 0x6db   :  { %v700_v46 = vsub.f32 %v690_v35, %v696_v43 }
 0x6dd   :  { %v702_v47 = vmul.f32 1.442695, %v700_v46 }
 0x6df   :  { %1650 = vpow2.f32 %v702_v47 }
 0x6e2   :  { %v699_v31 = vpop.xlane.xlu2 %698 }
 0x6e3   :  { %v701_v48 = vsub.f32 %v692_v39, %v699_v31  ;;  %v2055_v39 = vld [vmem:[%s2265_s6 + $0x18] sm:$0xff] }
 0x6e4   :  { %654 = vmatpush.bf16.msrb.mxu1 %v2055_v39 }
 0x6e5   :  { %v1651_v49 = vpop.eup %1650  ;;  %v704_v50 = vmul.f32 1.442695, %v701_v48 }
 0x6e6   :  { %v706_v51 = vsel %vm297_vm14, %v1651_v49, 0.0 }
 0x6e7   :  { %1652 = vpow2.f32 %v704_v50  ;;  %707 = vadd.xlane.f32.xlu0 %v706_v51 }
 0x6ea   :  { %v596_v56 = vpop.xlane.xlu2 %595 }
 0x6eb   :  { %v600_v33 = vsub.f32 %v590_v41, %v596_v56 }
 0x6ed   :  { %v1653_v57 = vpop.eup %1652  ;;  %v602_v22 = vmul.f32 1.442695, %v600_v33 }
 0x6ee   :  { %v709_v58 = vsel %vm297_vm14, %v1653_v57, 0.0 }
 0x6ef   :  { %1654 = vpow2.f32 %v602_v22  ;;  %710 = vadd.xlane.f32.xlu1 %v709_v58  ;;  %598 = vmax.xlane.f32.xlu0 %v597_v59 }
 0x6f5   :  { %v1655_v7 = vpop.eup %1654 }
 0x6f6   :  { %v606_v60 = vsel %vm297_vm14, %v1655_v7, 0.0 }
 0x6f7   :  { %607 = vadd.xlane.f32.xlu1 %v606_v60 }
 0x703   :  { %617 = vrot.lane.b32.xlu0 %v1926_v8, %s1721_s25 }
 0x70b   :  { %843 = vrot.lane.b32.xlu0 %v1933_v26, %s1716_s0 }
 0x710   :  { %741 = vrot.lane.b32.xlu1 %v1933_v26, %s1718_s20 }
 0x713   :  { %841 = vrot.lane.b32.xlu0 %v1933_v26, %s1717_s17 }
 0x718   :  { %930 = vrot.lane.b32.xlu1 %v1933_v26, %s1720_s22 }
 0x75a   :  { %v708_v38 = vpop.xlane.xlu0 %707 }
 0x75b   :  { %1656 = vrcp.f32 %v708_v38 }
 0x761   :  { %v1657_v8 = vpop.eup %1656 }
 0x762   :  { %v599_v61 = vpop.xlane.xlu0 %598  ;;  %v711_v62 = vpop.xlane.xlu1 %710  ;;  %v714_v2 = vmul.f32 %v1657_v8, %v1651_v49 }
 0x763   :  { %v601_v63 = vsub.f32 %v592_v55, %v599_v61  ;;  %1658 = vrcp.f32 %v711_v62  ;;  %v2080_v62 = vld [vmem:[%s2266_s7] ss:$0 sm:$0xff] }
 0x765   :  { %v604_v0 = vmul.f32 1.442695, %v601_v63 }
 0x767   :  { %1660 = vpow2.f32 %v604_v0 }
 0x769   :  { %v1659_v1 = vpop.eup %1658 }
 0x76a   :  { %v715_v3 = vmul.f32 %v1659_v1, %v1653_v57  ;;  %v608_v4 = vpop.xlane.xlu1 %607 }
 0x76b   :  { %1662 = vrcp.f32 %v608_v4 }
 0x76c   :  { %v716_v5 = vpack.c.bf16 %v715_v3, %v714_v2 }
 0x76d   :  { %v1661_v6 = vpop.eup %1660 }
 0x76e   :  { %1505 = vmatmul.msk.bf16.vlgmr.msra.gmra.mxu2 %vm297_vm14, %v716_v5  ;;  %v609_v9 = vsel %vm297_vm14, %v1661_v6, 0.0 }
 0x76f   :  { %610 = vadd.xlane.f32.xlu2 %v609_v9 }
 0x771   :  { %v1663_v17 = vpop.eup %1662 }
 0x772   :  { %v614_v20 = vmul.f32 %v1663_v17, %v1655_v7 }
 0x775   :  { %v618_v10 = vpop.permute.xlu0 %617 }
 0x776   :  { %630 = vmatpush.bf16.msrb.mxu0 %v618_v10 }
 0x77d   :  { %v844_v24 = vpop.permute.xlu0 %843 }
 0x77e   :  { %v849_v28 = vsel %vm297_vm14, %v844_v24, 0 }
 0x782   :  { %v742_v11 = vpop.permute.xlu1 %741 }
 0x783   :  { %v747_v12 = vsel %vm297_vm14, %v742_v11, 0 }
 0x784   :  { %756 = vmatpush.bf16.xpose.msra.mxu0 %v747_v12 }
 0x785   :  { %v842_v37 = vpop.permute.xlu0 %841 }
 0x787   :  { %739 = vrot.lane.b32.xlu2 %v1933_v26, %s1719_s21 }
 0x78a   :  { %v931_v13 = vpop.permute.xlu1 %930 }
 0x78b   :  { %v936_v14 = vsel %vm297_vm14, %v931_v13, 0 }
 0x78c   :  { %945 = vmatpush.bf16.xpose.msra.mxu2 %v936_v14 }
 0x78f   :  { %928 = vrot.lane.b32.xlu2 %v1933_v26, %s1721_s25 }
 0x7e2   :  { %v611_v15 = vpop.xlane.xlu2 %610 }
 0x7e3   :  { %1664 = vrcp.f32 %v611_v15 }
 0x7e9   :  { %v1665_v18 = vpop.eup %1664 }
 0x7ea   :  { %v615_v23 = vmul.f32 %v1665_v18, %v1661_v6  ;;  %v740_v26 = vpop.permute.xlu2 %739 }
 0x7ec   :  { %v616_v25 = vpack.c.bf16 %v615_v23, %v614_v20 }
 0x7ee   :  { %1498 = vmatmul.msk.bf16.vlgmr.msrb.gmra.mxu0 %vm297_vm14, %v616_v25 }
 0x7ef   :  { %858 = vmatpush.bf16.xpose.msrb.mxu0 %v849_v28 }
 0x7f1   :  { %v733_v30 = vpop.f32.mrf.mxu2 }
 0x7f2   :  { %v929_v36 = vpop.permute.xlu2 %928 }
 0x7f9   :  { %v735_v34 = vpop.f32.mrf.mxu2 }
 0x7fa   :  { %v738_v35 = vpack.c.bf16 %v735_v34, %v733_v30 }
 0x7fc   :  { %1509 = vmatmul.msk.bf16.vlgmr.msrb.gmra.mxu2 %vm297_vm14, %v738_v35 }
 0x7fe   :  { %1506 = vmatmul.msk.bf16.vlgmr.msra.gmra.mxu0 %vm297_vm14, %v740_v26 }
 0x80c   :  { %1513 = vmatmul.msk.bf16.vlgmr.msra.gmra.mxu2 %vm297_vm14, %v929_v36 }
 0x80e   :  { %1510 = vmatmul.msk.bf16.vlgmr.msrb.gmra.mxu0 %vm297_vm14, %v842_v37 }
 0x86b   :  { %v632_v21 = vpop.f32.mrf.mxu0 }
 0x873   :  { %v634_v40 = vpop.f32.mrf.mxu0 }
 0x874   :  { %v637_v41 = vpack.c.bf16 %v634_v40, %v632_v21 }
 0x876   :  { %1503 = vmatmul.msk.bf16.vlgmr.msrb.gmra.mxu1 %vm297_vm14, %v637_v41 }
 0x87b   :  { %v758_v42 = vpop.f32.mrf.mxu0 }
 0x87c   :  { %v759_v43 = vadd.f32 %v758_v42, %v2015_v32 }
 0x87e   :  { %v763_v46 = vsel %vm297_vm14, %v759_v43, -inf }
 0x87f   :  { %v2061_v47 = vpop.f32.mrf.mxu2  ;;  %764 = vmax.xlane.f32.xlu1 %v763_v46 }
 0x883   :  { %v760_v31 = vpop.f32.mrf.mxu0 }
 0x884   :  { %v761_v48 = vadd.f32 %v760_v31, %v2015_v32 }
 0x886   :  { %v766_v49 = vsel %vm297_vm14, %v761_v48, -inf }
 0x887   :  { %v2065_v50 = vpop.f32.mrf.mxu2  ;;  %767 = vmax.xlane.f32.xlu0 %v766_v49 }
 0x88b   :  { %v860_v51 = vpop.f32.mrf.mxu0 }
 0x88c   :  { %v861_v52 = vadd.f32 %v860_v51, %v2015_v32 }
 0x88e   :  { %v865_v55 = vsel %vm297_vm14, %v861_v52, -inf }
 0x88f   :  { %866 = vmax.xlane.f32.xlu2 %v865_v55  ;;  %v947_v56 = vpop.f32.mrf.mxu2 }
 0x890   :  { %v948_v33 = vadd.f32 %v947_v56, %v2015_v32 }
 0x892   :  { %v952_v57 = vsel %vm297_vm14, %v948_v33, -inf }
 0x893   :  { %v862_v22 = vpop.f32.mrf.mxu0  ;;  %953 = vmax.xlane.f32.xlu0 %v952_v57 }
 0x894   :  { %v863_v58 = vadd.f32 %v862_v22, %v2015_v32 }
 0x896   :  { %v868_v59 = vsel %vm297_vm14, %v863_v58, -inf }
 0x897   :  { %869 = vmax.xlane.f32.xlu1 %v868_v59  ;;  %v949_v7 = vpop.f32.mrf.mxu2 }
 0x898   :  { %v950_v60 = vadd.f32 %v949_v7, %v2015_v32 }
 0x89a   :  { %v955_v38 = vsel %vm297_vm14, %v950_v60, -inf }
 0x89b   :  { %956 = vmax.xlane.f32.xlu2 %v955_v38 }
 0x8b3   :  { %786 = vrot.lane.b32.xlu2 %v1935_v27, %s1719_s21 }
 0x8f2   :  { %v765_v61 = vpop.xlane.xlu1 %764 }
 0x8f3   :  { %v769_v63 = vsub.f32 %v759_v43, %v765_v61  ;;  %v656_v0 = vpop.f32.mrf.mxu1 }
 0x8f4   :  { %v661_v8 = vadd.f32 %v656_v0, %v2008_v19 }
 0x8f5   :  { %v771_v1 = vmul.f32 1.442695, %v769_v63 }
 0x8f6   :  { %v1019_v2 = vadd.f32 %v2080_v62, %v661_v8 }
 0x8f7   :  { %1666 = vpow2.f32 %v771_v1 }
 0x8f8   :  { %v2085_v32 = vadd.f32 %v1019_v2, %v1903_v44 }
 0x8fa   :  { %v768_v3 = vpop.xlane.xlu0 %767  ;;  %v1029_v5 = vsel %vm64_vm0, %v2085_v32, 0.0 }
 0x8fb   :  { %v770_v6 = vsub.f32 %v761_v48, %v768_v3  ;;  %1030 = vadd.xlane.f32.xlu2 %v1029_v5  ;;  %v658_v42 = vpop.f32.mrf.mxu1 }
 0x8fc   :  { %v662_v43 = vadd.f32 %v658_v42, %v2013_v29 }
 0x8fd   :  { %v1667_v9 = vpop.eup %1666  ;;  %v773_v10 = vmul.f32 1.442695, %v770_v6 }
 0x8fe   :  { %v775_v4 = vsel %vm297_vm14, %v1667_v9, 0.0  ;;  %v1020_v46 = vadd.f32 %v2080_v62, %v662_v43 }
 0x8ff   :  { %1668 = vpow2.f32 %v773_v10  ;;  %776 = vadd.xlane.f32.xlu1 %v775_v4 }
 0x900   :  { %v2102_v31 = vadd.f32 %v1020_v46, %v1905_v45 }
 0x902   :  { %v867_v19 = vpop.xlane.xlu2 %866  ;;  %v1032_v48 = vsel %vm64_vm0, %v2102_v31, 0.0 }
 0x903   :  { %v871_v11 = vsub.f32 %v861_v52, %v867_v19 }
 0x905   :  { %v1669_v12 = vpop.eup %1668  ;;  %v873_v13 = vmul.f32 1.442695, %v871_v11 }
 0x906   :  { %v954_v14 = vpop.xlane.xlu0 %953  ;;  %v778_v44 = vsel %vm297_vm14, %v1669_v12, 0.0 }
 0x907   :  { %1670 = vpow2.f32 %v873_v13  ;;  %v958_v15 = vsub.f32 %v948_v33, %v954_v14  ;;  %779 = vadd.xlane.f32.xlu0 %v778_v44 }
 0x909   :  { %v960_v17 = vmul.f32 1.442695, %v958_v15 }
 0x90a   :  { %v870_v18 = vpop.xlane.xlu1 %869 }
 0x90b   :  { %v872_v20 = vsub.f32 %v863_v58, %v870_v18  ;;  %1672 = vpow2.f32 %v960_v17 }
 0x90d   :  { %v1671_v23 = vpop.eup %1670  ;;  %v875_v24 = vmul.f32 1.442695, %v872_v20 }
 0x90e   :  { %v957_v25 = vpop.xlane.xlu2 %956  ;;  %v877_v28 = vsel %vm297_vm14, %v1671_v23, 0.0 }
 0x90f   :  { %1674 = vpow2.f32 %v875_v24  ;;  %v959_v30 = vsub.f32 %v950_v60, %v957_v25  ;;  %878 = vadd.xlane.f32.xlu1 %v877_v28 }
 0x911   :  { %v962_v34 = vmul.f32 1.442695, %v959_v30  ;;  %v1673_v35 = vpop.eup %1672 }
 0x912   :  { %v964_v37 = vsel %vm297_vm14, %v1673_v35, 0.0 }
 0x913   :  { %1676 = vpow2.f32 %v962_v34 }
 0x915   :  { %v1675_v26 = vpop.eup %1674 }
 0x916   :  { %v787_v36 = vpop.permute.xlu2 %786  ;;  %v880_v21 = vsel %vm297_vm14, %v1675_v26, 0.0 }
 0x917   :  { %799 = vmatpush.bf16.msra.mxu1 %v787_v36  ;;  %965 = vadd.xlane.f32.xlu1 %v964_v37 }
 0x918   :  { %881 = vadd.xlane.f32.xlu0 %v880_v21 }
 0x919   :  { %v1677_v40 = vpop.eup %1676 }
 0x91a   :  { %v967_v41 = vsel %vm297_vm14, %v1677_v40, 0.0 }
 0x920   :  { %968 = vadd.xlane.f32.xlu0 %v967_v41 }
 0x930   :  { %888 = vrot.lane.b32.xlu1 %v1935_v27, %s1717_s17 }
 0x934   :  { %975 = vrot.lane.b32.xlu0 %v1935_v27, %s1721_s25 }
 0x95e   :  { %1033 = vadd.xlane.f32.xlu0 %v1032_v48 }
 0x972   :  { %v777_v49 = vpop.xlane.xlu1 %776 }
 0x973   :  { %1678 = vrcp.f32 %v777_v49 }
 0x979   :  { %v1679_v52 = vpop.eup %1678 }
 0x97a   :  { %v780_v51 = vpop.xlane.xlu0 %779  ;;  %v783_v56 = vmul.f32 %v1679_v52, %v1667_v9 }
 0x97b   :  { %1680 = vrcp.f32 %v780_v51 }
 0x981   :  { %v1681_v55 = vpop.eup %1680 }
 0x982   :  { %v784_v27 = vmul.f32 %v1681_v55, %v1669_v12  ;;  %v879_v57 = vpop.xlane.xlu1 %878 }
 0x984   :  { %v785_v33 = vpack.c.bf16 %v784_v27, %v783_v56 }
 0x986   :  { %1507 = vmatmul.msk.bf16.vlgmr.msra.gmra.mxu1 %vm297_vm14, %v785_v33  ;;  %v1580_v33 = vld [vmem:[%s2269_s10 + $0x10] sm:$0xff] }
 0x98a   :  { %v966_v22 = vpop.xlane.xlu1 %965 }
 0x98b   :  { %v882_v29 = vpop.xlane.xlu0 %881 }
 0x98c   :  { %1682 = vrcp.f32 %v882_v29 }
 0x98d   :  { %1684 = vrcp.f32 %v879_v57 }
 0x992   :  { %v1683_v58 = vpop.eup %1682 }
 0x993   :  { %v969_v45 = vpop.xlane.xlu0 %968  ;;  %v1685_v59 = vpop.eup %1684  ;;  %v886_v7 = vmul.f32 %v1683_v58, %v1675_v26 }
 0x994   :  { %1686 = vrcp.f32 %v969_v45  ;;  %v885_v38 = vmul.f32 %v1685_v59, %v1671_v23  ;;  %v1579_v45 = vld [vmem:[%s2269_s10 + $0x8] sm:$0xff] }
 0x995   :  { %1688 = vrcp.f32 %v966_v22 }
 0x996   :  { %v887_v0 = vpack.c.bf16 %v886_v7, %v885_v38  ;;  %v1578_v7 = vld [vmem:[%s2269_s10] sm:$0xff] }
 0x99a   :  { %v1687_v60 = vpop.eup %1686 }
 0x99b   :  { %v1689_v63 = vpop.eup %1688  ;;  %v973_v8 = vmul.f32 %v1687_v60, %v1677_v40 }
 0x99c   :  { %v972_v1 = vmul.f32 %v1689_v63, %v1673_v35  ;;  %v1031_v35 = vpop.xlane.xlu2 %1030 }
 0x99e   :  { %v974_v3 = vpack.c.bf16 %v973_v8, %v972_v1 }
 0x9a2   :  { %v889_v61 = vpop.permute.xlu1 %888 }
 0x9a3   :  { %901 = vmatpush.bf16.msrb.mxu1 %v889_v61 }
 0x9a6   :  { %v976_v2 = vpop.permute.xlu0 %975  ;;  %1511 = vmatmul.msk.bf16.vlgmr.msrb.gmra.mxu1 %vm297_vm14, %v887_v0 }
 0x9a7   :  { %1006 = vmatpush.bf16.msra.mxu1 %v2055_v39  ;;  %988 = vmatpush.bf16.msra.mxu0 %v976_v2 }
 0x9aa   :  { %1514 = vmatmul.msk.bf16.vlgmr.msra.gmra.mxu0 %vm297_vm14, %v974_v3 }
 0x9d1   :  { %v1034_v41 = vpop.xlane.xlu0 %1033 }
 0xa03   :  { %v801_v5 = vpop.f32.mrf.mxu1 }
 0xa0b   :  { %v803_v6 = vpop.f32.mrf.mxu1 }
 0xa0c   :  { %v806_v9 = vpack.c.bf16 %v803_v6, %v801_v5 }
 0xa0e   :  { %1508 = vmatmul.msk.bf16.vlgmr.msrb.gmra.mxu3 %vm297_vm14, %v806_v9 }
 0xa23   :  { %v903_v10 = vpop.f32.mrf.mxu1 }
 0xa27   :  { %v990_v4 = vpop.f32.mrf.mxu0 }
 0xa2b   :  { %v905_v19 = vpop.f32.mrf.mxu1 }
 0xa2c   :  { %v908_v11 = vpack.c.bf16 %v905_v19, %v903_v10 }
 0xa2e   :  { %1512 = vmatmul.msk.bf16.vlgmr.msra.gmra.mxu3 %vm297_vm14, %v908_v11  ;;  %v1610_v11 = vld [vmem:[%s2267_s8] ss:$0 sm:$0xff] }
 0xa2f   :  { %v992_v39 = vpop.f32.mrf.mxu0 }
 0xa30   :  { %v995_v12 = vpack.c.bf16 %v992_v39, %v990_v4 }
 0xa32   :  { %1515 = vmatmul.msk.bf16.vlgmr.msra.gmra.mxu1 %vm297_vm14, %v995_v12 }
 0xa91   :  { %v819_v13 = vpop.f32.mrf.mxu3 }
 0xa92   :  { %v837_v44 = vadd.f32 %v2061_v47, %v819_v13  ;;  %v1041_v47 = vmul.f32 %v1031_v35, %v1817_v16 }
 0xa94   :  { %v1045_v40 = vsub.f32 %v2085_v32, %v1041_v47 }
 0xa96   :  { %v1049_v42 = vmul.f32 %v1045_v40, %v1045_v40 }
 0xa98   :  { %v1053_v46 = vsel %vm64_vm0, %v1049_v42, 0.0 }
 0xa99   :  { %v821_v14 = vpop.f32.mrf.mxu3 }
 0xa9a   :  { %v839_v24 = vadd.f32 %v2065_v50, %v821_v14  ;;  %v1611_v14 = vld [vmem:[%s2268_s9] ss:$0 sm:$0xff] }
 0xaaf   :  { %v1008_v15 = vpop.f32.mrf.mxu1 }
 0xab1   :  { %v921_v17 = vpop.f32.mrf.mxu3 }
 0xab2   :  { %v926_v18 = vadd.f32 %v921_v17, %v837_v44 }
 0xab4   :  { %v1013_v20 = vadd.f32 %v1008_v15, %v926_v18 }
 0xab6   :  { %v1021_v23 = vadd.f32 %v2080_v62, %v1013_v20 }
 0xab7   :  { %v1010_v26 = vpop.f32.mrf.mxu1 }
 0xab8   :  { %v1025_v25 = vadd.f32 %v1021_v23, %v1913_v53  ;;  %v1042_v53 = vmul.f32 %v1034_v41, %v1817_v16 }
 0xab9   :  { %v923_v28 = vpop.f32.mrf.mxu3 }
 0xaba   :  { %v927_v30 = vadd.f32 %v923_v28, %v839_v24  ;;  %v1035_v34 = vsel %vm64_vm0, %v1025_v25, 0.0  ;;  %v1046_v43 = vsub.f32 %v2102_v31, %v1042_v53  ;;  %v1581_v31 = vld [vmem:[%s2269_s10 + $0x18] sm:$0xff] }
 0xabb   :  { %1036 = vadd.xlane.f32.xlu1 %v1035_v34  ;;  %1179 = vmatpush.bf16.msrb.mxu3 %v1581_v31  ;;  %v1589_v31 = vld [vmem:[%s2271_s12 + $0x38] sm:$0xff] }
 0xabc   :  { %v1014_v36 = vadd.f32 %v1010_v26, %v927_v30  ;;  %v1050_v48 = vmul.f32 %v1046_v43, %v1046_v43  ;;  %1300 = vmatpush.bf16.msrb.mxu2 %v1589_v31 }
 0xabe   :  { %v1022_v37 = vadd.f32 %v2080_v62, %v1014_v36  ;;  %v1056_v49 = vsel %vm64_vm0, %v1050_v48, 0.0 }
 0xabf   :  { %1180 = vmatpush.bf16.msrb.mxu3 %v1580_v33  ;;  %v1588_v33 = vld [vmem:[%s2271_s12 + $0x30] sm:$0xff] }
 0xac0   :  { %v1026_v21 = vadd.f32 %v1022_v37, %v1915_v54  ;;  %1301 = vmatpush.bf16.msrb.mxu2 %v1588_v33 }
 0xac2   :  { %v1038_v50 = vsel %vm64_vm0, %v1026_v21, 0.0 }
 0xac3   :  { %1039 = vadd.xlane.f32.xlu2 %v1038_v50  ;;  %1181 = vmatpush.bf16.msrb.mxu3 %v1579_v45  ;;  %v1584_v45 = vld [vmem:[%s2271_s12 + $0x10] sm:$0xff] }
 0xac7   :  { %1182 = vmatpush.bf16.msrb.mxu3 %v1578_v7 }
 0xacb   :  { %1054 = vadd.xlane.f32.xlu2 %v1053_v46 }
 0xad3   :  { %1057 = vadd.xlane.f32.xlu2 %v1056_v49 }
 0xb2e   :  { %v1037_v62 = vpop.xlane.xlu1 %1036 }
 0xb2f   :  { %v1043_v54 = vmul.f32 %v1037_v62, %v1817_v16 }
 0xb31   :  { %v2128_v32 = vsub.f32 %v1025_v25, %v1043_v54 }
 0xb33   :  { %v1051_v51 = vmul.f32 %v2128_v32, %v2128_v32 }
 0xb35   :  { %v1059_v52 = vsel %vm64_vm0, %v1051_v51, 0.0 }
 0xb36   :  { %1060 = vadd.xlane.f32.xlu0 %v1059_v52  ;;  %v1040_v55 = vpop.xlane.xlu2 %1039 }
 0xb37   :  { %v1044_v56 = vmul.f32 %v1040_v55, %v1817_v16 }
 0xb39   :  { %v2137_v27 = vsub.f32 %v1026_v21, %v1044_v56 }
 0xb3b   :  { %v1052_v29 = vmul.f32 %v2137_v27, %v2137_v27 }
 0xb3d   :  { %v1062_v57 = vsel %vm64_vm0, %v1052_v29, 0.0  ;;  %v1586_v29 = vld [vmem:[%s2271_s12 + $0x20] sm:$0xff] }
 0xb3e   :  { %1063 = vadd.xlane.f32.xlu1 %v1062_v57  ;;  %v1055_v22 = vpop.xlane.xlu2 %1054  ;;  %v1585_v57 = vld [vmem:[%s2271_s12 + $0x18] sm:$0xff] }
 0xb3f   :  { %v1065_v58 = vmul.f32 %v1055_v22, %v1817_v16  ;;  %v1583_v22 = vld [vmem:[%s2271_s12 + $0x8] sm:$0xff] }
 0xb41   :  { %v1069_v59 = vadd.f32 1e-12, %v1065_v58  ;;  %v1582_v58 = vld [vmem:[%s2271_s12] sm:$0xff] }
 0xb43   :  { %1690 = vrsqrt.f32 %v1069_v59  ;;  %vm1079_vm1 = vweird.f32 %v1069_v59 }
 0xb46   :  { %v1058_v60 = vpop.xlane.xlu2 %1057 }
 0xb47   :  { %v1066_v38 = vmul.f32 %v1058_v60, %v1817_v16 }
 0xb49   :  { %v1691_v61 = vpop.eup %1690  ;;  %v1070_v63 = vadd.f32 1e-12, %v1066_v38 }
 0xb4a   :  { %v1074_v0 = vmul.f32 %v1691_v61, %v1069_v59  ;;  %vm1080_vm15 = vweird.f32 %v1691_v61  ;;  %v1612_v59 = vld [vmem:[%s2270_s11] ss:$0 sm:$0xff] }
 0xb4b   :  { %1692 = vrsqrt.f32 %v1070_v63  ;;  %vm1081_vm2 = vmor %vm1079_vm1, %vm1080_vm15  ;;  %vm1089_vm4 = vweird.f32 %v1070_v63  ;;  %vm1431_vm15 = vcmask 519168  }
 0xb4c   :  { %v1075_v8 = vmul.f32 %v1691_v61, %v1074_v0 }
 0xb4e   :  { %v1076_v1 = vmul.f32 0.5, %v1075_v8 }
 0xb50   :  { %v1077_v2 = vsub.f32 1.5, %v1076_v1 }
 0xb51   :  { %v1693_v3 = vpop.eup %1692 }
 0xb52   :  { %v1078_v5 = vmul.f32 %v1691_v61, %v1077_v2  ;;  %v1084_v6 = vmul.f32 %v1693_v3, %v1070_v63  ;;  %vm1090_vm3 = vweird.f32 %v1693_v3 }
 0xb53   :  { %vm1091_vm5 = vmor %vm1089_vm4, %vm1090_vm3 }
 0xb54   :  { %v1085_v9 = vmul.f32 %v1693_v3, %v1084_v6  ;;  %v1082_v10 = vsel %vm1081_vm2, %v1691_v61, %v1078_v5 }
 0xb55   :  { %v1113_v39 = vmul.f32 %v1082_v10, %v1045_v40 }
 0xb56   :  { %v1086_v4 = vmul.f32 0.5, %v1085_v9 }
 0xb57   :  { %v1120_v44 = vmul.f32 %v1610_v11, %v1113_v39 }
 0xb58   :  { %v1087_v19 = vsub.f32 1.5, %v1086_v4 }
 0xb59   :  { %v2159_v18 = vadd.f32 %v1611_v14, %v1120_v44 }
 0xb5a   :  { %v1088_v12 = vmul.f32 %v1693_v3, %v1087_v19 }
 0xb5c   :  { %v1092_v13 = vsel %vm1091_vm5, %v1693_v3, %v1088_v12 }
 0xb5d   :  { %v1114_v15 = vmul.f32 %v1092_v13, %v1046_v43 }
 0xb5f   :  { %v1121_v17 = vmul.f32 %v1610_v11, %v1114_v15 }
 0xb61   :  { %v2161_v20 = vadd.f32 %v1611_v14, %v1121_v17 }
 0xb63   :  { %v1131_v23 = vpack.c.bf16 %v2161_v20, %v2159_v18 }
 0xb65   :  { %1532 = vmatmul.msk.bf16.vlgmr.msrb.gmra.mxu3 %vm64_vm0, %v1131_v23 }
 0xba9   :  { %v1061_v24 = vpop.xlane.xlu0 %1060 }
 0xbaa   :  { %v1067_v25 = vmul.f32 %v1061_v24, %v1817_v16 }
 0xbac   :  { %v1071_v28 = vadd.f32 1e-12, %v1067_v25 }
 0xbae   :  { %1694 = vrsqrt.f32 %v1071_v28  ;;  %vm1099_vm7 = vweird.f32 %v1071_v28 }
 0xbb1   :  { %v1064_v30 = vpop.xlane.xlu1 %1063 }
 0xbb2   :  { %v1068_v34 = vmul.f32 %v1064_v30, %v1817_v16 }
 0xbb4   :  { %v1695_v35 = vpop.eup %1694  ;;  %v1072_v26 = vadd.f32 1e-12, %v1068_v34 }
 0xbb5   :  { %v1094_v36 = vmul.f32 %v1695_v35, %v1071_v28  ;;  %vm1100_vm6 = vweird.f32 %v1695_v35 }
 0xbb6   :  { %1696 = vrsqrt.f32 %v1072_v26  ;;  %vm1101_vm8 = vmor %vm1099_vm7, %vm1100_vm6  ;;  %vm1109_vm10 = vweird.f32 %v1072_v26 }
 0xbb7   :  { %v1095_v47 = vmul.f32 %v1695_v35, %v1094_v36 }
 0xbb9   :  { %v1096_v37 = vmul.f32 0.5, %v1095_v47 }
 0xbbb   :  { %v1097_v21 = vsub.f32 1.5, %v1096_v37 }
 0xbbc   :  { %v1697_v40 = vpop.eup %1696 }
 0xbbd   :  { %v1098_v50 = vmul.f32 %v1695_v35, %v1097_v21  ;;  %v1104_v41 = vmul.f32 %v1697_v40, %v1072_v26  ;;  %vm1110_vm9 = vweird.f32 %v1697_v40 }
 0xbbe   :  { %vm1111_vm11 = vmor %vm1109_vm10, %vm1110_vm9 }
 0xbbf   :  { %v1105_v53 = vmul.f32 %v1697_v40, %v1104_v41  ;;  %v1102_v42 = vsel %vm1101_vm8, %v1695_v35, %v1098_v50 }
 0xbc0   :  { %v1115_v48 = vmul.f32 %v1102_v42, %v2128_v32 }
 0xbc1   :  { %v1106_v43 = vmul.f32 0.5, %v1105_v53 }
 0xbc2   :  { %v1122_v51 = vmul.f32 %v1610_v11, %v1115_v48 }
 0xbc3   :  { %v1107_v46 = vsub.f32 1.5, %v1106_v43 }
 0xbc4   :  { %v2173_v55 = vadd.f32 %v1611_v14, %v1122_v51 }
 0xbc5   :  { %v1108_v49 = vmul.f32 %v1697_v40, %v1107_v46 }
 0xbc7   :  { %v1112_v62 = vsel %vm1111_vm11, %v1697_v40, %v1108_v49 }
 0xbc8   :  { %v1116_v54 = vmul.f32 %v1112_v62, %v2137_v27  ;;  %v1587_v27 = vld [vmem:[%s2271_s12 + $0x28] sm:$0xff] }
 0xbc9   :  { %1302 = vmatpush.bf16.msrb.mxu2 %v1587_v27 }
 0xbca   :  { %v1123_v52 = vmul.f32 %v1610_v11, %v1116_v54  ;;  %v1613_v54 = vld [vmem:[%s2272_s13] ss:$0 sm:$0xff] }
 0xbcc   :  { %v2175_v56 = vadd.f32 %v1611_v14, %v1123_v52 }
 0xbcd   :  { %1303 = vmatpush.bf16.msrb.mxu2 %v1586_v29 }
 0xbce   :  { %v1132_v32 = vpack.c.bf16 %v2175_v56, %v2173_v55 }
 0xbd0   :  { %1533 = vmatmul.msk.bf16.gmra.mxu3 %vm64_vm0, %v1132_v32 }
 0xbd1   :  { %1304 = vmatpush.bf16.msrb.mxu2 %v1585_v57 }
 0xbd5   :  { %1305 = vmatpush.bf16.msrb.mxu2 %v1584_v45 }
 0xbd9   :  { %1306 = vmatpush.bf16.msrb.mxu2 %v1583_v22 }
 0xbdd   :  { %1307 = vmatpush.bf16.msrb.mxu2 %v1582_v58 }
 0xbe8   :  { %v1184_v7 = vpop.f32.mrf.mxu3 }
 0xbe9   :  { %v1185_v60 = vadd.f32 %v1612_v59, %v1184_v7 }
 0xbeb   :  { %v1198_v38 = vmul.f32 0.044715, %v1185_v60  ;;  %v1194_v39 = vmul.f32 0.5, %v1185_v60 }
 0xbed   :  { %v1202_v61 = vmul.f32 %v1198_v38, %v1185_v60 }
 0xbef   :  { %v1206_v63 = vmul.f32 %v1202_v61, %v1185_v60 }
 0xbf0   :  { %v1186_v0 = vpop.f32.mrf.mxu3 }
 0xbf1   :  { %v1210_v8 = vadd.f32 %v1206_v63, %v1185_v60  ;;  %v1187_v1 = vadd.f32 %v1612_v59, %v1186_v0 }
 0xbf3   :  { %v1199_v2 = vmul.f32 0.044715, %v1187_v1  ;;  %v1214_v3 = vmul.f32 0.7978846, %v1210_v8  ;;  %v1195_v12 = vmul.f32 0.5, %v1187_v1 }
 0xbf5   :  { %v1203_v5 = vmul.f32 %v1199_v2, %v1187_v1  ;;  %1698 = vtanh.f32 %v1214_v3 }
 0xbf7   :  { %v1207_v6 = vmul.f32 %v1203_v5, %v1187_v1 }
 0xbf9   :  { %v1211_v9 = vadd.f32 %v1207_v6, %v1187_v1 }
 0xbfb   :  { %v1215_v10 = vmul.f32 0.7978846, %v1211_v9  ;;  %v1699_v4 = vpop.eup %1698 }
 0xbfc   :  { %v1222_v19 = vadd.f32 1.0, %v1699_v4 }
 0xbfd   :  { %1700 = vtanh.f32 %v1215_v10 }
 0xbfe   :  { %v1226_v14 = vmul.f32 %v1222_v19, %v1194_v39 }
 0xc03   :  { %v1701_v11 = vpop.eup %1700 }
 0xc04   :  { %v1223_v13 = vadd.f32 1.0, %v1701_v11 }
 0xc06   :  { %v1227_v44 = vmul.f32 %v1223_v13, %v1195_v12 }
 0xc08   :  { %v1230_v15 = vpack.c.bf16 %v1227_v44, %v1226_v14 }
 0xc0a   :  { %1308 = vmatmul.bf16.vlgmr.msrb.gmra.mxu2 %v1230_v15 }
 0xc53   :  { %v1189_v17 = vpop.f32.mrf.mxu3 }
 0xc54   :  { %v1190_v23 = vadd.f32 %v1612_v59, %v1189_v17 }
 0xc56   :  { %v1200_v24 = vmul.f32 0.044715, %v1190_v23  ;;  %v1196_v42 = vmul.f32 0.5, %v1190_v23 }
 0xc58   :  { %v1204_v25 = vmul.f32 %v1200_v24, %v1190_v23 }
 0xc5a   :  { %v1208_v28 = vmul.f32 %v1204_v25, %v1190_v23 }
 0xc5b   :  { %v1191_v30 = vpop.f32.mrf.mxu3 }
 0xc5c   :  { %v1192_v34 = vadd.f32 %v1612_v59, %v1191_v30  ;;  %v1212_v35 = vadd.f32 %v1208_v28, %v1190_v23 }
 0xc5e   :  { %v1201_v26 = vmul.f32 0.044715, %v1192_v34  ;;  %v1216_v47 = vmul.f32 0.7978846, %v1212_v35  ;;  %v1197_v43 = vmul.f32 0.5, %v1192_v34 }
 0xc60   :  { %v1205_v36 = vmul.f32 %v1201_v26, %v1192_v34  ;;  %1702 = vtanh.f32 %v1216_v47 }
 0xc62   :  { %v1209_v37 = vmul.f32 %v1205_v36, %v1192_v34 }
 0xc64   :  { %v1213_v21 = vadd.f32 %v1209_v37, %v1192_v34  ;;  %v1614_v37 = vld [vmem:[%s2273_s14] ss:$0 sm:$0xff] }
 0xc66   :  { %v1217_v40 = vmul.f32 0.7978846, %v1213_v21  ;;  %v1703_v50 = vpop.eup %1702 }
 0xc67   :  { %v1224_v41 = vadd.f32 1.0, %v1703_v50  ;;  %v1615_v50 = vld [vmem:[%s2274_s15] ss:$0 sm:$0xff] }
 0xc68   :  { %1704 = vtanh.f32 %v1217_v40 }
 0xc69   :  { %v1228_v48 = vmul.f32 %v1224_v41, %v1196_v42 }
 0xc6e   :  { %v1705_v53 = vpop.eup %1704 }
 0xc6f   :  { %v1225_v46 = vadd.f32 1.0, %v1705_v53 }
 0xc71   :  { %v1229_v49 = vmul.f32 %v1225_v46, %v1197_v43 }
 0xc73   :  { %v1231_v62 = vpack.c.bf16 %v1229_v49, %v1228_v48 }
 0xc75   :  { %1313 = vmatmul.bf16.gmra.mxu2 %v1231_v62 }
 0xc8d   :  { %v1309_v51 = vpop.f32.mrf.mxu2 }
 0xc8e   :  { %v1310_v52 = vadd.f32 %v1613_v54, %v1309_v51 }
 0xc90   :  { %v1319_v31 = vadd.f32 %v1310_v52, %v2159_v18 }
 0xc92   :  { %v1325_v32 = vsel %vm64_vm0, %v1319_v31, 0.0 }
 0xc93   :  { %1326 = vadd.xlane.f32.xlu2 %v1325_v32 }
 0xc95   :  { %v1311_v33 = vpop.f32.mrf.mxu2 }
 0xc96   :  { %v1312_v27 = vadd.f32 %v1613_v54, %v1311_v33 }
 0xc98   :  { %v1320_v29 = vadd.f32 %v1312_v27, %v2161_v20 }
 0xc9a   :  { %v1328_v57 = vsel %vm64_vm0, %v1320_v29, 0.0 }
 0xc9b   :  { %1329 = vadd.xlane.f32.xlu0 %v1328_v57 }
 0xcf8   :  { %v1314_v45 = vpop.f32.mrf.mxu2 }
 0xcf9   :  { %v1315_v22 = vadd.f32 %v1613_v54, %v1314_v45 }
 0xcfb   :  { %v1321_v58 = vadd.f32 %v1315_v22, %v2173_v55 }
 0xcfd   :  { %v1331_v59 = vsel %vm64_vm0, %v1321_v58, 0.0 }
 0xcfe   :  { %1332 = vadd.xlane.f32.xlu1 %v1331_v59 }
 0xd00   :  { %v1316_v7 = vpop.f32.mrf.mxu2 }
 0xd01   :  { %v1317_v60 = vadd.f32 %v1613_v54, %v1316_v7 }
 0xd03   :  { %v1322_v18 = vadd.f32 %v1317_v60, %v2175_v56 }
 0xd05   :  { %v1334_v38 = vsel %vm64_vm0, %v1322_v18, 0.0 }
 0xd06   :  { %1335 = vadd.xlane.f32.xlu2 %v1334_v38  ;;  %v1327_v61 = vpop.xlane.xlu2 %1326 }
 0xd07   :  { %v1337_v20 = vmul.f32 %v1327_v61, %v1817_v16 }
 0xd09   :  { %v1341_v63 = vsub.f32 %v1319_v31, %v1337_v20 }
 0xd0b   :  { %v1345_v0 = vmul.f32 %v1341_v63, %v1341_v63 }
 0xd0d   :  { %v1349_v8 = vsel %vm64_vm0, %v1345_v0, 0.0 }
 0xd0e   :  { %v1330_v1 = vpop.xlane.xlu0 %1329  ;;  %1350 = vadd.xlane.f32.xlu0 %v1349_v8 }
 0xd0f   :  { %v1338_v55 = vmul.f32 %v1330_v1, %v1817_v16 }
 0xd11   :  { %v1342_v2 = vsub.f32 %v1320_v29, %v1338_v55 }
 0xd13   :  { %v1346_v3 = vmul.f32 %v1342_v2, %v1342_v2 }
 0xd15   :  { %v1352_v5 = vsel %vm64_vm0, %v1346_v3, 0.0 }
 0xd16   :  { %1353 = vadd.xlane.f32.xlu1 %v1352_v5 }
 0xd71   :  { %v1333_v56 = vpop.xlane.xlu1 %1332 }
 0xd72   :  { %v1339_v6 = vmul.f32 %v1333_v56, %v1817_v16 }
 0xd74   :  { %v2220_v9 = vsub.f32 %v1321_v58, %v1339_v6 }
 0xd76   :  { %v1347_v10 = vmul.f32 %v2220_v9, %v2220_v9 }
 0xd78   :  { %v1355_v4 = vsel %vm64_vm0, %v1347_v10, 0.0 }
 0xd79   :  { %1356 = vadd.xlane.f32.xlu2 %v1355_v4  ;;  %v1336_v19 = vpop.xlane.xlu2 %1335 }
 0xd7a   :  { %v1340_v11 = vmul.f32 %v1336_v19, %v1817_v16 }
 0xd7c   :  { %v2226_v39 = vsub.f32 %v1322_v18, %v1340_v11 }
 0xd7e   :  { %v1348_v12 = vmul.f32 %v2226_v39, %v2226_v39 }
 0xd80   :  { %v1358_v13 = vsel %vm64_vm0, %v1348_v12, 0.0 }
 0xd81   :  { %v1351_v14 = vpop.xlane.xlu0 %1350  ;;  %1359 = vadd.xlane.f32.xlu0 %v1358_v13 }
 0xd82   :  { %v1361_v44 = vmul.f32 %v1351_v14, %v1817_v16 }
 0xd84   :  { %v1365_v15 = vadd.f32 1e-12, %v1361_v44 }
 0xd86   :  { %1706 = vrsqrt.f32 %v1365_v15  ;;  %vm1375_vm0 = vweird.f32 %v1365_v15 }
 0xd89   :  { %v1354_v17 = vpop.xlane.xlu1 %1353 }
 0xd8a   :  { %v1362_v23 = vmul.f32 %v1354_v17, %v1817_v16 }
 0xd8c   :  { %v1707_v24 = vpop.eup %1706  ;;  %v1366_v25 = vadd.f32 1e-12, %v1362_v23 }
 0xd8d   :  { %v1370_v28 = vmul.f32 %v1707_v24, %v1365_v15  ;;  %vm1376_vm12 = vweird.f32 %v1707_v24 }
 0xd8e   :  { %1708 = vrsqrt.f32 %v1366_v25  ;;  %vm1377_vm13 = vmor %vm1375_vm0, %vm1376_vm12  ;;  %vm1385_vm1 = vweird.f32 %v1366_v25 }
 0xd8f   :  { %v1371_v30 = vmul.f32 %v1707_v24, %v1370_v28 }
 0xd91   :  { %v1372_v34 = vmul.f32 0.5, %v1371_v30 }
 0xd93   :  { %v1373_v35 = vsub.f32 1.5, %v1372_v34 }
 0xd94   :  { %v1709_v26 = vpop.eup %1708 }
 0xd95   :  { %v1374_v36 = vmul.f32 %v1707_v24, %v1373_v35  ;;  %v1380_v47 = vmul.f32 %v1709_v26, %v1366_v25  ;;  %vm1386_vm14 = vweird.f32 %v1709_v26 }
 0xd96   :  { %vm1387_vm2 = vmor %vm1385_vm1, %vm1386_vm14 }
 0xd97   :  { %v1378_v21 = vsel %vm1377_vm13, %v1707_v24, %v1374_v36  ;;  %v1381_v40 = vmul.f32 %v1709_v26, %v1380_v47 }
 0xd98   :  { %v1409_v41 = vmul.f32 %v1378_v21, %v1341_v63 }
 0xd99   :  { %v1382_v53 = vmul.f32 0.5, %v1381_v40 }
 0xd9a   :  { %v1416_v42 = vmul.f32 %v1614_v37, %v1409_v41 }
 0xd9b   :  { %v1383_v43 = vsub.f32 1.5, %v1382_v53 }
 0xd9c   :  { %v1423_v46 = vadd.f32 %v1615_v50, %v1416_v42 }
 0xd9d   :  { %v1384_v48 = vmul.f32 %v1709_v26, %v1383_v43 }
 0xd9e   :  { %v1427_v49 = vpack.c.bf16 %v1423_v46, %v1423_v46 }
 0xd9f   :  { %v1388_v62 = vsel %vm1387_vm2, %v1709_v26, %v1384_v48 }
 0xda0   :  { %1432 = vst.msk [vmem:[%s2275_s16] sm:$0xf] %vm1431_vm15, %v1427_v49  ;;  %v1410_v54 = vmul.f32 %v1388_v62, %v1342_v2 }
 0xda2   :  { %v1417_v51 = vmul.f32 %v1614_v37, %v1410_v54 }
 0xda4   :  { %v1424_v52 = vadd.f32 %v1615_v50, %v1417_v51 }
 0xda6   :  { %v1428_v31 = vpack.c.bf16 %v1424_v52, %v1424_v52 }
 0xda8   :  { %1433 = vst.msk [vmem:[%s2275_s16 + $0x4] sm:$0xf] %vm1431_vm15, %v1428_v31 }
 0xdec   :  { %v1357_v32 = vpop.xlane.xlu2 %1356 }
 0xded   :  { %v1363_v33 = vmul.f32 %v1357_v32, %v1817_v16 }
 0xdef   :  { %v1367_v27 = vadd.f32 1e-12, %v1363_v33 }
 0xdf1   :  { %1710 = vrsqrt.f32 %v1367_v27  ;;  %vm1395_vm4 = vweird.f32 %v1367_v27 }
 0xdf4   :  { %v1360_v29 = vpop.xlane.xlu0 %1359 }
 0xdf5   :  { %v1364_v57 = vmul.f32 %v1360_v29, %v1817_v16 }
 0xdf7   :  { %v1711_v45 = vpop.eup %1710  ;;  %v1368_v22 = vadd.f32 1e-12, %v1364_v57 }
 0xdf8   :  { %v1390_v58 = vmul.f32 %v1711_v45, %v1367_v27  ;;  %vm1396_vm3 = vweird.f32 %v1711_v45 }
 0xdf9   :  { %1712 = vrsqrt.f32 %v1368_v22  ;;  %vm1397_vm5 = vmor %vm1395_vm4, %vm1396_vm3  ;;  %vm1405_vm7 = vweird.f32 %v1368_v22 }
 0xdfa   :  { %v1391_v59 = vmul.f32 %v1711_v45, %v1390_v58 }
 0xdfc   :  { %v1392_v7 = vmul.f32 0.5, %v1391_v59 }
 0xdfe   :  { %v1393_v60 = vsub.f32 1.5, %v1392_v7 }
 0xdff   :  { %v1713_v18 = vpop.eup %1712 }
 0xe00   :  { %v1394_v38 = vmul.f32 %v1711_v45, %v1393_v60  ;;  %v1400_v61 = vmul.f32 %v1713_v18, %v1368_v22  ;;  %vm1406_vm6 = vweird.f32 %v1713_v18 }
 0xe01   :  { %vm1407_vm8 = vmor %vm1405_vm7, %vm1406_vm6 }
 0xe02   :  { %v1398_v20 = vsel %vm1397_vm5, %v1711_v45, %v1394_v38  ;;  %v1401_v63 = vmul.f32 %v1713_v18, %v1400_v61 }
 0xe03   :  { %v1411_v0 = vmul.f32 %v1398_v20, %v2220_v9 }
 0xe04   :  { %v1402_v8 = vmul.f32 0.5, %v1401_v63 }
 0xe05   :  { %v1418_v1 = vmul.f32 %v1614_v37, %v1411_v0 }
 0xe06   :  { %v1403_v16 = vsub.f32 1.5, %v1402_v8 }
 0xe07   :  { %v1425_v55 = vadd.f32 %v1615_v50, %v1418_v1 }
 0xe08   :  { %v1404_v2 = vmul.f32 %v1713_v18, %v1403_v16 }
 0xe09   :  { %v1429_v3 = vpack.c.bf16 %v1425_v55, %v1425_v55 }
 0xe0a   :  { %v1408_v5 = vsel %vm1407_vm8, %v1713_v18, %v1404_v2 }
 0xe0b   :  { %1434 = vst.msk [vmem:[%s2275_s16 + $0x8] sm:$0xf] %vm1431_vm15, %v1429_v3  ;;  %v1412_v56 = vmul.f32 %v1408_v5, %v2226_v39 }
 0xe0d   :  { %v1419_v6 = vmul.f32 %v1614_v37, %v1412_v56 }
 0xe0f   :  { %v1426_v10 = vadd.f32 %v1615_v50, %v1419_v6 }
 0xe11   :  { %v1430_v9 = vpack.c.bf16 %v1426_v10, %v1426_v10 }
 0xe13   :  { %1435 = vst.msk [vmem:[%s2275_s16 + $0xc] sm:$0xf] %vm1431_vm15, %v1430_v9 }

// kernel: bert_forward.4
= control target key start
LH: loop header
LB: loop body
LE: loop exit
PB: predicated region body
PF: predicated region fallthrough
CT: control target
= control target key end

     0   :  { %vm126_vm0 = vcmask 523264   ;;  %vm194_vm1 = vcmask 130048   ;;  %s1610_s26 = smov 112   ;;  %s1611_s27 = smov 48   ;;  %s2111_s2 = inlined_call_operand.vmem [shape: f32[1,64], index: 2, kind: input, shape index: {}]   ;;  %s2112_s3 = inlined_call_operand.vmem [shape: f32[1,64], index: 3, kind: input, shape index: {}]   ;;  %s2113_s4 = inlined_call_operand.vmem [shape: bf16[64,192], index: 4, kind: input, shape index: {}]   ;;  %s2114_s0 = inlined_call_operand.vmem [shape: bf16[32,64], index: 0, kind: input, shape index: {}, may-alias: {0,16}]   ;;  %s2115_s5 = inlined_call_operand.vmem [shape: f32[1,192], index: 5, kind: input, shape index: {}]   ;;  %s2116_s1 = inlined_call_operand.vmem [shape: f32[2,16], index: 1, kind: input, shape index: {}]   ;;  %s2117_s6 = inlined_call_operand.vmem [shape: bf16[64,64], index: 6, kind: input, shape index: {}]   ;;  %s2118_s7 = inlined_call_operand.vmem [shape: f32[1,64], index: 7, kind: input, shape index: {}]   ;;  %s2119_s8 = inlined_call_operand.vmem [shape: f32[1,64], index: 8, kind: input, shape index: {}]   ;;  %s2120_s9 = inlined_call_operand.vmem [shape: f32[1,64], index: 9, kind: input, shape index: {}]   ;;  %s2121_s10 = inlined_call_operand.vmem [shape: bf16[64,128], index: 10, kind: input, shape index: {}]   ;;  %s2122_s11 = inlined_call_operand.vmem [shape: f32[1,128], index: 11, kind: input, shape index: {}]   ;;  %s2123_s12 = inlined_call_operand.vmem [shape: bf16[128,64], index: 12, kind: input, shape index: {}]   ;;  %s2124_s13 = inlined_call_operand.vmem [shape: f32[1,64], index: 13, kind: input, shape index: {}]   ;;  %s2125_s14 = inlined_call_operand.vmem [shape: f32[1,64], index: 14, kind: input, shape index: {}]   ;;  %s2126_s15 = inlined_call_operand.vmem [shape: f32[1,64], index: 15, kind: input, shape index: {}]   ;;  %s2127_s16 = inlined_call_operand.vmem [shape: bf16[32,64], index: 16, kind: output, shape index: {}, may-alias: {0,16}]  }
   0x1   :  { %v1378_v0 = vld [vmem:[%s2113_s4 + $0x30] sm:$0xf]  ;;  %v1487_v1 = vld [vmem:[%s2113_s4 + $0x34] sm:$0xf0]  ;;  %v1486_v2 = vld [vmem:[%s2113_s4 + $0x34] sm:$0xf] }
   0x2   :  { %v1379_v3 = vor.u32 %v1487_v1, %v1378_v0  ;;  %v1380_v4 = vld [vmem:[%s2113_s4 + $0x38] sm:$0xf0]  ;;  %v1370_v5 = vld [vmem:[%s2113_s4 + $0x20] sm:$0xf]  ;;  %v1485_v6 = vld [vmem:[%s2113_s4 + $0x24] sm:$0xf0] }
   0x3   :  { %v1383_v7 = vor.u32 %v1486_v2, %v1380_v4  ;;  %v1484_v8 = vld [vmem:[%s2113_s4 + $0x24] sm:$0xf]  ;;  %v1372_v9 = vld [vmem:[%s2113_s4 + $0x28] sm:$0xf0]  ;;  %v1371_v10 = vor.u32 %v1485_v6, %v1370_v5  ;;  %v1362_v12 = vld [vmem:[%s2113_s4 + $0x10] sm:$0xf] }
   0x4   :  { %137 = vmatpush.bf16.msra.mxu0 %v1379_v3  ;;  %v1375_v11 = vor.u32 %v1484_v8, %v1372_v9  ;;  %v1483_v13 = vld [vmem:[%s2113_s4 + $0x14] sm:$0xf0]  ;;  %v1482_v14 = vld [vmem:[%s2113_s4 + $0x14] sm:$0xf]  ;;  %v1364_v15 = vld [vmem:[%s2113_s4 + $0x18] sm:$0xf0] }
   0x5   :  { %156 = vmatpush.bf16.msra.mxu1 %v1383_v7  ;;  %v1363_v16 = vor.u32 %v1483_v13, %v1362_v12  ;;  %v1367_v17 = vor.u32 %v1482_v14, %v1364_v15  ;;  %v1354_v18 = vld [vmem:[%s2113_s4] sm:$0xf]  ;;  %v1481_v19 = vld [vmem:[%s2113_s4 + $0x4] sm:$0xf0]  ;;  %v1480_v20 = vld [vmem:[%s2113_s4 + $0x4] sm:$0xf] }
   0x6   :  { %v1356_v21 = vld [vmem:[%s2113_s4 + $0x8] sm:$0xf0]  ;;  %v1355_v22 = vor.u32 %v1481_v19, %v1354_v18  ;;  %v1478_v24 = vld [vmem:[%s2114_s0] sm:$0xff]  ;;  %s1612_s28 = smov 32   ;;  %s1613_s29 = smov 96  }
   0x7   :  { %v1359_v23 = vor.u32 %v1480_v20, %v1356_v21  ;;  %v1479_v25 = vld [vmem:[%s2114_s0 + $0x8] sm:$0xff]  ;;  %v70_v26 = vld [vmem:[%s2115_s5] sm:$0x3]  ;;  %s1609_s5 = smov 64   ;;  %s1614_s17 = smov 16  }
   0x8   :  { %138 = vmatpush.bf16.msra.mxu0 %v1371_v10  ;;  %v72_v29 = vperm.slane %v70_v26, 0  ;;  %v73_v30 = vperm.slane %v70_v26, 1  ;;  %v183_v60 = vld [vmem:[%s2116_s1] sm:$0x1]  ;;  %s1615_s18 = smov 80  }
   0x9   :  { %157 = vmatpush.bf16.msra.mxu1 %v1375_v11  ;;  %v184_v61 = vsub.f32 1.0, %v183_v60 }
   0xb   :  { %v185_v62 = vmul.f32 -1e+09, %v184_v61 }
   0xc   :  { %139 = vmatpush.bf16.msra.mxu0 %v1363_v16 }
   0xd   :  { %158 = vmatpush.bf16.msra.mxu1 %v1367_v17  ;;  %v1784_v63 = vperm.slane %v185_v62, 0 }
  0x10   :  { %140 = vmatpush.bf16.msra.mxu0 %v1355_v22 }
  0x11   :  { %159 = vmatpush.bf16.msra.mxu1 %v1359_v23 }
  0x13   :  { %1384 = vmatmul.msk.bf16.vlgmr.msra.gmra.mxu0 %vm126_vm0, %v1478_v24 }
  0x14   :  { %1386 = vmatmul.msk.bf16.vlgmr.msra.gmra.mxu1 %vm126_vm0, %v1478_v24 }
  0x23   :  { %1385 = vmatmul.msk.bf16.gmra.mxu0 %vm126_vm0, %v1479_v25 }
  0x24   :  { %1387 = vmatmul.msk.bf16.gmra.mxu1 %vm126_vm0, %v1479_v25 }
  0x90   :  { %v142_v27 = vpop.f32.mrf.mxu0 }
  0x91   :  { %v161_v28 = vpop.f32.mrf.mxu1  ;;  %v143_v31 = vadd.f32 %v142_v27, %v72_v29 }
  0x92   :  { %v162_v32 = vadd.f32 %v161_v28, %v73_v30 }
  0x94   :  { %v171_v36 = vpack.c.bf16 %v162_v32, %v143_v31 }
  0x96   :  { %v189_v39 = vunpack.c.l.b16 %v171_v36  ;;  %v238_v40 = vunpack.c.h.b16 %v171_v36 }
  0x98   :  { %v144_v33 = vpop.f32.mrf.mxu0 }
  0x99   :  { %v145_v34 = vadd.f32 %v144_v33, %v72_v29  ;;  %v163_v35 = vpop.f32.mrf.mxu1 }
  0x9a   :  { %v164_v37 = vadd.f32 %v163_v35, %v73_v30 }
  0x9c   :  { %v172_v38 = vpack.c.bf16 %v164_v37, %v145_v34 }
  0x9e   :  { %v190_v41 = vunpack.c.l.b16 %v172_v38  ;;  %v239_v42 = vunpack.c.h.b16 %v172_v38 }
  0xa0   :  { %v1763_v43 = vpack.c.b16 %v190_v41, %v189_v39  ;;  %v1765_v44 = vpack.c.b16 %v239_v42, %v238_v40  ;;  %v147_v45 = vpop.f32.mrf.mxu0 }
  0xa1   :  { %v166_v46 = vpop.f32.mrf.mxu1  ;;  %v148_v47 = vadd.f32 %v147_v45, %v72_v29 }
  0xa2   :  { %252 = vmatpush.bf16.msra.mxu3 %v1765_v44  ;;  %192 = vrot.lane.b32.xlu0 %v1763_v43, %s1609_s5  ;;  %v167_v48 = vadd.f32 %v166_v46, %v73_v30 }
  0xa4   :  { %v1770_v49 = vpack.c.bf16 %v167_v48, %v148_v47 }
  0xa6   :  { %v614_v54 = vunpack.c.h.b16 %v1770_v49 }
  0xa8   :  { %v149_v50 = vpop.f32.mrf.mxu0 }
  0xa9   :  { %v168_v51 = vpop.f32.mrf.mxu1  ;;  %v150_v52 = vadd.f32 %v149_v50, %v72_v29  ;;  %v1808_v29 = vld [vmem:[%s2117_s6] sm:$0xff] }
  0xaa   :  { %v169_v53 = vadd.f32 %v168_v51, %v73_v30  ;;  %367 = vmatpush.bf16.msra.mxu2 %v1808_v29 }
  0xac   :  { %v1773_v55 = vpack.c.bf16 %v169_v53, %v150_v52 }
  0xae   :  { %v615_v56 = vunpack.c.h.b16 %v1773_v55 }
  0xb0   :  { %v1776_v57 = vpack.c.b16 %v615_v56, %v614_v54 }
 0x114   :  { %v193_v58 = vpop.permute.xlu0 %192 }
 0x115   :  { %v199_v59 = vsel %vm194_vm1, %v193_v58, 0 }
 0x116   :  { %208 = vmatpush.bf16.xpose.msrb.mxu0 %v199_v59 }
 0x11d   :  { %1388 = vmatmul.msk.bf16.vlgmr.msrb.gmra.mxu0 %vm194_vm1, %v1763_v43 }
 0x19a   :  { %v210_v0 = vpop.f32.mrf.mxu0 }
 0x19b   :  { %v211_v1 = vadd.f32 %v210_v0, %v1784_v63 }
 0x19d   :  { %v215_v2 = vsel %vm194_vm1, %v211_v1, -inf }
 0x19e   :  { %216 = vmax.xlane.f32.xlu0 %v215_v2 }
 0x1a2   :  { %v212_v3 = vpop.f32.mrf.mxu0 }
 0x1a3   :  { %v213_v4 = vadd.f32 %v212_v3, %v1784_v63 }
 0x1a5   :  { %v218_v5 = vsel %vm194_vm1, %v213_v4, -inf }
 0x1a6   :  { %219 = vmax.xlane.f32.xlu1 %v218_v5 }
 0x211   :  { %v217_v6 = vpop.xlane.xlu0 %216 }
 0x212   :  { %v221_v7 = vsub.f32 %v211_v1, %v217_v6 }
 0x214   :  { %v223_v8 = vmul.f32 1.442695, %v221_v7  ;;  %v566_v7 = vunpack.c.l.b16 %v1770_v49 }
 0x216   :  { %1519 = vpow2.f32 %v223_v8  ;;  %v567_v8 = vunpack.c.l.b16 %v1773_v55 }
 0x219   :  { %v220_v9 = vpop.xlane.xlu1 %219 }
 0x21a   :  { %v222_v10 = vsub.f32 %v213_v4, %v220_v9  ;;  %v1828_v9 = vpack.c.b16 %v567_v8, %v566_v7 }
 0x21c   :  { %v1520_v11 = vpop.eup %1519  ;;  %v225_v12 = vmul.f32 1.442695, %v222_v10 }
 0x21d   :  { %v227_v13 = vsel %vm194_vm1, %v1520_v11, 0.0 }
 0x21e   :  { %1521 = vpow2.f32 %v225_v12  ;;  %228 = vadd.xlane.f32.xlu1 %v227_v13 }
 0x224   :  { %v1522_v14 = vpop.eup %1521 }
 0x225   :  { %v230_v15 = vsel %vm194_vm1, %v1522_v14, 0.0 }
 0x226   :  { %231 = vadd.xlane.f32.xlu2 %v230_v15 }
 0x237   :  { %260 = vrot.lane.b32.xlu1 %v1763_v43, %s1610_s26 }
 0x23e   :  { %262 = vrot.lane.b32.xlu2 %v1763_v43, %s1611_s27 }
 0x246   :  { %376 = vrot.lane.b32.xlu2 %v1763_v43, %s1612_s28 }
 0x24e   :  { %374 = vrot.lane.b32.xlu2 %v1763_v43, %s1613_s29 }
 0x291   :  { %v229_v16 = vpop.xlane.xlu1 %228 }
 0x292   :  { %1523 = vrcp.f32 %v229_v16 }
 0x298   :  { %v1524_v18 = vpop.eup %1523 }
 0x299   :  { %v232_v17 = vpop.xlane.xlu2 %231  ;;  %v235_v21 = vmul.f32 %v1524_v18, %v1520_v11 }
 0x29a   :  { %1525 = vrcp.f32 %v232_v17 }
 0x2a0   :  { %v1526_v19 = vpop.eup %1525 }
 0x2a1   :  { %v263_v20 = vpop.permute.xlu2 %262  ;;  %v236_v22 = vmul.f32 %v1526_v19, %v1522_v14 }
 0x2a2   :  { %v268_v23 = vsel %vm194_vm1, %v263_v20, 0 }
 0x2a3   :  { %277 = vmatpush.bf16.xpose.msrb.mxu3 %v268_v23  ;;  %v237_v24 = vpack.c.bf16 %v236_v22, %v235_v21 }
 0x2a5   :  { %1389 = vmatmul.msk.bf16.vlgmr.msra.gmra.mxu3 %vm194_vm1, %v237_v24 }
 0x2a9   :  { %v377_v25 = vpop.permute.xlu2 %376  ;;  %v261_v28 = vpop.permute.xlu1 %260 }
 0x2aa   :  { %v382_v26 = vsel %vm194_vm1, %v377_v25, 0 }
 0x2ab   :  { %391 = vmatpush.bf16.xpose.msra.mxu0 %v382_v26  ;;  %v1489_v26 = vld [vmem:[%s2117_s6 + $0x8] sm:$0xff] }
 0x2ac   :  { %344 = vmatpush.bf16.msra.mxu3 %v1489_v26 }
 0x2b1   :  { %v375_v27 = vpop.permute.xlu2 %374 }
 0x2b2   :  { %1402 = vmatmul.msk.bf16.vlgmr.msra.gmra.mxu0 %vm194_vm1, %v375_v27  ;;  %v1490_v27 = vld [vmem:[%s2117_s6 + $0x10] sm:$0xff] }
 0x2b5   :  { %1390 = vmatmul.msk.bf16.vlgmr.msrb.gmra.mxu3 %vm194_vm1, %v261_v28 }
 0x2b6   :  { %458 = vmatpush.bf16.msrb.mxu3 %v1490_v27 }
 0x328   :  { %v254_v30 = vpop.f32.mrf.mxu3 }
 0x32f   :  { %v393_v31 = vpop.f32.mrf.mxu0 }
 0x330   :  { %v394_v32 = vadd.f32 %v393_v31, %v1784_v63  ;;  %v256_v33 = vpop.f32.mrf.mxu3 }
 0x331   :  { %v259_v34 = vpack.c.bf16 %v256_v33, %v254_v30 }
 0x332   :  { %v398_v35 = vsel %vm194_vm1, %v394_v32, -inf }
 0x333   :  { %399 = vmax.xlane.f32.xlu0 %v398_v35  ;;  %1401 = vmatmul.msk.bf16.vlgmr.msra.gmra.mxu2 %vm194_vm1, %v259_v34 }
 0x337   :  { %v395_v36 = vpop.f32.mrf.mxu0 }
 0x338   :  { %v396_v37 = vadd.f32 %v395_v36, %v1784_v63  ;;  %v279_v38 = vpop.f32.mrf.mxu3 }
 0x339   :  { %v280_v39 = vadd.f32 %v279_v38, %v1784_v63 }
 0x33a   :  { %v401_v40 = vsel %vm194_vm1, %v396_v37, -inf }
 0x33b   :  { %402 = vmax.xlane.f32.xlu0 %v401_v40  ;;  %v284_v41 = vsel %vm194_vm1, %v280_v39, -inf }
 0x33c   :  { %285 = vmax.xlane.f32.xlu1 %v284_v41 }
 0x340   :  { %v281_v42 = vpop.f32.mrf.mxu3 }
 0x341   :  { %v282_v45 = vadd.f32 %v281_v42, %v1784_v63  ;;  %v560_v42 = vld [vmem:[%s2116_s1 + $0x1] sm:$0x1] }
 0x343   :  { %v287_v46 = vsel %vm194_vm1, %v282_v45, -inf }
 0x344   :  { %288 = vmax.xlane.f32.xlu2 %v287_v46 }
 0x3a6   :  { %v400_v47 = vpop.xlane.xlu0 %399 }
 0x3a7   :  { %v404_v48 = vsub.f32 %v394_v32, %v400_v47 }
 0x3a9   :  { %v406_v50 = vmul.f32 1.442695, %v404_v48 }
 0x3ab   :  { %1527 = vpow2.f32 %v406_v50 }
 0x3ae   :  { %v403_v51 = vpop.xlane.xlu0 %402 }
 0x3af   :  { %v405_v52 = vsub.f32 %v396_v37, %v403_v51  ;;  %v286_v53 = vpop.xlane.xlu1 %285 }
 0x3b0   :  { %v290_v54 = vsub.f32 %v280_v39, %v286_v53 }
 0x3b1   :  { %v1528_v56 = vpop.eup %1527  ;;  %v408_v58 = vmul.f32 1.442695, %v405_v52 }
 0x3b2   :  { %v292_v59 = vmul.f32 1.442695, %v290_v54  ;;  %v410_v60 = vsel %vm194_vm1, %v1528_v56, 0.0 }
 0x3b3   :  { %1529 = vpow2.f32 %v408_v58  ;;  %411 = vadd.xlane.f32.xlu1 %v410_v60 }
 0x3b4   :  { %1531 = vpow2.f32 %v292_v59 }
 0x3b6   :  { %v369_v38 = vpop.f32.mrf.mxu2 }
 0x3b7   :  { %v289_v61 = vpop.xlane.xlu2 %288 }
 0x3b8   :  { %v291_v62 = vsub.f32 %v282_v45, %v289_v61  ;;  %v561_v45 = vsub.f32 1.0, %v560_v42 }
 0x3b9   :  { %v1530_v0 = vpop.eup %1529 }
 0x3ba   :  { %v1532_v1 = vpop.eup %1531  ;;  %v294_v2 = vmul.f32 1.442695, %v291_v62  ;;  %v413_v3 = vsel %vm194_vm1, %v1530_v0, 0.0  ;;  %v562_v51 = vmul.f32 -1e+09, %v561_v45 }
 0x3bb   :  { %414 = vadd.xlane.f32.xlu2 %v413_v3  ;;  %v296_v4 = vsel %vm194_vm1, %v1532_v1, 0.0 }
 0x3bc   :  { %1533 = vpow2.f32 %v294_v2  ;;  %297 = vadd.xlane.f32.xlu0 %v296_v4  ;;  %v1862_v52 = vperm.slane %v562_v51, 0  ;;  %v1902_v51 = vld [vmem:[%s2117_s6 + $0x18] sm:$0xff] }
 0x3be   :  { %v371_v46 = vpop.f32.mrf.mxu2 }
 0x3c2   :  { %v1534_v5 = vpop.eup %1533 }
 0x3c3   :  { %v299_v6 = vsel %vm194_vm1, %v1534_v5, 0.0 }
 0x3c4   :  { %300 = vadd.xlane.f32.xlu0 %v299_v6 }
 0x3cc   :  { %421 = vrot.lane.b32.xlu1 %v1765_v44, %s1613_s29 }
 0x3d3   :  { %569 = vrot.lane.b32.xlu2 %v1828_v9, %s1609_s5 }
 0x3d8   :  { %307 = vrot.lane.b32.xlu0 %v1765_v44, %s1610_s26 }
 0x3e0   :  { %469 = vrot.lane.b32.xlu0 %v1763_v43, %s1614_s17 }
 0x3e8   :  { %467 = vrot.lane.b32.xlu0 %v1763_v43, %s1615_s18 }
 0x426   :  { %v412_v55 = vpop.xlane.xlu1 %411 }
 0x42e   :  { %v415_v17 = vpop.xlane.xlu2 %414 }
 0x42f   :  { %v298_v10 = vpop.xlane.xlu0 %297 }
 0x436   :  { %v570_v30 = vpop.permute.xlu2 %569 }
 0x437   :  { %v301_v49 = vpop.xlane.xlu0 %300  ;;  %v575_v33 = vsel %vm194_vm1, %v570_v30, 0 }
 0x438   :  { %1535 = vrcp.f32 %v301_v49 }
 0x439   :  { %1537 = vrcp.f32 %v298_v10 }
 0x43a   :  { %1539 = vrcp.f32 %v415_v17 }
 0x43b   :  { %1541 = vrcp.f32 %v412_v55 }
 0x43e   :  { %v1536_v11 = vpop.eup %1535  ;;  %v422_v16 = vpop.permute.xlu1 %421 }
 0x43f   :  { %v1538_v12 = vpop.eup %1537  ;;  %v305_v13 = vmul.f32 %v1536_v11, %v1534_v5 }
 0x440   :  { %v304_v14 = vmul.f32 %v1538_v12, %v1532_v1  ;;  %v1540_v20 = vpop.eup %1539 }
 0x441   :  { %v1542_v21 = vpop.eup %1541  ;;  %v419_v22 = vmul.f32 %v1540_v20, %v1530_v0 }
 0x442   :  { %v306_v18 = vpack.c.bf16 %v305_v13, %v304_v14  ;;  %v418_v23 = vmul.f32 %v1542_v21, %v1528_v56 }
 0x444   :  { %v420_v25 = vpack.c.bf16 %v419_v22, %v418_v23 }
 0x44a   :  { %v308_v15 = vpop.permute.xlu0 %307 }
 0x44b   :  { %320 = vmatpush.bf16.msrb.mxu1 %v308_v15 }
 0x44e   :  { %1391 = vmatmul.msk.bf16.vlgmr.msrb.gmra.mxu1 %vm194_vm1, %v306_v18 }
 0x44f   :  { %434 = vmatpush.bf16.msra.mxu1 %v422_v16 }
 0x452   :  { %v470_v43 = vpop.permute.xlu0 %469 }
 0x453   :  { %v475_v19 = vsel %vm194_vm1, %v470_v43, 0  ;;  %551 = vmatpush.bf16.msrb.mxu1 %v1902_v51 }
 0x454   :  { %484 = vmatpush.bf16.xpose.msrb.mxu2 %v475_v19 }
 0x45a   :  { %v468_v24 = vpop.permute.xlu0 %467 }
 0x45b   :  { %1409 = vmatmul.msk.bf16.vlgmr.msrb.gmra.mxu2 %vm194_vm1, %v468_v24 }
 0x45c   :  { %628 = vmatpush.bf16.msra.mxu2 %v1776_v57 }
 0x45e   :  { %1403 = vmatmul.msk.bf16.vlgmr.msra.gmra.mxu1 %vm194_vm1, %v420_v25 }
 0x460   :  { %731 = vmatpush.bf16.msrb.mxu2 %v1808_v29 }
 0x4cb   :  { %v322_v28 = vpop.f32.mrf.mxu1 }
 0x4d3   :  { %v324_v31 = vpop.f32.mrf.mxu1 }
 0x4d4   :  { %v327_v32 = vpack.c.bf16 %v324_v31, %v322_v28 }
 0x4d6   :  { %1396 = vmatmul.msk.bf16.vlgmr.msra.gmra.mxu3 %vm194_vm1, %v327_v32 }
 0x4d7   :  { %584 = vmatpush.bf16.xpose.msra.mxu3 %v575_v33 }
 0x4db   :  { %v436_v29 = vpop.f32.mrf.mxu1 }
 0x4de   :  { %v486_v61 = vpop.f32.mrf.mxu2 }
 0x4df   :  { %v487_v62 = vadd.f32 %v486_v61, %v1784_v63 }
 0x4e1   :  { %v491_v0 = vsel %vm194_vm1, %v487_v62, -inf }
 0x4e3   :  { %v438_v34 = vpop.f32.mrf.mxu1 }
 0x4e4   :  { %v441_v35 = vpack.c.bf16 %v438_v34, %v436_v29 }
 0x4e6   :  { %1408 = vmatmul.msk.bf16.vlgmr.msrb.gmra.mxu3 %vm194_vm1, %v441_v35  ;;  %v488_v10 = vpop.f32.mrf.mxu2 }
 0x4e7   :  { %714 = vmatpush.bf16.msrb.mxu3 %v1489_v26  ;;  %v489_v49 = vadd.f32 %v488_v10, %v1784_v63 }
 0x4e9   :  { %v494_v14 = vsel %vm194_vm1, %v489_v49, -inf }
 0x4f6   :  { %1416 = vmatmul.msk.bf16.vlgmr.msra.gmra.mxu3 %vm194_vm1, %v1828_v9 }
 0x4f7   :  { %816 = vmatpush.bf16.msra.mxu3 %v1490_v27 }
 0x559   :  { %v346_v36 = vpop.f32.mrf.mxu3 }
 0x55a   :  { %v370_v39 = vadd.f32 %v369_v38, %v346_v36 }
 0x561   :  { %v348_v37 = vpop.f32.mrf.mxu3 }
 0x562   :  { %v372_v47 = vadd.f32 %v371_v46, %v348_v37 }
 0x569   :  { %v460_v40 = vpop.f32.mrf.mxu3 }
 0x56a   :  { %v1855_v41 = vadd.f32 %v460_v40, %v370_v39 }
 0x571   :  { %v462_v48 = vpop.f32.mrf.mxu3 }
 0x572   :  { %v1860_v50 = vadd.f32 %v462_v48, %v372_v47 }
 0x579   :  { %v586_v53 = vpop.f32.mrf.mxu3 }
 0x57a   :  { %v587_v54 = vadd.f32 %v586_v53, %v1862_v52 }
 0x57c   :  { %v591_v56 = vsel %vm194_vm1, %v587_v54, -inf }
 0x57d   :  { %592 = vmax.xlane.f32.xlu1 %v591_v56 }
 0x581   :  { %v588_v58 = vpop.f32.mrf.mxu3 }
 0x582   :  { %v589_v59 = vadd.f32 %v588_v58, %v1862_v52 }
 0x584   :  { %v594_v60 = vsel %vm194_vm1, %v589_v59, -inf }
 0x585   :  { %595 = vmax.xlane.f32.xlu0 %v594_v60 }
 0x58d   :  { %492 = vmax.xlane.f32.xlu0 %v491_v0 }
 0x5f0   :  { %v593_v1 = vpop.xlane.xlu1 %592 }
 0x5f1   :  { %v597_v2 = vsub.f32 %v587_v54, %v593_v1 }
 0x5f3   :  { %v599_v3 = vmul.f32 1.442695, %v597_v2 }
 0x5f5   :  { %1543 = vpow2.f32 %v599_v3 }
 0x5f8   :  { %v596_v4 = vpop.xlane.xlu0 %595 }
 0x5f9   :  { %v598_v5 = vsub.f32 %v589_v59, %v596_v4 }
 0x5fb   :  { %v1544_v6 = vpop.eup %1543  ;;  %v601_v7 = vmul.f32 1.442695, %v598_v5 }
 0x5fc   :  { %v603_v8 = vsel %vm194_vm1, %v1544_v6, 0.0 }
 0x5fd   :  { %1545 = vpow2.f32 %v601_v7  ;;  %604 = vadd.xlane.f32.xlu2 %v603_v8 }
 0x600   :  { %v493_v55 = vpop.xlane.xlu0 %492 }
 0x601   :  { %v497_v11 = vsub.f32 %v487_v62, %v493_v55 }
 0x603   :  { %v1546_v12 = vpop.eup %1545  ;;  %v499_v13 = vmul.f32 1.442695, %v497_v11 }
 0x604   :  { %v606_v15 = vsel %vm194_vm1, %v1546_v12, 0.0 }
 0x605   :  { %1547 = vpow2.f32 %v499_v13  ;;  %495 = vmax.xlane.f32.xlu2 %v494_v14  ;;  %607 = vadd.xlane.f32.xlu1 %v606_v15  ;;  %v54_v14 = vld [vmem:[%s2114_s0] sm:$0xff]  }
 0x60b   :  { %v1548_v16 = vpop.eup %1547 }
 0x60c   :  { %v503_v17 = vsel %vm194_vm1, %v1548_v16, 0.0 }
 0x60d   :  { %504 = vadd.xlane.f32.xlu1 %v503_v17 }
 0x61d   :  { %514 = vrot.lane.b32.xlu2 %v1765_v44, %s1615_s18 }
 0x625   :  { %740 = vrot.lane.b32.xlu2 %v1828_v9, %s1612_s28 }
 0x626   :  { %638 = vrot.lane.b32.xlu1 %v1828_v9, %s1611_s27 }
 0x62d   :  { %825 = vrot.lane.b32.xlu2 %v1828_v9, %s1615_s18 }
 0x62e   :  { %738 = vrot.lane.b32.xlu1 %v1828_v9, %s1613_s29 }
 0x670   :  { %v605_v63 = vpop.xlane.xlu2 %604 }
 0x671   :  { %1549 = vrcp.f32 %v605_v63 }
 0x677   :  { %v1550_v44 = vpop.eup %1549 }
 0x678   :  { %v496_v18 = vpop.xlane.xlu2 %495  ;;  %v608_v43 = vpop.xlane.xlu1 %607  ;;  %v611_v22 = vmul.f32 %v1550_v44, %v1544_v6 }
 0x679   :  { %v498_v19 = vsub.f32 %v489_v49, %v496_v18  ;;  %1551 = vrcp.f32 %v608_v43  ;;  %v58_v18 = vunpack.c.l.bf16 %v54_v14 }
 0x67b   :  { %v501_v20 = vmul.f32 1.442695, %v498_v19 }
 0x67d   :  { %1553 = vpow2.f32 %v501_v20 }
 0x67f   :  { %v1552_v21 = vpop.eup %1551 }
 0x680   :  { %v612_v23 = vmul.f32 %v1552_v21, %v1546_v12  ;;  %v515_v24 = vpop.permute.xlu2 %514  ;;  %v505_v28 = vpop.xlane.xlu1 %504 }
 0x681   :  { %527 = vmatpush.bf16.msrb.mxu0 %v515_v24  ;;  %1555 = vrcp.f32 %v505_v28 }
 0x682   :  { %v613_v25 = vpack.c.bf16 %v612_v23, %v611_v22 }
 0x683   :  { %v1554_v26 = vpop.eup %1553 }
 0x684   :  { %1417 = vmatmul.msk.bf16.vlgmr.msra.gmra.mxu2 %vm194_vm1, %v613_v25  ;;  %v506_v27 = vsel %vm194_vm1, %v1554_v26, 0.0 }
 0x685   :  { %507 = vadd.xlane.f32.xlu0 %v506_v27 }
 0x687   :  { %v1556_v33 = vpop.eup %1555 }
 0x688   :  { %v511_v34 = vmul.f32 %v1556_v33, %v1548_v16  ;;  %v741_v36 = vpop.permute.xlu2 %740  ;;  %v1930_v16 = vld [vmem:[%s2118_s7] ss:$0 sm:$0xff] }
 0x689   :  { %v746_v38 = vsel %vm194_vm1, %v741_v36, 0 }
 0x690   :  { %v826_v47 = vpop.permute.xlu2 %825 }
 0x698   :  { %v639_v30 = vpop.permute.xlu1 %638 }
 0x699   :  { %v644_v31 = vsel %vm194_vm1, %v639_v30, 0  ;;  %636 = vrot.lane.b32.xlu0 %v1828_v9, %s1610_s26 }
 0x69a   :  { %653 = vmatpush.bf16.xpose.msra.mxu0 %v644_v31 }
 0x6a0   :  { %v739_v48 = vpop.permute.xlu1 %738 }
 0x6a1   :  { %827 = vrot.lane.b32.xlu0 %v1828_v9, %s1614_s17 }
 0x6f8   :  { %v508_v32 = vpop.xlane.xlu0 %507 }
 0x6f9   :  { %1557 = vrcp.f32 %v508_v32 }
 0x6ff   :  { %v1558_v29 = vpop.eup %1557 }
 0x700   :  { %v512_v35 = vmul.f32 %v1558_v29, %v1554_v26 }
 0x702   :  { %v513_v37 = vpack.c.bf16 %v512_v35, %v511_v34 }
 0x704   :  { %1410 = vmatmul.msk.bf16.vlgmr.msrb.gmra.mxu0 %vm194_vm1, %v513_v37 }
 0x705   :  { %755 = vmatpush.bf16.xpose.msrb.mxu0 %v746_v38 }
 0x707   :  { %v630_v39 = vpop.f32.mrf.mxu2 }
 0x70b   :  { %v637_v40 = vpop.permute.xlu0 %636 }
 0x70f   :  { %v632_v42 = vpop.f32.mrf.mxu2 }
 0x710   :  { %v635_v45 = vpack.c.bf16 %v632_v42, %v630_v39 }
 0x712   :  { %1421 = vmatmul.msk.bf16.vlgmr.msrb.gmra.mxu2 %vm194_vm1, %v635_v45 }
 0x713   :  { %v828_v9 = vpop.permute.xlu0 %827 }
 0x714   :  { %v833_v46 = vsel %vm194_vm1, %v828_v9, 0  ;;  %1418 = vmatmul.msk.bf16.vlgmr.msra.gmra.mxu0 %vm194_vm1, %v637_v40 }
 0x715   :  { %842 = vmatpush.bf16.xpose.msra.mxu2 %v833_v46 }
 0x722   :  { %1425 = vmatmul.msk.bf16.vlgmr.msra.gmra.mxu2 %vm194_vm1, %v826_v47 }
 0x724   :  { %1422 = vmatmul.msk.bf16.vlgmr.msrb.gmra.mxu0 %vm194_vm1, %v739_v48 }
 0x781   :  { %v529_v53 = vpop.f32.mrf.mxu0 }
 0x789   :  { %v531_v54 = vpop.f32.mrf.mxu0 }
 0x78a   :  { %v534_v56 = vpack.c.bf16 %v531_v54, %v529_v53 }
 0x78c   :  { %1415 = vmatmul.msk.bf16.vlgmr.msrb.gmra.mxu1 %vm194_vm1, %v534_v56 }
 0x791   :  { %v655_v58 = vpop.f32.mrf.mxu0 }
 0x792   :  { %v656_v59 = vadd.f32 %v655_v58, %v1862_v52 }
 0x794   :  { %v660_v60 = vsel %vm194_vm1, %v656_v59, -inf }
 0x795   :  { %v1908_v61 = vpop.f32.mrf.mxu2  ;;  %661 = vmax.xlane.f32.xlu0 %v660_v60 }
 0x799   :  { %v657_v62 = vpop.f32.mrf.mxu0 }
 0x79a   :  { %v658_v0 = vadd.f32 %v657_v62, %v1862_v52 }
 0x79c   :  { %v663_v1 = vsel %vm194_vm1, %v658_v0, -inf }
 0x79d   :  { %v1912_v2 = vpop.f32.mrf.mxu2  ;;  %664 = vmax.xlane.f32.xlu1 %v663_v1 }
 0x7a1   :  { %v757_v3 = vpop.f32.mrf.mxu0 }
 0x7a2   :  { %v758_v4 = vadd.f32 %v757_v3, %v1862_v52 }
 0x7a4   :  { %v762_v5 = vsel %vm194_vm1, %v758_v4, -inf }
 0x7a5   :  { %763 = vmax.xlane.f32.xlu2 %v762_v5  ;;  %v844_v6 = vpop.f32.mrf.mxu2 }
 0x7a6   :  { %v845_v7 = vadd.f32 %v844_v6, %v1862_v52 }
 0x7a8   :  { %v849_v8 = vsel %vm194_vm1, %v845_v7, -inf }
 0x7a9   :  { %v759_v10 = vpop.f32.mrf.mxu0  ;;  %850 = vmax.xlane.f32.xlu1 %v849_v8 }
 0x7aa   :  { %v760_v49 = vadd.f32 %v759_v10, %v1862_v52 }
 0x7ac   :  { %v765_v55 = vsel %vm194_vm1, %v760_v49, -inf }
 0x7ad   :  { %766 = vmax.xlane.f32.xlu0 %v765_v55  ;;  %v846_v11 = vpop.f32.mrf.mxu2 }
 0x7ae   :  { %v847_v12 = vadd.f32 %v846_v11, %v1862_v52 }
 0x7b0   :  { %v852_v13 = vsel %vm194_vm1, %v847_v12, -inf }
 0x7b1   :  { %853 = vmax.xlane.f32.xlu2 %v852_v13 }
 0x7c9   :  { %683 = vrot.lane.b32.xlu2 %v1776_v57, %s1610_s26 }
 0x808   :  { %v662_v15 = vpop.xlane.xlu0 %661 }
 0x809   :  { %v666_v17 = vsub.f32 %v656_v59, %v662_v15  ;;  %v553_v63 = vpop.f32.mrf.mxu1  ;;  %v59_v59 = vunpack.c.h.bf16 %v54_v14 }
 0x80a   :  { %v558_v52 = vadd.f32 %v553_v63, %v1855_v41 }
 0x80b   :  { %v668_v43 = vmul.f32 1.442695, %v666_v17 }
 0x80c   :  { %v916_v19 = vadd.f32 %v1930_v16, %v558_v52 }
 0x80d   :  { %1559 = vpow2.f32 %v668_v43 }
 0x80e   :  { %v1934_v20 = vadd.f32 %v916_v19, %v58_v18  ;;  %v1616_v19 = vmov 64.0  }
 0x810   :  { %v665_v44 = vpop.xlane.xlu1 %664  ;;  %v926_v21 = vsel %vm126_vm0, %v1934_v20, 0.0 }
 0x811   :  { %v667_v22 = vsub.f32 %v658_v0, %v665_v44  ;;  %927 = vadd.xlane.f32.xlu2 %v926_v21  ;;  %v555_v54 = vpop.f32.mrf.mxu1 }
 0x812   :  { %v559_v56 = vadd.f32 %v555_v54, %v1860_v50 }
 0x813   :  { %v1560_v23 = vpop.eup %1559  ;;  %v670_v24 = vmul.f32 1.442695, %v667_v22 }
 0x814   :  { %v672_v25 = vsel %vm194_vm1, %v1560_v23, 0.0  ;;  %v917_v58 = vadd.f32 %v1930_v16, %v559_v56 }
 0x815   :  { %1561 = vpow2.f32 %v670_v24  ;;  %673 = vadd.xlane.f32.xlu0 %v672_v25 }
 0x816   :  { %v921_v60 = vadd.f32 %v917_v58, %v59_v59 }
 0x818   :  { %v764_v41 = vpop.xlane.xlu2 %763  ;;  %v929_v62 = vsel %vm126_vm0, %v921_v60, 0.0 }
 0x819   :  { %v768_v26 = vsub.f32 %v758_v4, %v764_v41 }
 0x81b   :  { %v1562_v27 = vpop.eup %1561  ;;  %v770_v28 = vmul.f32 1.442695, %v768_v26 }
 0x81c   :  { %v851_v30 = vpop.xlane.xlu1 %850  ;;  %v675_v31 = vsel %vm194_vm1, %v1562_v27, 0.0 }
 0x81d   :  { %1563 = vpow2.f32 %v770_v28  ;;  %v855_v32 = vsub.f32 %v845_v7, %v851_v30  ;;  %676 = vadd.xlane.f32.xlu1 %v675_v31 }
 0x81f   :  { %v857_v33 = vmul.f32 1.442695, %v855_v32 }
 0x820   :  { %v767_v29 = vpop.xlane.xlu0 %766 }
 0x821   :  { %v769_v34 = vsub.f32 %v760_v49, %v767_v29  ;;  %1565 = vpow2.f32 %v857_v33 }
 0x823   :  { %v1564_v35 = vpop.eup %1563  ;;  %v772_v36 = vmul.f32 1.442695, %v769_v34 }
 0x824   :  { %v854_v37 = vpop.xlane.xlu2 %853  ;;  %v774_v38 = vsel %vm194_vm1, %v1564_v35, 0.0 }
 0x825   :  { %1567 = vpow2.f32 %v772_v36  ;;  %v856_v39 = vsub.f32 %v847_v12, %v854_v37  ;;  %775 = vadd.xlane.f32.xlu0 %v774_v38 }
 0x827   :  { %v859_v40 = vmul.f32 1.442695, %v856_v39  ;;  %v1566_v42 = vpop.eup %1565 }
 0x828   :  { %v861_v46 = vsel %vm194_vm1, %v1566_v42, 0.0 }
 0x829   :  { %1569 = vpow2.f32 %v859_v40 }
 0x82b   :  { %v1568_v45 = vpop.eup %1567 }
 0x82c   :  { %v684_v9 = vpop.permute.xlu2 %683  ;;  %v777_v47 = vsel %vm194_vm1, %v1568_v45, 0.0 }
 0x82d   :  { %696 = vmatpush.bf16.msra.mxu1 %v684_v9  ;;  %862 = vadd.xlane.f32.xlu0 %v861_v46 }
 0x82e   :  { %778 = vadd.xlane.f32.xlu1 %v777_v47 }
 0x82f   :  { %v1570_v48 = vpop.eup %1569 }
 0x830   :  { %v864_v53 = vsel %vm194_vm1, %v1570_v48, 0.0 }
 0x836   :  { %865 = vadd.xlane.f32.xlu1 %v864_v53 }
 0x841   :  { %785 = vrot.lane.b32.xlu0 %v1776_v57, %s1613_s29 }
 0x84f   :  { %872 = vrot.lane.b32.xlu1 %v1776_v57, %s1615_s18 }
 0x86b   :  { %930 = vadd.xlane.f32.xlu0 %v929_v62 }
 0x884   :  { %v928_v62 = vpop.xlane.xlu2 %927 }
 0x888   :  { %v674_v0 = vpop.xlane.xlu0 %673 }
 0x889   :  { %1571 = vrcp.f32 %v674_v0 }
 0x88f   :  { %v1572_v3 = vpop.eup %1571 }
 0x890   :  { %v677_v1 = vpop.xlane.xlu1 %676  ;;  %v680_v5 = vmul.f32 %v1572_v3, %v1560_v23 }
 0x891   :  { %1573 = vrcp.f32 %v677_v1 }
 0x897   :  { %v1574_v4 = vpop.eup %1573 }
 0x898   :  { %v681_v6 = vmul.f32 %v1574_v4, %v1562_v27  ;;  %v776_v57 = vpop.xlane.xlu0 %775 }
 0x89a   :  { %v682_v7 = vpack.c.bf16 %v681_v6, %v680_v5 }
 0x89c   :  { %1419 = vmatmul.msk.bf16.vlgmr.msra.gmra.mxu1 %vm194_vm1, %v682_v7 }
 0x8a0   :  { %v863_v8 = vpop.xlane.xlu0 %862 }
 0x8a1   :  { %v779_v50 = vpop.xlane.xlu1 %778 }
 0x8a2   :  { %1575 = vrcp.f32 %v779_v50 }
 0x8a3   :  { %1577 = vrcp.f32 %v776_v57 }
 0x8a8   :  { %v1576_v10 = vpop.eup %1575 }
 0x8a9   :  { %v1578_v49 = vpop.eup %1577  ;;  %v783_v55 = vmul.f32 %v1576_v10, %v1568_v45  ;;  %v866_v12 = vpop.xlane.xlu1 %865  ;;  %v56_v45 = vld [vmem:[%s2114_s0 + $0x8] sm:$0xff]   ;;  %v1495_v10 = vld [vmem:[%s2121_s10 + $0x18] sm:$0xff] }
 0x8aa   :  { %v782_v11 = vmul.f32 %v1578_v49, %v1564_v35  ;;  %1579 = vrcp.f32 %v866_v12  ;;  %v61_v1 = vunpack.c.h.bf16 %v56_v45 }
 0x8ab   :  { %1581 = vrcp.f32 %v863_v8 }
 0x8ac   :  { %v784_v14 = vpack.c.bf16 %v783_v55, %v782_v11  ;;  %1583 = vrcp.f32 %v1616_v19 }
 0x8b0   :  { %v1580_v15 = vpop.eup %1579 }
 0x8b1   :  { %v1582_v17 = vpop.eup %1581  ;;  %v870_v63 = vmul.f32 %v1580_v15, %v1570_v48  ;;  %v60_v48 = vunpack.c.l.bf16 %v56_v45 }
 0x8b2   :  { %v869_v52 = vmul.f32 %v1582_v17, %v1566_v42  ;;  %v1584_v44 = vpop.eup %1583 }
 0x8b3   :  { %v786_v13 = vpop.permute.xlu0 %785  ;;  %v939_v21 = vmul.f32 64.0, %v1584_v44  ;;  %vm943_vm2 = vweird.f32 %v1584_v44 }
 0x8b4   :  { %798 = vmatpush.bf16.msrb.mxu1 %v786_v13  ;;  %v871_v43 = vpack.c.bf16 %v870_v63, %v869_v52  ;;  %v1493_v13 = vld [vmem:[%s2121_s10 + $0x8] sm:$0xff]  ;;  %v1492_v52 = vld [vmem:[%s2121_s10] sm:$0xff] }
 0x8b5   :  { %v940_v22 = vsub.f32 1.0, %v939_v21 }
 0x8b7   :  { %1423 = vmatmul.msk.bf16.vlgmr.msrb.gmra.mxu1 %vm194_vm1, %v784_v14  ;;  %v941_v23 = vmul.f32 %v1584_v44, %v940_v22 }
 0x8b8   :  { %903 = vmatpush.bf16.msra.mxu1 %v1902_v51 }
 0x8b9   :  { %v942_v51 = vadd.f32 %v1584_v44, %v941_v23 }
 0x8bb   :  { %v1955_v24 = vsel %vm943_vm2, %v1584_v44, %v942_v51 }
 0x8bc   :  { %v945_v3 = vmul.f32 %v1955_v24, %v928_v62 }
 0x8be   :  { %v949_v6 = vsub.f32 %v1934_v20, %v945_v3  ;;  %v1494_v20 = vld [vmem:[%s2121_s10 + $0x10] sm:$0xff] }
 0x8c1   :  { %v873_v18 = vpop.permute.xlu1 %872 }
 0x8c2   :  { %885 = vmatpush.bf16.msra.mxu0 %v873_v18 }
 0x8c5   :  { %1426 = vmatmul.msk.bf16.vlgmr.msra.gmra.mxu0 %vm194_vm1, %v871_v43 }
 0x8de   :  { %v931_v25 = vpop.xlane.xlu0 %930 }
 0x8df   :  { %v946_v41 = vmul.f32 %v1955_v24, %v931_v25 }
 0x8e1   :  { %v1958_v26 = vsub.f32 %v921_v60, %v946_v41 }
 0x8e3   :  { %v954_v27 = vmul.f32 %v1958_v26, %v1958_v26 }
 0x8e5   :  { %v960_v28 = vsel %vm126_vm0, %v954_v27, 0.0 }
 0x8e6   :  { %961 = vadd.xlane.f32.xlu0 %v960_v28 }
 0x919   :  { %v698_v30 = vpop.f32.mrf.mxu1 }
 0x921   :  { %v700_v31 = vpop.f32.mrf.mxu1 }
 0x922   :  { %v703_v32 = vpack.c.bf16 %v700_v31, %v698_v30 }
 0x924   :  { %1420 = vmatmul.msk.bf16.vlgmr.msrb.gmra.mxu3 %vm194_vm1, %v703_v32 }
 0x925   :  { %1083 = vmatpush.bf16.msrb.mxu3 %v1495_v10 }
 0x929   :  { %1084 = vmatpush.bf16.msrb.mxu3 %v1494_v20 }
 0x92d   :  { %1085 = vmatpush.bf16.msrb.mxu3 %v1493_v13  ;;  %v1500_v13 = vld [vmem:[%s2123_s12 + $0x20] sm:$0xff] }
 0x931   :  { %1086 = vmatpush.bf16.msrb.mxu3 %v1492_v52  ;;  %v1496_v52 = vld [vmem:[%s2123_s12] sm:$0xff] }
 0x934   :  { %v800_v33 = vpop.f32.mrf.mxu1 }
 0x93c   :  { %v802_v29 = vpop.f32.mrf.mxu1 }
 0x93d   :  { %v805_v34 = vpack.c.bf16 %v802_v29, %v800_v33 }
 0x93f   :  { %1424 = vmatmul.msk.bf16.vlgmr.msra.gmra.mxu3 %vm194_vm1, %v805_v34  ;;  %v1513_v34 = vld [vmem:[%s2119_s8] ss:$0 sm:$0xff] }
 0x942   :  { %v887_v35 = vpop.f32.mrf.mxu0 }
 0x94a   :  { %v889_v36 = vpop.f32.mrf.mxu0 }
 0x94b   :  { %v892_v37 = vpack.c.bf16 %v889_v36, %v887_v35 }
 0x94d   :  { %1427 = vmatmul.msk.bf16.vlgmr.msra.gmra.mxu1 %vm194_vm1, %v892_v37 }
 0x959   :  { %v962_v50 = vpop.xlane.xlu0 %961 }
 0x95a   :  { %v970_v8 = vmul.f32 %v962_v50, %v1955_v24 }
 0x95c   :  { %v974_v49 = vadd.f32 1e-12, %v970_v8  ;;  %v1502_v8 = vld [vmem:[%s2123_s12 + $0x30] sm:$0xff] }
 0x95e   :  { %1585 = vrsqrt.f32 %v974_v49  ;;  %vm993_vm4 = vweird.f32 %v974_v49 }
 0x964   :  { %v1586_v17 = vpop.eup %1585 }
 0x965   :  { %v988_v43 = vmul.f32 %v1586_v17, %v974_v49  ;;  %vm994_vm3 = vweird.f32 %v1586_v17 }
 0x966   :  { %vm995_vm5 = vmor %vm993_vm4, %vm994_vm3  ;;  %vm1335_vm3 = vcmask 519168  }
 0x967   :  { %v989_v21 = vmul.f32 %v1586_v17, %v988_v43 }
 0x969   :  { %v990_v25 = vmul.f32 0.5, %v989_v21 }
 0x96b   :  { %v991_v41 = vsub.f32 1.5, %v990_v25 }
 0x96d   :  { %v992_v28 = vmul.f32 %v1586_v17, %v991_v41 }
 0x96f   :  { %v996_v32 = vsel %vm995_vm5, %v1586_v17, %v992_v28  ;;  %v1498_v17 = vld [vmem:[%s2123_s12 + $0x10] sm:$0xff] }
 0x970   :  { %v1018_v35 = vmul.f32 %v996_v32, %v1958_v26 }
 0x9a7   :  { %v716_v38 = vpop.f32.mrf.mxu3 }
 0x9a8   :  { %v734_v42 = vadd.f32 %v1908_v61, %v716_v38  ;;  %v1514_v38 = vld [vmem:[%s2120_s9] ss:$0 sm:$0xff] }
 0x9af   :  { %v718_v39 = vpop.f32.mrf.mxu3 }
 0x9b0   :  { %v736_v56 = vadd.f32 %v1912_v2, %v718_v39  ;;  %v953_v2 = vmul.f32 %v949_v6, %v949_v6  ;;  %v1025_v39 = vmul.f32 %v1513_v34, %v1018_v35 }
 0x9b2   :  { %v957_v57 = vsel %vm126_vm0, %v953_v2, 0.0  ;;  %v2011_v45 = vadd.f32 %v1514_v38, %v1025_v39 }
 0x9c2   :  { %v818_v40 = vpop.f32.mrf.mxu3 }
 0x9c3   :  { %v823_v9 = vadd.f32 %v818_v40, %v734_v42 }
 0x9ca   :  { %v905_v46 = vpop.f32.mrf.mxu1  ;;  %v820_v54 = vpop.f32.mrf.mxu3 }
 0x9cb   :  { %v910_v47 = vadd.f32 %v905_v46, %v823_v9  ;;  %v824_v59 = vadd.f32 %v820_v54, %v736_v56 }
 0x9cd   :  { %v918_v53 = vadd.f32 %v1930_v16, %v910_v47 }
 0x9cf   :  { %v922_v58 = vadd.f32 %v918_v53, %v60_v48 }
 0x9d1   :  { %v932_v60 = vsel %vm126_vm0, %v922_v58, 0.0 }
 0x9d2   :  { %v907_v0 = vpop.f32.mrf.mxu1  ;;  %933 = vadd.xlane.f32.xlu1 %v932_v60 }
 0x9d3   :  { %v911_v61 = vadd.f32 %v907_v0, %v824_v59 }
 0x9d5   :  { %v919_v4 = vadd.f32 %v1930_v16, %v911_v61 }
 0x9d7   :  { %v923_v5 = vadd.f32 %v919_v4, %v61_v1 }
 0x9d9   :  { %v935_v7 = vsel %vm126_vm0, %v923_v5, 0.0 }
 0x9da   :  { %936 = vadd.xlane.f32.xlu2 %v935_v7  ;;  %v1503_v7 = vld [vmem:[%s2123_s12 + $0x38] sm:$0xff] }
 0x9db   :  { %1204 = vmatpush.bf16.msrb.mxu2 %v1503_v7 }
 0x9df   :  { %1205 = vmatpush.bf16.msrb.mxu2 %v1502_v8  ;;  %v1516_v8 = vld [vmem:[%s2124_s13] ss:$0 sm:$0xff] }
 0x9e2   :  { %958 = vadd.xlane.f32.xlu2 %v957_v57 }
 0xa45   :  { %v934_v55 = vpop.xlane.xlu1 %933 }
 0xa46   :  { %v947_v16 = vmul.f32 %v1955_v24, %v934_v55 }
 0xa48   :  { %v1986_v11 = vsub.f32 %v922_v58, %v947_v16  ;;  %v1501_v16 = vld [vmem:[%s2123_s12 + $0x28] sm:$0xff] }
 0xa49   :  { %1206 = vmatpush.bf16.msrb.mxu2 %v1501_v16 }
 0xa4a   :  { %v955_v12 = vmul.f32 %v1986_v11, %v1986_v11 }
 0xa4c   :  { %v963_v14 = vsel %vm126_vm0, %v955_v12, 0.0 }
 0xa4d   :  { %964 = vadd.xlane.f32.xlu2 %v963_v14  ;;  %v937_v15 = vpop.xlane.xlu2 %936  ;;  %1207 = vmatpush.bf16.msrb.mxu2 %v1500_v13 }
 0xa4e   :  { %v948_v63 = vmul.f32 %v1955_v24, %v937_v15  ;;  %v1499_v15 = vld [vmem:[%s2123_s12 + $0x18] sm:$0xff] }
 0xa50   :  { %v1998_v18 = vsub.f32 %v923_v5, %v948_v63  ;;  %v1497_v63 = vld [vmem:[%s2123_s12 + $0x8] sm:$0xff] }
 0xa51   :  { %1208 = vmatpush.bf16.msrb.mxu2 %v1499_v15 }
 0xa52   :  { %v956_v19 = vmul.f32 %v1998_v18, %v1998_v18 }
 0xa54   :  { %v966_v44 = vsel %vm126_vm0, %v956_v19, 0.0 }
 0xa55   :  { %967 = vadd.xlane.f32.xlu0 %v966_v44  ;;  %v959_v22 = vpop.xlane.xlu2 %958  ;;  %1209 = vmatpush.bf16.msrb.mxu2 %v1498_v17 }
 0xa56   :  { %v969_v23 = vmul.f32 %v959_v22, %v1955_v24 }
 0xa58   :  { %v973_v51 = vadd.f32 1e-12, %v969_v23 }
 0xa59   :  { %1210 = vmatpush.bf16.msrb.mxu2 %v1497_v63 }
 0xa5a   :  { %1587 = vrsqrt.f32 %v973_v51  ;;  %vm983_vm7 = vweird.f32 %v973_v51 }
 0xa5d   :  { %1211 = vmatpush.bf16.msrb.mxu2 %v1496_v52 }
 0xa60   :  { %v1588_v27 = vpop.eup %1587 }
 0xa61   :  { %v978_v30 = vmul.f32 %v1588_v27, %v973_v51  ;;  %vm984_vm6 = vweird.f32 %v1588_v27 }
 0xa62   :  { %vm985_vm8 = vmor %vm983_vm7, %vm984_vm6 }
 0xa63   :  { %v979_v31 = vmul.f32 %v1588_v27, %v978_v30 }
 0xa65   :  { %v980_v33 = vmul.f32 0.5, %v979_v31 }
 0xa67   :  { %v981_v29 = vsub.f32 1.5, %v980_v33 }
 0xa69   :  { %v982_v36 = vmul.f32 %v1588_v27, %v981_v29 }
 0xa6b   :  { %v986_v37 = vsel %vm985_vm8, %v1588_v27, %v982_v36 }
 0xa6c   :  { %v1017_v40 = vmul.f32 %v986_v37, %v949_v6 }
 0xa6e   :  { %v1024_v42 = vmul.f32 %v1513_v34, %v1017_v40 }
 0xa70   :  { %v2013_v9 = vadd.f32 %v1514_v38, %v1024_v42 }
 0xa72   :  { %v1035_v46 = vpack.c.bf16 %v2011_v45, %v2013_v9 }
 0xa74   :  { %1444 = vmatmul.msk.bf16.vlgmr.msrb.gmra.mxu3 %vm126_vm0, %v1035_v46 }
 0xac0   :  { %v965_v26 = vpop.xlane.xlu2 %964 }
 0xac1   :  { %v971_v47 = vmul.f32 %v965_v26, %v1955_v24 }
 0xac3   :  { %v975_v48 = vadd.f32 1e-12, %v971_v47 }
 0xac5   :  { %1589 = vrsqrt.f32 %v975_v48  ;;  %vm1003_vm10 = vweird.f32 %v975_v48 }
 0xac8   :  { %v968_v53 = vpop.xlane.xlu0 %967 }
 0xac9   :  { %v972_v54 = vmul.f32 %v968_v53, %v1955_v24 }
 0xacb   :  { %v1590_v56 = vpop.eup %1589  ;;  %v976_v58 = vadd.f32 1e-12, %v972_v54 }
 0xacc   :  { %v998_v59 = vmul.f32 %v1590_v56, %v975_v48  ;;  %vm1004_vm9 = vweird.f32 %v1590_v56 }
 0xacd   :  { %1591 = vrsqrt.f32 %v976_v58  ;;  %vm1005_vm11 = vmor %vm1003_vm10, %vm1004_vm9  ;;  %vm1013_vm13 = vweird.f32 %v976_v58 }
 0xace   :  { %v999_v60 = vmul.f32 %v1590_v56, %v998_v59 }
 0xad0   :  { %v1000_v62 = vmul.f32 0.5, %v999_v60 }
 0xad2   :  { %v1001_v0 = vsub.f32 1.5, %v1000_v62 }
 0xad3   :  { %v1592_v61 = vpop.eup %1591 }
 0xad4   :  { %v1002_v1 = vmul.f32 %v1590_v56, %v1001_v0  ;;  %v1008_v3 = vmul.f32 %v1592_v61, %v976_v58  ;;  %vm1014_vm12 = vweird.f32 %v1592_v61 }
 0xad5   :  { %vm1015_vm14 = vmor %vm1013_vm13, %vm1014_vm12 }
 0xad6   :  { %v1009_v4 = vmul.f32 %v1592_v61, %v1008_v3  ;;  %v1006_v5 = vsel %vm1005_vm11, %v1590_v56, %v1002_v1 }
 0xad7   :  { %v1019_v57 = vmul.f32 %v1006_v5, %v1986_v11 }
 0xad8   :  { %v1010_v6 = vmul.f32 0.5, %v1009_v4 }
 0xad9   :  { %v1026_v55 = vmul.f32 %v1513_v34, %v1019_v57 }
 0xada   :  { %v1011_v2 = vsub.f32 1.5, %v1010_v6 }
 0xadb   :  { %v2031_v12 = vadd.f32 %v1514_v38, %v1026_v55 }
 0xadc   :  { %v1012_v50 = vmul.f32 %v1592_v61, %v1011_v2 }
 0xade   :  { %v1016_v10 = vsel %vm1015_vm14, %v1592_v61, %v1012_v50 }
 0xadf   :  { %v1020_v49 = vmul.f32 %v1016_v10, %v1998_v18  ;;  %v1515_v18 = vld [vmem:[%s2122_s11] ss:$0 sm:$0xff] }
 0xae1   :  { %v1027_v20 = vmul.f32 %v1513_v34, %v1020_v49 }
 0xae3   :  { %v2033_v11 = vadd.f32 %v1514_v38, %v1027_v20 }
 0xae5   :  { %v1036_v14 = vpack.c.bf16 %v2033_v11, %v2031_v12 }
 0xae7   :  { %1445 = vmatmul.msk.bf16.gmra.mxu3 %vm126_vm0, %v1036_v14 }
 0xaf7   :  { %v1088_v43 = vpop.f32.mrf.mxu3 }
 0xaf8   :  { %v1089_v19 = vadd.f32 %v1515_v18, %v1088_v43 }
 0xafa   :  { %v1102_v44 = vmul.f32 0.044715, %v1089_v19  ;;  %v1098_v35 = vmul.f32 0.5, %v1089_v19 }
 0xafc   :  { %v1106_v21 = vmul.f32 %v1102_v44, %v1089_v19 }
 0xafe   :  { %v1110_v22 = vmul.f32 %v1106_v21, %v1089_v19 }
 0xaff   :  { %v1090_v23 = vpop.f32.mrf.mxu3 }
 0xb00   :  { %v1114_v51 = vadd.f32 %v1110_v22, %v1089_v19  ;;  %v1091_v25 = vadd.f32 %v1515_v18, %v1090_v23 }
 0xb02   :  { %v1103_v41 = vmul.f32 0.044715, %v1091_v25  ;;  %v1118_v27 = vmul.f32 0.7978846, %v1114_v51  ;;  %v1099_v36 = vmul.f32 0.5, %v1091_v25 }
 0xb04   :  { %v1107_v28 = vmul.f32 %v1103_v41, %v1091_v25  ;;  %1593 = vtanh.f32 %v1118_v27 }
 0xb06   :  { %v1111_v30 = vmul.f32 %v1107_v28, %v1091_v25 }
 0xb08   :  { %v1115_v31 = vadd.f32 %v1111_v30, %v1091_v25 }
 0xb0a   :  { %v1119_v32 = vmul.f32 0.7978846, %v1115_v31  ;;  %v1594_v33 = vpop.eup %1593 }
 0xb0b   :  { %v1126_v29 = vadd.f32 1.0, %v1594_v33 }
 0xb0c   :  { %1595 = vtanh.f32 %v1119_v32 }
 0xb0d   :  { %v1130_v38 = vmul.f32 %v1126_v29, %v1098_v35 }
 0xb12   :  { %v1596_v34 = vpop.eup %1595 }
 0xb13   :  { %v1127_v37 = vadd.f32 1.0, %v1596_v34 }
 0xb15   :  { %v1131_v39 = vmul.f32 %v1127_v37, %v1099_v36 }
 0xb17   :  { %v1134_v40 = vpack.c.bf16 %v1131_v39, %v1130_v38 }
 0xb19   :  { %1212 = vmatmul.bf16.vlgmr.msrb.gmra.mxu2 %v1134_v40 }
 0xb6a   :  { %v1093_v42 = vpop.f32.mrf.mxu3 }
 0xb6b   :  { %v1094_v46 = vadd.f32 %v1515_v18, %v1093_v42 }
 0xb6d   :  { %v1104_v26 = vmul.f32 0.044715, %v1094_v46  ;;  %v1100_v5 = vmul.f32 0.5, %v1094_v46 }
 0xb6f   :  { %v1108_v47 = vmul.f32 %v1104_v26, %v1094_v46 }
 0xb71   :  { %v1112_v48 = vmul.f32 %v1108_v47, %v1094_v46 }
 0xb72   :  { %v1095_v53 = vpop.f32.mrf.mxu3 }
 0xb73   :  { %v1096_v54 = vadd.f32 %v1515_v18, %v1095_v53  ;;  %v1116_v56 = vadd.f32 %v1112_v48, %v1094_v46 }
 0xb75   :  { %v1105_v58 = vmul.f32 0.044715, %v1096_v54  ;;  %v1120_v60 = vmul.f32 0.7978846, %v1116_v56  ;;  %v1101_v6 = vmul.f32 0.5, %v1096_v54 }
 0xb77   :  { %v1109_v59 = vmul.f32 %v1105_v58, %v1096_v54  ;;  %1597 = vtanh.f32 %v1120_v60 }
 0xb79   :  { %v1113_v62 = vmul.f32 %v1109_v59, %v1096_v54 }
 0xb7b   :  { %v1117_v0 = vadd.f32 %v1113_v62, %v1096_v54  ;;  %v1517_v62 = vld [vmem:[%s2125_s14] ss:$0 sm:$0xff] }
 0xb7d   :  { %v1121_v61 = vmul.f32 0.7978846, %v1117_v0  ;;  %v1598_v1 = vpop.eup %1597 }
 0xb7e   :  { %v1128_v3 = vadd.f32 1.0, %v1598_v1  ;;  %v1518_v1 = vld [vmem:[%s2126_s15] ss:$0 sm:$0xff] }
 0xb7f   :  { %1599 = vtanh.f32 %v1121_v61 }
 0xb80   :  { %v1132_v2 = vmul.f32 %v1128_v3, %v1100_v5 }
 0xb85   :  { %v1600_v4 = vpop.eup %1599 }
 0xb86   :  { %v1129_v7 = vadd.f32 1.0, %v1600_v4 }
 0xb88   :  { %v1133_v57 = vmul.f32 %v1129_v7, %v1101_v6 }
 0xb8a   :  { %v1135_v50 = vpack.c.bf16 %v1133_v57, %v1132_v2 }
 0xb8c   :  { %1217 = vmatmul.bf16.gmra.mxu2 %v1135_v50 }
 0xb9c   :  { %v1213_v10 = vpop.f32.mrf.mxu2 }
 0xb9d   :  { %v1214_v49 = vadd.f32 %v1516_v8, %v1213_v10 }
 0xb9f   :  { %v1223_v55 = vadd.f32 %v1214_v49, %v2013_v9 }
 0xba1   :  { %v1229_v16 = vsel %vm126_vm0, %v1223_v55, 0.0 }
 0xba2   :  { %1230 = vadd.xlane.f32.xlu1 %v1229_v16 }
 0xba4   :  { %v1215_v20 = vpop.f32.mrf.mxu2 }
 0xba5   :  { %v1216_v13 = vadd.f32 %v1516_v8, %v1215_v20 }
 0xba7   :  { %v1224_v14 = vadd.f32 %v1216_v13, %v2011_v45 }
 0xba9   :  { %v1232_v15 = vsel %vm126_vm0, %v1224_v14, 0.0 }
 0xbaa   :  { %1233 = vadd.xlane.f32.xlu2 %v1232_v15 }
 0xc0f   :  { %v1218_v17 = vpop.f32.mrf.mxu2 }
 0xc10   :  { %v1219_v63 = vadd.f32 %v1516_v8, %v1218_v17 }
 0xc12   :  { %v1225_v52 = vadd.f32 %v1219_v63, %v2031_v12 }
 0xc14   :  { %v1235_v18 = vsel %vm126_vm0, %v1225_v52, 0.0 }
 0xc15   :  { %v1231_v43 = vpop.xlane.xlu1 %1230  ;;  %1236 = vadd.xlane.f32.xlu0 %v1235_v18 }
 0xc16   :  { %v1241_v9 = vmul.f32 %v1231_v43, %v1955_v24 }
 0xc17   :  { %v1220_v19 = vpop.f32.mrf.mxu2 }
 0xc18   :  { %v1245_v44 = vsub.f32 %v1223_v55, %v1241_v9  ;;  %v1221_v21 = vadd.f32 %v1516_v8, %v1220_v19 }
 0xc1a   :  { %v1249_v22 = vmul.f32 %v1245_v44, %v1245_v44  ;;  %v1226_v23 = vadd.f32 %v1221_v21, %v2033_v11 }
 0xc1c   :  { %v1253_v45 = vsel %vm126_vm0, %v1249_v22, 0.0  ;;  %v1238_v51 = vsel %vm126_vm0, %v1226_v23, 0.0 }
 0xc1d   :  { %1254 = vadd.xlane.f32.xlu2 %v1253_v45  ;;  %1239 = vadd.xlane.f32.xlu1 %v1238_v51  ;;  %v1234_v25 = vpop.xlane.xlu2 %1233 }
 0xc1e   :  { %v1242_v12 = vmul.f32 %v1234_v25, %v1955_v24 }
 0xc20   :  { %v1246_v41 = vsub.f32 %v1224_v14, %v1242_v12 }
 0xc22   :  { %v1250_v27 = vmul.f32 %v1246_v41, %v1246_v41 }
 0xc24   :  { %v1256_v28 = vsel %vm126_vm0, %v1250_v27, 0.0 }
 0xc25   :  { %1257 = vadd.xlane.f32.xlu0 %v1256_v28 }
 0xc88   :  { %v1237_v30 = vpop.xlane.xlu0 %1236 }
 0xc89   :  { %v1243_v31 = vmul.f32 %v1237_v30, %v1955_v24 }
 0xc8b   :  { %v2072_v32 = vsub.f32 %v1225_v52, %v1243_v31 }
 0xc8d   :  { %v1251_v11 = vmul.f32 %v2072_v32, %v2072_v32 }
 0xc8f   :  { %v1259_v33 = vsel %vm126_vm0, %v1251_v11, 0.0 }
 0xc90   :  { %v1240_v29 = vpop.xlane.xlu1 %1239  ;;  %1260 = vadd.xlane.f32.xlu1 %v1259_v33  ;;  %v1255_v34 = vpop.xlane.xlu2 %1254 }
 0xc91   :  { %v1244_v35 = vmul.f32 %v1240_v29, %v1955_v24  ;;  %v1265_v36 = vmul.f32 %v1255_v34, %v1955_v24 }
 0xc93   :  { %v2079_v37 = vsub.f32 %v1226_v23, %v1244_v35  ;;  %v1269_v38 = vadd.f32 1e-12, %v1265_v36 }
 0xc95   :  { %1601 = vrsqrt.f32 %v1269_v38  ;;  %v1252_v39 = vmul.f32 %v2079_v37, %v2079_v37  ;;  %vm1279_vm1 = vweird.f32 %v1269_v38 }
 0xc97   :  { %v1262_v40 = vsel %vm126_vm0, %v1252_v39, 0.0 }
 0xc98   :  { %1263 = vadd.xlane.f32.xlu2 %v1262_v40  ;;  %v1258_v42 = vpop.xlane.xlu0 %1257 }
 0xc99   :  { %v1266_v46 = vmul.f32 %v1258_v42, %v1955_v24 }
 0xc9b   :  { %v1602_v26 = vpop.eup %1601  ;;  %v1270_v47 = vadd.f32 1e-12, %v1266_v46 }
 0xc9c   :  { %v1274_v48 = vmul.f32 %v1602_v26, %v1269_v38  ;;  %vm1280_vm15 = vweird.f32 %v1602_v26 }
 0xc9d   :  { %1603 = vrsqrt.f32 %v1270_v47  ;;  %vm1281_vm0 = vmor %vm1279_vm1, %vm1280_vm15  ;;  %vm1289_vm4 = vweird.f32 %v1270_v47 }
 0xc9e   :  { %v1275_v53 = vmul.f32 %v1602_v26, %v1274_v48 }
 0xca0   :  { %v1276_v54 = vmul.f32 0.5, %v1275_v53 }
 0xca2   :  { %v1277_v56 = vsub.f32 1.5, %v1276_v54 }
 0xca3   :  { %v1604_v58 = vpop.eup %1603 }
 0xca4   :  { %v1278_v59 = vmul.f32 %v1602_v26, %v1277_v56  ;;  %v1284_v60 = vmul.f32 %v1604_v58, %v1270_v47  ;;  %vm1290_vm2 = vweird.f32 %v1604_v58 }
 0xca5   :  { %vm1291_vm5 = vmor %vm1289_vm4, %vm1290_vm2 }
 0xca6   :  { %v1282_v0 = vsel %vm1281_vm0, %v1602_v26, %v1278_v59  ;;  %v1285_v61 = vmul.f32 %v1604_v58, %v1284_v60 }
 0xca7   :  { %v1313_v3 = vmul.f32 %v1282_v0, %v1245_v44 }
 0xca8   :  { %v1286_v4 = vmul.f32 0.5, %v1285_v61 }
 0xca9   :  { %v1320_v5 = vmul.f32 %v1517_v62, %v1313_v3 }
 0xcaa   :  { %v1287_v6 = vsub.f32 1.5, %v1286_v4 }
 0xcab   :  { %v1327_v7 = vadd.f32 %v1518_v1, %v1320_v5 }
 0xcac   :  { %v1288_v2 = vmul.f32 %v1604_v58, %v1287_v6 }
 0xcad   :  { %v1331_v57 = vpack.c.bf16 %v1327_v7, %v1327_v7 }
 0xcae   :  { %v1292_v50 = vsel %vm1291_vm5, %v1604_v58, %v1288_v2 }
 0xcaf   :  { %1336 = vst.msk [vmem:[%s2127_s16] sm:$0xf] %vm1335_vm3, %v1331_v57  ;;  %v1314_v8 = vmul.f32 %v1292_v50, %v1246_v41 }
 0xcb1   :  { %v1321_v10 = vmul.f32 %v1517_v62, %v1314_v8 }
 0xcb3   :  { %v1328_v49 = vadd.f32 %v1518_v1, %v1321_v10 }
 0xcb5   :  { %v1332_v55 = vpack.c.bf16 %v1328_v49, %v1328_v49 }
 0xcb7   :  { %1337 = vst.msk [vmem:[%s2127_s16 + $0x4] sm:$0xf] %vm1335_vm3, %v1332_v55 }
 0xd03   :  { %v1261_v16 = vpop.xlane.xlu1 %1260 }
 0xd04   :  { %v1267_v20 = vmul.f32 %v1261_v16, %v1955_v24 }
 0xd06   :  { %v1271_v13 = vadd.f32 1e-12, %v1267_v20 }
 0xd08   :  { %1605 = vrsqrt.f32 %v1271_v13  ;;  %vm1299_vm7 = vweird.f32 %v1271_v13 }
 0xd0b   :  { %v1264_v14 = vpop.xlane.xlu2 %1263 }
 0xd0c   :  { %v1268_v15 = vmul.f32 %v1264_v14, %v1955_v24 }
 0xd0e   :  { %v1606_v17 = vpop.eup %1605  ;;  %v1272_v63 = vadd.f32 1e-12, %v1268_v15 }
 0xd0f   :  { %v1294_v52 = vmul.f32 %v1606_v17, %v1271_v13  ;;  %vm1300_vm6 = vweird.f32 %v1606_v17 }
 0xd10   :  { %1607 = vrsqrt.f32 %v1272_v63  ;;  %vm1301_vm8 = vmor %vm1299_vm7, %vm1300_vm6  ;;  %vm1309_vm10 = vweird.f32 %v1272_v63 }
 0xd11   :  { %v1295_v18 = vmul.f32 %v1606_v17, %v1294_v52 }
 0xd13   :  { %v1296_v43 = vmul.f32 0.5, %v1295_v18 }
 0xd15   :  { %v1297_v9 = vsub.f32 1.5, %v1296_v43 }
 0xd16   :  { %v1608_v19 = vpop.eup %1607 }
 0xd17   :  { %v1298_v44 = vmul.f32 %v1606_v17, %v1297_v9  ;;  %v1304_v21 = vmul.f32 %v1608_v19, %v1272_v63  ;;  %vm1310_vm9 = vweird.f32 %v1608_v19 }
 0xd18   :  { %vm1311_vm11 = vmor %vm1309_vm10, %vm1310_vm9 }
 0xd19   :  { %v1302_v22 = vsel %vm1301_vm8, %v1606_v17, %v1298_v44  ;;  %v1305_v23 = vmul.f32 %v1608_v19, %v1304_v21 }
 0xd1a   :  { %v1315_v45 = vmul.f32 %v1302_v22, %v2072_v32 }
 0xd1b   :  { %v1306_v51 = vmul.f32 0.5, %v1305_v23 }
 0xd1c   :  { %v1322_v25 = vmul.f32 %v1517_v62, %v1315_v45 }
 0xd1d   :  { %v1307_v24 = vsub.f32 1.5, %v1306_v51 }
 0xd1e   :  { %v1329_v12 = vadd.f32 %v1518_v1, %v1322_v25 }
 0xd1f   :  { %v1308_v41 = vmul.f32 %v1608_v19, %v1307_v24 }
 0xd20   :  { %v1333_v27 = vpack.c.bf16 %v1329_v12, %v1329_v12 }
 0xd21   :  { %v1312_v28 = vsel %vm1311_vm11, %v1608_v19, %v1308_v41 }
 0xd22   :  { %1338 = vst.msk [vmem:[%s2127_s16 + $0x8] sm:$0xf] %vm1335_vm3, %v1333_v27  ;;  %v1316_v30 = vmul.f32 %v1312_v28, %v2079_v37 }
 0xd24   :  { %v1323_v31 = vmul.f32 %v1517_v62, %v1316_v30 }
 0xd26   :  { %v1330_v11 = vadd.f32 %v1518_v1, %v1323_v31 }
 0xd28   :  { %v1334_v32 = vpack.c.bf16 %v1330_v11, %v1330_v11 }
 0xd2a   :  { %1339 = vst.msk [vmem:[%s2127_s16 + $0xc] sm:$0xf] %vm1335_vm3, %v1334_v32 }

</bundles_post_ra>
